<compile_context>
chip_gen: v7x
topology: tpu7x:2x2x1
jax: 0.10.0
libtpu: 0.0.40
codegen_flags: <defaults>
</compile_context>

<pallas_src>
import functools

import numpy as np
import jax
import jax.numpy as jnp
from jax.experimental import pallas as pl
from jax.experimental.pallas import tpu as pltpu


# ----------------------------- shared helpers -------------------------------

def _layernorm(x, gamma, beta, eps=1e-6):
    mean = jnp.mean(x, axis=-1, keepdims=True)
    var = jnp.mean((x - mean) ** 2, axis=-1, keepdims=True)
    return (x - mean) * jax.lax.rsqrt(var + eps) * gamma + beta


# ------------------------------ Pallas kernel --------------------------------

def encoder_kernel(x_ref, bias_ref, pos_ref, g0_ref, b0_ref,
                   wq_ref, bq_ref, wk_ref, bk_ref, wv_ref, bv_ref,
                   wo_ref, bo_ref, g1_ref, be1_ref,
                   w1_ref, bf1_ref, w2_ref, bf2_ref, g2_ref, be2_ref,
                   o_ref, x_vmem, *, n_head):
    """Fused prelude + all encoder layers for one block of Bb sequences.

    grid = (B // Bb, n_layers).  x_vmem keeps the (Bb*S, D) activations
    resident across the layer axis; per-layer weights are streamed (auto
    double-buffered) by their stacked (L, ...) BlockSpecs.
    """
    layer = pl.program_id(1)
    Bb, S, D = x_ref.shape
    M = Bb * S                        # matmul M-dim (>= 128/256 at real sizes)
    H = n_head
    dk = D // H
    G = Bb * H                        # collapsed (batch, head) einsum batch dim
    cdt = wq_ref.dtype                # MXU operand dtype (bf16 or f32)

    # ---- prelude (first layer step only): x = LN(emb + pos) ----------------
    @pl.when(layer == 0)
    def _prelude():
        xe = x_ref[...] + pos_ref[...][None, :, :]            # (Bb, S, D)
        x_vmem[...] = _layernorm(xe, g0_ref[...], b0_ref[...]).reshape(M, D)

    x = x_vmem[...]                   # (M, D) f32 residual stream, VMEM-resident
    xc = x.astype(cdt)

    # ---- multi-head self-attention ------------------------------------------
    # QKV projections: lane-dense (M,D)@(D,D) MXU matmuls, f32 accumulation.
    # NOTE: 1/sqrt(dk) is already folded into wq / bq (offline).
    q = jnp.dot(xc, wq_ref[...], preferred_element_type=jnp.float32) + bq_ref[...]
    k = jnp.dot(xc, wk_ref[...], preferred_element_type=jnp.float32) + bk_ref[...]
    v = jnp.dot(xc, wv_ref[...], preferred_element_type=jnp.float32) + bv_ref[...]

    def heads(t):                      # (M, D) -> (Bb*H, S, dk)
        t = t.reshape(Bb, S, H, dk)
        t = jnp.swapaxes(t, 1, 2)      # (Bb, H, S, dk)
        return t.reshape(G, S, dk)

    qh, kh, vh = heads(q), heads(k), heads(v)

    # Additive pad mask, broadcast per head: 0.0 keep / -1e9 pad.
    bias = bias_ref[...]                                       # (Bb, 1, S)
    bias_g = jnp.broadcast_to(bias[:, None, :, :], (Bb, H, 1, S)).reshape(G, 1, S)

    # Single batched contraction over (batch, head); K consumed un-transposed.
    s = jnp.einsum("gqd,gkd->gqk", qh.astype(cdt), kh.astype(cdt),
                   preferred_element_type=jnp.float32)
    s = s + bias_g
    s = s - jnp.max(s, axis=-1, keepdims=True)
    p = jnp.exp(s)
    inv = pl.reciprocal(jnp.sum(p, axis=-1, keepdims=True))    # (G, S, 1), exact

    ctx = jnp.einsum("gqk,gkd->gqd", p.astype(cdt), vh.astype(cdt),
                     preferred_element_type=jnp.float32)
    ctx = ctx * inv                    # deferred softmax normalization
    ctx = jnp.swapaxes(ctx.reshape(Bb, H, S, dk), 1, 2).reshape(M, D)

    attn_out = (jnp.dot(ctx.astype(cdt), wo_ref[...],
                        preferred_element_type=jnp.float32) + bo_ref[...])
    h1 = _layernorm(attn_out + x, g1_ref[...], be1_ref[...])   # residual + LN (f32)

    # ---- position-wise feed-forward -----------------------------------------
    f = jnp.dot(h1.astype(cdt), w1_ref[...],
                preferred_element_type=jnp.float32) + bf1_ref[...]
    f = jnp.maximum(f, 0.0)
    f = jnp.dot(f.astype(cdt), w2_ref[...],
                preferred_element_type=jnp.float32) + bf2_ref[...]
    x_vmem[...] = _layernorm(f + h1, g2_ref[...], be2_ref[...])  # residual + LN

    # ---- single lane-dense output write at the last layer -------------------
    @pl.when(layer == pl.num_programs(1) - 1)
    def _finalize():
        o_ref[...] = x_vmem[...].reshape(Bb, S, D)


# -------------------------------- wrapper ------------------------------------

_WEIGHT_NAMES = ("wq", "bq", "wk", "bk", "wv", "bv", "wo", "bo",
                 "g1", "be1", "w1", "bf1", "w2", "bf2", "g2", "be2")
_MATMUL_WEIGHTS = ("wq", "wk", "wv", "wo", "w1", "w2")


def prepare_encoder_params(params, compute_dtype=jnp.bfloat16):
    """One-time (offline) weight prep:
      * fold the 1/sqrt(dk) attention scale into Wq / bq,
      * cast matmul weights to the MXU compute dtype (bf16 on v6e/v7x),
        keeping biases / LayerNorm params / embeddings / pos table in f32."""
    kp = dict(params)
    dk = params["emb"].shape[1] // params["n_head"]
    scale = 1.0 / float(np.sqrt(dk))
    kp["wq"] = params["wq"] * scale
    kp["bq"] = params["bq"] * scale
    for name in _MATMUL_WEIGHTS:
        kp[name] = kp[name].astype(compute_dtype)
    return kp


def _pick_batch_block(batch, seq, target_m=256, min_blocks=2):
    """Largest divisor Bb of `batch` with Bb*seq <= target_m (MXU M-dim target)
    while keeping >= min_blocks batch blocks (feeds both v7x TensorCores)."""
    best = 1
    for bb in range(1, batch + 1):
        if (batch % bb == 0 and bb * seq <= target_m
                and batch // bb >= min(min_blocks, batch)):
            best = bb
    return best


def encoder_forward(src_seqs, src_mask, kparams, *, batch_block=None):
    """Full Encoder.forward (eval mode, return_attns=False).

    `kparams` must come from prepare_encoder_params()."""
    # Embedding lookup = data-dependent gather -> plain JAX glue.
    x = jnp.take(kparams["emb"], src_seqs, axis=0).astype(jnp.float32)  # (B,S,D)
    B, S, D = x.shape
    n_layers = kparams["wq"].shape[0]
    n_head = kparams["n_head"]

    Bb = batch_block or _pick_batch_block(B, S)
    if B % Bb != 0:
        raise ValueError("batch_block must divide batch")

    # Additive mask bias, computed once: 0.0 where keep, -1e9 where pad.
    bias = (src_mask.astype(jnp.float32) - 1.0) * 1e9                   # (B,1,S)
    pos = kparams["pos_table"][:S]                                      # (S, D)
    wlist = [kparams[n] for n in _WEIGHT_NAMES]

    in_specs = [
        pl.BlockSpec((Bb, S, D), lambda b, l: (b, 0, 0)),   # embedded tokens
        pl.BlockSpec((Bb, 1, S), lambda b, l: (b, 0, 0)),   # additive mask
        pl.BlockSpec((S, D), lambda b, l: (0, 0)),          # positional table
        pl.BlockSpec((1, D), lambda b, l: (0, 0)),          # prelude LN gamma
        pl.BlockSpec((1, D), lambda b, l: (0, 0)),          # prelude LN beta
    ] + [
        # Stacked per-layer weights (L, r, c): stream layer l's slice each step.
        pl.BlockSpec((None,) + tuple(w.shape[1:]), lambda b, l: (l, 0, 0))
        for w in wlist
    ]

    # Explicit scoped-VMEM budget: double-buffered streamed blocks + resident
    # activation scratch, capped at v7x's 64 MiB physical VMEM.
    w_layer_bytes = sum(int(np.prod(w.shape[1:])) * w.dtype.itemsize for w in wlist)
    io_bytes = Bb * S * D * 4
    raw = (2 * (w_layer_bytes + 2 * io_bytes + Bb * S * 4)
           + io_bytes + S * D * 4 + 6 * D * 4)
    vmem_limit = int(min(64 << 20, max(32 << 20, 4 * raw)))

    return pl.pallas_call(
        functools.partial(encoder_kernel, n_head=n_head),
        out_shape=jax.ShapeDtypeStruct((B, S, D), jnp.float32),
        grid=(B // Bb, n_layers),
        in_specs=in_specs,
        out_specs=pl.BlockSpec((Bb, S, D), lambda b, l: (b, 0, 0)),
        scratch_shapes=[pltpu.VMEM((Bb * S, D), jnp.float32)],
        compiler_params=pltpu.CompilerParams(
            dimension_semantics=("parallel", "arbitrary"),
            vmem_limit_bytes=vmem_limit),
    )(x, bias, pos, kparams["ln_g"], kparams["ln_b"], *wlist)


# ----------------------------- param construction ---------------------------

def sinusoid_table(n_position, d_model):
    pos = np.arange(n_position)[:, None].astype(np.float64)
    i = np.arange(d_model)[None, :]
    angle = pos / np.power(10000.0, 2.0 * (i // 2) / d_model)
    tab = np.zeros((n_position, d_model), dtype=np.float64)
    tab[:, 0::2] = np.sin(angle[:, 0::2])
    tab[:, 1::2] = np.cos(angle[:, 1::2])
    return jnp.asarray(tab, jnp.float32)


def make_params(key, vocab_size, d_model, d_inner, n_head, n_layers,
                n_position=200):
    """Weights stored as (in_features, out_features); per-layer tensors are
    stacked with a leading layer dim so the kernel can stream them by layer."""
    def rnd(shape, scale=0.05):
        nonlocal key
        key, sub = jax.random.split(key)
        return scale * jax.random.normal(sub, shape, jnp.float32)

    L = n_layers
    return {
        "emb": rnd((vocab_size, d_model)),
        "pos_table": sinusoid_table(n_position, d_model),
        "ln_g": 1.0 + rnd((1, d_model), 0.1),
        "ln_b": rnd((1, d_model), 0.1),
        "n_head": n_head,
        "wq": rnd((L, d_model, d_model)), "bq": rnd((L, 1, d_model)),
        "wk": rnd((L, d_model, d_model)), "bk": rnd((L, 1, d_model)),
        "wv": rnd((L, d_model, d_model)), "bv": rnd((L, 1, d_model)),
        "wo": rnd((L, d_model, d_model)), "bo": rnd((L, 1, d_model)),
        "g1": 1.0 + rnd((L, 1, d_model), 0.1), "be1": rnd((L, 1, d_model), 0.1),
        "w1": rnd((L, d_model, d_inner)), "bf1": rnd((L, 1, d_inner)),
        "w2": rnd((L, d_inner, d_model)), "bf2": rnd((L, 1, d_model)),
        "g2": 1.0 + rnd((L, 1, d_model), 0.1), "be2": rnd((L, 1, d_model), 0.1),
    }


# ------------------------------ pure-JAX reference ---------------------------

def reference_encoder(src_seqs, src_mask, params, weight_dtype=jnp.float32):
    d_model = params["emb"].shape[1]
    n_head = params["n_head"]
    dk = d_model // n_head

    def w(name, l):   # share the kernel's matmul-weight rounding (bf16 mode)
        return params[name][l].astype(weight_dtype).astype(jnp.float32)

    x = jnp.take(params["emb"], src_seqs, axis=0).astype(jnp.float32)
    x = x + params["pos_table"][None, :x.shape[1]]
    x = _layernorm(x, params["ln_g"][0], params["ln_b"][0])

    B, S, D = x.shape
    mask4 = src_mask[:, None, :, :]                     # (B,1,1,S)
    n_layers = params["wq"].shape[0]
    for l in range(n_layers):
        q = (x @ w("wq", l) + params["bq"][l]).reshape(B, S, n_head, dk)
        k = (x @ w("wk", l) + params["bk"][l]).reshape(B, S, n_head, dk)
        v = (x @ w("wv", l) + params["bv"][l]).reshape(B, S, n_head, dk)
        scores = jnp.einsum("bqhd,bkhd->bhqk", q, k) / (dk ** 0.5)
        scores = jnp.where(mask4 == 0.0, -1e9, scores)
        attn = jax.nn.softmax(scores, axis=-1)
        ctx = jnp.einsum("bhqk,bkhd->bqhd", attn, v).reshape(B, S, D)
        out = ctx @ w("wo", l) + params["bo"][l]
        x = _layernorm(out + x, params["g1"][l], params["be1"][l])
        f = (jax.nn.relu(x @ w("w1", l) + params["bf1"][l])
             @ w("w2", l) + params["bf2"][l])
        x = _layernorm(f + x, params["g2"][l], params["be2"][l])
    return x


# ----------------------------------- main ------------------------------------

if __name__ == "__main__":
    # B=8 so batch blocking is exercised: Bb=4 -> grid=(2, n_layers), M=Bb*S=32.
    B, S = 8, 8
    vocab_size, d_model, d_inner, n_head, n_layers = 50, 128, 256, 4, 2

    key = jax.random.PRNGKey(0)
    k_seq, k_param = jax.random.split(key)

    # token ids in [1, vocab); mark tails of two sequences as padding (id 0)
    src_seqs = jax.random.randint(k_seq, (B, S), 1, vocab_size, dtype=jnp.int32)
    src_seqs = src_seqs.at[1, -2:].set(0)
    src_seqs = src_seqs.at[5, -3:].set(0)
    src_mask = (src_seqs != 0).astype(jnp.float32)[:, None, :]   # (B, 1, S)

    params = make_params(k_param, vocab_size, d_model, d_inner, n_head, n_layers)

    # 1) strict-semantics check: f32 compute path vs pure-JAX reference.
    out_f32 = jax.block_until_ready(
        encoder_forward(src_seqs, src_mask,
                        prepare_encoder_params(params, jnp.float32)))
    ref_f32 = reference_encoder(src_seqs, src_mask, params)
    np.testing.assert_allclose(np.asarray(out_f32), np.asarray(ref_f32),
                               rtol=1e-4, atol=1e-4)

    # 2) perf mode: bf16 matmul operands, f32 accumulation / LayerNorm.
    out_bf16 = jax.block_until_ready(
        encoder_forward(src_seqs, src_mask,
                        prepare_encoder_params(params, jnp.bfloat16)))
    ref_bf16 = reference_encoder(src_seqs, src_mask, params,
                                 weight_dtype=jnp.bfloat16)
    np.testing.assert_allclose(np.asarray(out_bf16), np.asarray(ref_bf16),
                               rtol=5e-2, atol=5e-2)

    print("KERNEL_OK")
</pallas_src>

<mosaic_0001>
module attributes {stable_mosaic.version = 11 : i64} {
  func.func @encoder_kernel(%arg0: i32, %arg1: i32, %arg2: memref<4x8x128xf32, #tpu.memory_space<vmem>>, %arg3: memref<4x1x8xf32, #tpu.memory_space<vmem>>, %arg4: memref<8x128xf32, #tpu.memory_space<vmem>>, %arg5: memref<1x128xf32, #tpu.memory_space<vmem>>, %arg6: memref<1x128xf32, #tpu.memory_space<vmem>>, %arg7: memref<1x128x128xf32, #tpu.memory_space<vmem>>, %arg8: memref<1x1x128xf32, #tpu.memory_space<vmem>>, %arg9: memref<1x128x128xf32, #tpu.memory_space<vmem>>, %arg10: memref<1x1x128xf32, #tpu.memory_space<vmem>>, %arg11: memref<1x128x128xf32, #tpu.memory_space<vmem>>, %arg12: memref<1x1x128xf32, #tpu.memory_space<vmem>>, %arg13: memref<1x128x128xf32, #tpu.memory_space<vmem>>, %arg14: memref<1x1x128xf32, #tpu.memory_space<vmem>>, %arg15: memref<1x1x128xf32, #tpu.memory_space<vmem>>, %arg16: memref<1x1x128xf32, #tpu.memory_space<vmem>>, %arg17: memref<1x128x256xf32, #tpu.memory_space<vmem>>, %arg18: memref<1x1x256xf32, #tpu.memory_space<vmem>>, %arg19: memref<1x256x128xf32, #tpu.memory_space<vmem>>, %arg20: memref<1x1x128xf32, #tpu.memory_space<vmem>>, %arg21: memref<1x1x128xf32, #tpu.memory_space<vmem>>, %arg22: memref<1x1x128xf32, #tpu.memory_space<vmem>>, %arg23: memref<4x8x128xf32, #tpu.memory_space<vmem>>, %arg24: memref<32x128xf32, #tpu.memory_space<vmem>>) attributes {dimension_semantics = [#tpu.dimension_semantics<parallel>, #tpu.dimension_semantics<arbitrary>], iteration_bounds = array<i64: 2, 2>, scalar_prefetch = 0 : i64, scratch_operands = 1 : i64, tpu.core_type = #tpu.core_type<tc>, window_params = [{transform_indices = @transform_0, window_bounds = array<i64: 4, 8, 128>}, {transform_indices = @transform_1, window_bounds = array<i64: 4, 1, 8>}, {pipeline_mode = #tpu.pipeline_mode<synchronous>, transform_indices = @transform_2, window_bounds = array<i64: 8, 128>}, {pipeline_mode = #tpu.pipeline_mode<synchronous>, transform_indices = @transform_3, window_bounds = array<i64: 1, 128>}, {pipeline_mode = #tpu.pipeline_mode<synchronous>, transform_indices = @transform_4, window_bounds = array<i64: 1, 128>}, {transform_indices = @transform_5, window_bounds = array<i64: 1, 128, 128>}, {transform_indices = @transform_6, window_bounds = array<i64: 1, 1, 128>}, {transform_indices = @transform_7, window_bounds = array<i64: 1, 128, 128>}, {transform_indices = @transform_8, window_bounds = array<i64: 1, 1, 128>}, {transform_indices = @transform_9, window_bounds = array<i64: 1, 128, 128>}, {transform_indices = @transform_10, window_bounds = array<i64: 1, 1, 128>}, {transform_indices = @transform_11, window_bounds = array<i64: 1, 128, 128>}, {transform_indices = @transform_12, window_bounds = array<i64: 1, 1, 128>}, {transform_indices = @transform_13, window_bounds = array<i64: 1, 1, 128>}, {transform_indices = @transform_14, window_bounds = array<i64: 1, 1, 128>}, {transform_indices = @transform_15, window_bounds = array<i64: 1, 128, 256>}, {transform_indices = @transform_16, window_bounds = array<i64: 1, 1, 256>}, {transform_indices = @transform_17, window_bounds = array<i64: 1, 256, 128>}, {transform_indices = @transform_18, window_bounds = array<i64: 1, 1, 128>}, {transform_indices = @transform_19, window_bounds = array<i64: 1, 1, 128>}, {transform_indices = @transform_20, window_bounds = array<i64: 1, 1, 128>}, {transform_indices = @transform_21, window_bounds = array<i64: 4, 8, 128>}]} {
    %c0_i32 = arith.constant 0 : i32
    %0 = arith.cmpi eq, %arg1, %c0_i32 : i32
    %1 = arith.extui %0 : i1 to i32
    %c0_i32_0 = arith.constant 0 : i32
    %2 = arith.cmpi ne, %1, %c0_i32_0 : i32
    scf.if %2 {
      %c0_76 = arith.constant 0 : index
      %c0_77 = arith.constant 0 : index
      %c0_78 = arith.constant 0 : index
      %137 = vector.load %arg2[%c0_76, %c0_77, %c0_78] : memref<4x8x128xf32, #tpu.memory_space<vmem>>, vector<4x8x128xf32>
      %c0_79 = arith.constant 0 : index
      %c0_80 = arith.constant 0 : index
      %138 = vector.load %arg4[%c0_79, %c0_80] : memref<8x128xf32, #tpu.memory_space<vmem>>, vector<8x128xf32>
      %139 = vector.shape_cast %138 : vector<8x128xf32> to vector<1x8x128xf32>
      %140 = vector.broadcast %139 : vector<1x8x128xf32> to vector<4x8x128xf32>
      %141 = arith.addf %137, %140 : vector<4x8x128xf32>
      %c0_81 = arith.constant 0 : index
      %c0_82 = arith.constant 0 : index
      %142 = vector.load %arg5[%c0_81, %c0_82] : memref<1x128xf32, #tpu.memory_space<vmem>>, vector<1x128xf32>
      %c0_83 = arith.constant 0 : index
      %c0_84 = arith.constant 0 : index
      %143 = vector.load %arg6[%c0_83, %c0_84] : memref<1x128xf32, #tpu.memory_space<vmem>>, vector<1x128xf32>
      %cst_85 = arith.constant dense<0.000000e+00> : vector<4x8xf32>
      %144 = vector.multi_reduction <add>, %141, %cst_85 [2] : vector<4x8x128xf32> to vector<4x8xf32>
      %145 = vector.shape_cast %144 : vector<4x8xf32> to vector<4x8x1xf32>
      %cst_86 = arith.constant 1.280000e+02 : f32
      %146 = vector.broadcast %cst_86 : f32 to vector<4x8x1xf32>
      %147 = arith.divf %145, %146 : vector<4x8x1xf32>
      %148 = vector.broadcast %147 : vector<4x8x1xf32> to vector<4x8x128xf32>
      %149 = arith.subf %141, %148 : vector<4x8x128xf32>
      %150 = arith.mulf %149, %149 : vector<4x8x128xf32>
      %cst_87 = arith.constant dense<0.000000e+00> : vector<4x8xf32>
      %151 = vector.multi_reduction <add>, %150, %cst_87 [2] : vector<4x8x128xf32> to vector<4x8xf32>
      %152 = vector.shape_cast %151 : vector<4x8xf32> to vector<4x8x1xf32>
      %cst_88 = arith.constant 1.280000e+02 : f32
      %153 = vector.broadcast %cst_88 : f32 to vector<4x8x1xf32>
      %154 = arith.divf %152, %153 : vector<4x8x1xf32>
      %155 = vector.broadcast %147 : vector<4x8x1xf32> to vector<4x8x128xf32>
      %156 = arith.subf %141, %155 : vector<4x8x128xf32>
      %cst_89 = arith.constant 9.99999997E-7 : f32
      %157 = vector.broadcast %cst_89 : f32 to vector<4x8x1xf32>
      %158 = arith.addf %154, %157 : vector<4x8x1xf32>
      %159 = math.rsqrt %158 : vector<4x8x1xf32>
      %160 = vector.broadcast %159 : vector<4x8x1xf32> to vector<4x8x128xf32>
      %161 = arith.mulf %156, %160 : vector<4x8x128xf32>
      %162 = vector.shape_cast %142 : vector<1x128xf32> to vector<1x1x128xf32>
      %163 = vector.broadcast %162 : vector<1x1x128xf32> to vector<4x8x128xf32>
      %164 = arith.mulf %161, %163 : vector<4x8x128xf32>
      %165 = vector.shape_cast %143 : vector<1x128xf32> to vector<1x1x128xf32>
      %166 = vector.broadcast %165 : vector<1x1x128xf32> to vector<4x8x128xf32>
      %167 = arith.addf %164, %166 : vector<4x8x128xf32>
      %168 = vector.shape_cast %167 : vector<4x8x128xf32> to vector<32x128xf32>
      %c0_90 = arith.constant 0 : index
      %c0_91 = arith.constant 0 : index
      %169 = vector.load %arg24[%c0_90, %c0_91] : memref<32x128xf32, #tpu.memory_space<vmem>>, vector<32x128xf32>
      tpu.vector_store %arg24[%c0_90, %c0_91], %168 {strides = array<i32>} : memref<32x128xf32, #tpu.memory_space<vmem>>, vector<32x128xf32>,
    } else {
    }
    %c0 = arith.constant 0 : index
    %c0_1 = arith.constant 0 : index
    %3 = vector.load %arg24[%c0, %c0_1] : memref<32x128xf32, #tpu.memory_space<vmem>>, vector<32x128xf32>
    %c0_2 = arith.constant 0 : index
    %c0_3 = arith.constant 0 : index
    %c0_4 = arith.constant 0 : index
    %4 = vector.load %arg7[%c0_2, %c0_3, %c0_4] : memref<1x128x128xf32, #tpu.memory_space<vmem>>, vector<1x128x128xf32>
    %5 = vector.shape_cast %4 : vector<1x128x128xf32> to vector<128x128xf32>
    %cst = arith.constant dense<0.000000e+00> : vector<32x128xf32>
    %6 = tpu.matmul %3, %5, %cst {dimension_numbers = #tpu.dot_dimension_numbers<[1], [0], [0], [1], [0, 0, 1, 1], [], []>} : vector<32x128xf32>, vector<128x128xf32>, vector<32x128xf32> -> vector<32x128xf32>
    %c0_5 = arith.constant 0 : index
    %c0_6 = arith.constant 0 : index
    %c0_7 = arith.constant 0 : index
    %7 = vector.load %arg8[%c0_5, %c0_6, %c0_7] : memref<1x1x128xf32, #tpu.memory_space<vmem>>, vector<1x1x128xf32>
    %8 = vector.shape_cast %7 : vector<1x1x128xf32> to vector<1x128xf32>
    %9 = vector.broadcast %8 : vector<1x128xf32> to vector<32x128xf32>
    %10 = arith.addf %6, %9 : vector<32x128xf32>
    %c0_8 = arith.constant 0 : index
    %c0_9 = arith.constant 0 : index
    %c0_10 = arith.constant 0 : index
    %11 = vector.load %arg9[%c0_8, %c0_9, %c0_10] : memref<1x128x128xf32, #tpu.memory_space<vmem>>, vector<1x128x128xf32>
    %12 = vector.shape_cast %11 : vector<1x128x128xf32> to vector<128x128xf32>
    %cst_11 = arith.constant dense<0.000000e+00> : vector<32x128xf32>
    %13 = tpu.matmul %3, %12, %cst_11 {dimension_numbers = #tpu.dot_dimension_numbers<[1], [0], [0], [1], [0, 0, 1, 1], [], []>} : vector<32x128xf32>, vector<128x128xf32>, vector<32x128xf32> -> vector<32x128xf32>
    %c0_12 = arith.constant 0 : index
    %c0_13 = arith.constant 0 : index
    %c0_14 = arith.constant 0 : index
    %14 = vector.load %arg10[%c0_12, %c0_13, %c0_14] : memref<1x1x128xf32, #tpu.memory_space<vmem>>, vector<1x1x128xf32>
    %15 = vector.shape_cast %14 : vector<1x1x128xf32> to vector<1x128xf32>
    %16 = vector.broadcast %15 : vector<1x128xf32> to vector<32x128xf32>
    %17 = arith.addf %13, %16 : vector<32x128xf32>
    %c0_15 = arith.constant 0 : index
    %c0_16 = arith.constant 0 : index
    %c0_17 = arith.constant 0 : index
    %18 = vector.load %arg11[%c0_15, %c0_16, %c0_17] : memref<1x128x128xf32, #tpu.memory_space<vmem>>, vector<1x128x128xf32>
    %19 = vector.shape_cast %18 : vector<1x128x128xf32> to vector<128x128xf32>
    %cst_18 = arith.constant dense<0.000000e+00> : vector<32x128xf32>
    %20 = tpu.matmul %3, %19, %cst_18 {dimension_numbers = #tpu.dot_dimension_numbers<[1], [0], [0], [1], [0, 0, 1, 1], [], []>} : vector<32x128xf32>, vector<128x128xf32>, vector<32x128xf32> -> vector<32x128xf32>
    %c0_19 = arith.constant 0 : index
    %c0_20 = arith.constant 0 : index
    %c0_21 = arith.constant 0 : index
    %21 = vector.load %arg12[%c0_19, %c0_20, %c0_21] : memref<1x1x128xf32, #tpu.memory_space<vmem>>, vector<1x1x128xf32>
    %22 = vector.shape_cast %21 : vector<1x1x128xf32> to vector<1x128xf32>
    %23 = vector.broadcast %22 : vector<1x128xf32> to vector<32x128xf32>
    %24 = arith.addf %20, %23 : vector<32x128xf32>
    %25 = vector.shape_cast %10 : vector<32x128xf32> to vector<4x8x4x32xf32>
    %26 = tpu.transpose %25, [0, 2, 1, 3] : vector<4x8x4x32xf32> -> vector<4x4x8x32xf32>
    %27 = vector.shape_cast %26 : vector<4x4x8x32xf32> to vector<16x8x32xf32>
    %28 = vector.shape_cast %17 : vector<32x128xf32> to vector<4x8x4x32xf32>
    %29 = tpu.transpose %28, [0, 2, 1, 3] : vector<4x8x4x32xf32> -> vector<4x4x8x32xf32>
    %30 = vector.shape_cast %29 : vector<4x4x8x32xf32> to vector<16x8x32xf32>
    %31 = vector.shape_cast %24 : vector<32x128xf32> to vector<4x8x4x32xf32>
    %32 = tpu.transpose %31, [0, 2, 1, 3] : vector<4x8x4x32xf32> -> vector<4x4x8x32xf32>
    %33 = vector.shape_cast %32 : vector<4x4x8x32xf32> to vector<16x8x32xf32>
    %c0_22 = arith.constant 0 : index
    %c0_23 = arith.constant 0 : index
    %c0_24 = arith.constant 0 : index
    %34 = vector.load %arg3[%c0_22, %c0_23, %c0_24] : memref<4x1x8xf32, #tpu.memory_space<vmem>>, vector<4x1x8xf32>
    %35 = vector.shape_cast %34 : vector<4x1x8xf32> to vector<4x1x1x8xf32>
    %36 = vector.shape_cast %35 : vector<4x1x1x8xf32> to vector<4x1x1x8xf32>
    %37 = vector.broadcast %36 : vector<4x1x1x8xf32> to vector<4x4x1x8xf32>
    %38 = vector.shape_cast %37 : vector<4x4x1x8xf32> to vector<16x1x8xf32>
    "tpu.trace_start"() <{level = 10 : i32, message = "gqd,gkd->gqk"}> : () -> ()
    %cst_25 = arith.constant dense<0.000000e+00> : vector<16x8x8xf32>
    %39 = tpu.matmul %27, %30, %cst_25 {dimension_numbers = #tpu.dot_dimension_numbers<[2], [2], [1], [1], [0, 0, 0, 1, 1, 1], [0], [0]>} : vector<16x8x32xf32>, vector<16x8x32xf32>, vector<16x8x8xf32> -> vector<16x8x8xf32>
    "tpu.trace_stop"() : () -> ()
    %40 = vector.broadcast %38 : vector<16x1x8xf32> to vector<16x8x8xf32>
    %41 = arith.addf %39, %40 : vector<16x8x8xf32>
    %cst_26 = arith.constant dense<0xFF800000> : vector<16x8xf32>
    %42 = vector.multi_reduction <maximumf>, %41, %cst_26 [2] : vector<16x8x8xf32> to vector<16x8xf32>
    %43 = vector.shape_cast %42 : vector<16x8xf32> to vector<16x8x1xf32>
    %44 = vector.broadcast %43 : vector<16x8x1xf32> to vector<16x8x8xf32>
    %45 = arith.subf %41, %44 : vector<16x8x8xf32>
    %46 = math.exp %45 : vector<16x8x8xf32>
    %cst_27 = arith.constant dense<0.000000e+00> : vector<16x8xf32>
    %47 = vector.multi_reduction <add>, %46, %cst_27 [2] : vector<16x8x8xf32> to vector<16x8xf32>
    %48 = vector.shape_cast %47 : vector<16x8xf32> to vector<16x8x1xf32>
    %49 = tpu.reciprocal %48 : vector<16x8x1xf32> -> vector<16x8x1xf32>
    "tpu.trace_start"() <{level = 10 : i32, message = "gqk,gkd->gqd"}> : () -> ()
    %cst_28 = arith.constant dense<0.000000e+00> : vector<16x8x32xf32>
    %50 = tpu.matmul %46, %33, %cst_28 {dimension_numbers = #tpu.dot_dimension_numbers<[2], [1], [1], [2], [0, 0, 0, 1, 1, 2], [0], [0]>} : vector<16x8x8xf32>, vector<16x8x32xf32>, vector<16x8x32xf32> -> vector<16x8x32xf32>
    "tpu.trace_stop"() : () -> ()
    %51 = vector.broadcast %49 : vector<16x8x1xf32> to vector<16x8x32xf32>
    %52 = arith.mulf %50, %51 : vector<16x8x32xf32>
    %53 = vector.shape_cast %52 : vector<16x8x32xf32> to vector<4x4x8x32xf32>
    %54 = tpu.transpose %53, [0, 2, 1, 3] : vector<4x4x8x32xf32> -> vector<4x8x4x32xf32>
    %55 = vector.shape_cast %54 : vector<4x8x4x32xf32> to vector<32x128xf32>
    %c0_29 = arith.constant 0 : index
    %c0_30 = arith.constant 0 : index
    %c0_31 = arith.constant 0 : index
    %56 = vector.load %arg13[%c0_29, %c0_30, %c0_31] : memref<1x128x128xf32, #tpu.memory_space<vmem>>, vector<1x128x128xf32>
    %57 = vector.shape_cast %56 : vector<1x128x128xf32> to vector<128x128xf32>
    %cst_32 = arith.constant dense<0.000000e+00> : vector<32x128xf32>
    %58 = tpu.matmul %55, %57, %cst_32 {dimension_numbers = #tpu.dot_dimension_numbers<[1], [0], [0], [1], [0, 0, 1, 1], [], []>} : vector<32x128xf32>, vector<128x128xf32>, vector<32x128xf32> -> vector<32x128xf32>
    %c0_33 = arith.constant 0 : index
    %c0_34 = arith.constant 0 : index
    %c0_35 = arith.constant 0 : index
    %59 = vector.load %arg14[%c0_33, %c0_34, %c0_35] : memref<1x1x128xf32, #tpu.memory_space<vmem>>, vector<1x1x128xf32>
    %60 = vector.shape_cast %59 : vector<1x1x128xf32> to vector<1x128xf32>
    %61 = vector.broadcast %60 : vector<1x128xf32> to vector<32x128xf32>
    %62 = arith.addf %58, %61 : vector<32x128xf32>
    %63 = arith.addf %62, %3 : vector<32x128xf32>
    %c0_36 = arith.constant 0 : index
    %c0_37 = arith.constant 0 : index
    %c0_38 = arith.constant 0 : index
    %64 = vector.load %arg15[%c0_36, %c0_37, %c0_38] : memref<1x1x128xf32, #tpu.memory_space<vmem>>, vector<1x1x128xf32>
    %65 = vector.shape_cast %64 : vector<1x1x128xf32> to vector<1x128xf32>
    %c0_39 = arith.constant 0 : index
    %c0_40 = arith.constant 0 : index
    %c0_41 = arith.constant 0 : index
    %66 = vector.load %arg16[%c0_39, %c0_40, %c0_41] : memref<1x1x128xf32, #tpu.memory_space<vmem>>, vector<1x1x128xf32>
    %67 = vector.shape_cast %66 : vector<1x1x128xf32> to vector<1x128xf32>
    %cst_42 = arith.constant dense<0.000000e+00> : vector<32xf32>
    %68 = vector.multi_reduction <add>, %63, %cst_42 [1] : vector<32x128xf32> to vector<32xf32>
    %69 = vector.shape_cast %68 : vector<32xf32> to vector<32x1xf32>
    %cst_43 = arith.constant 1.280000e+02 : f32
    %70 = vector.broadcast %cst_43 : f32 to vector<32x1xf32>
    %71 = arith.divf %69, %70 : vector<32x1xf32>
    %72 = vector.broadcast %71 : vector<32x1xf32> to vector<32x128xf32>
    %73 = arith.subf %63, %72 : vector<32x128xf32>
    %74 = arith.mulf %73, %73 : vector<32x128xf32>
    %cst_44 = arith.constant dense<0.000000e+00> : vector<32xf32>
    %75 = vector.multi_reduction <add>, %74, %cst_44 [1] : vector<32x128xf32> to vector<32xf32>
    %76 = vector.shape_cast %75 : vector<32xf32> to vector<32x1xf32>
    %cst_45 = arith.constant 1.280000e+02 : f32
    %77 = vector.broadcast %cst_45 : f32 to vector<32x1xf32>
    %78 = arith.divf %76, %77 : vector<32x1xf32>
    %79 = vector.broadcast %71 : vector<32x1xf32> to vector<32x128xf32>
    %80 = arith.subf %63, %79 : vector<32x128xf32>
    %cst_46 = arith.constant 9.99999997E-7 : f32
    %81 = vector.broadcast %cst_46 : f32 to vector<32x1xf32>
    %82 = arith.addf %78, %81 : vector<32x1xf32>
    %83 = math.rsqrt %82 : vector<32x1xf32>
    %84 = vector.broadcast %83 : vector<32x1xf32> to vector<32x128xf32>
    %85 = arith.mulf %80, %84 : vector<32x128xf32>
    %86 = vector.broadcast %65 : vector<1x128xf32> to vector<32x128xf32>
    %87 = arith.mulf %85, %86 : vector<32x128xf32>
    %88 = vector.broadcast %67 : vector<1x128xf32> to vector<32x128xf32>
    %89 = arith.addf %87, %88 : vector<32x128xf32>
    %c0_47 = arith.constant 0 : index
    %c0_48 = arith.constant 0 : index
    %c0_49 = arith.constant 0 : index
    %90 = vector.load %arg17[%c0_47, %c0_48, %c0_49] : memref<1x128x256xf32, #tpu.memory_space<vmem>>, vector<1x128x256xf32>
    %91 = vector.shape_cast %90 : vector<1x128x256xf32> to vector<128x256xf32>
    %cst_50 = arith.constant dense<0.000000e+00> : vector<32x256xf32>
    %92 = tpu.matmul %89, %91, %cst_50 {dimension_numbers = #tpu.dot_dimension_numbers<[1], [0], [0], [1], [0, 0, 1, 1], [], []>} : vector<32x128xf32>, vector<128x256xf32>, vector<32x256xf32> -> vector<32x256xf32>
    %c0_51 = arith.constant 0 : index
    %c0_52 = arith.constant 0 : index
    %c0_53 = arith.constant 0 : index
    %93 = vector.load %arg18[%c0_51, %c0_52, %c0_53] : memref<1x1x256xf32, #tpu.memory_space<vmem>>, vector<1x1x256xf32>
    %94 = vector.shape_cast %93 : vector<1x1x256xf32> to vector<1x256xf32>
    %95 = vector.broadcast %94 : vector<1x256xf32> to vector<32x256xf32>
    %96 = arith.addf %92, %95 : vector<32x256xf32>
    %cst_54 = arith.constant 0.000000e+00 : f32
    %97 = vector.broadcast %cst_54 : f32 to vector<32x256xf32>
    %98 = arith.maximumf %96, %97 : vector<32x256xf32>
    %c0_55 = arith.constant 0 : index
    %c0_56 = arith.constant 0 : index
    %c0_57 = arith.constant 0 : index
    %99 = vector.load %arg19[%c0_55, %c0_56, %c0_57] : memref<1x256x128xf32, #tpu.memory_space<vmem>>, vector<1x256x128xf32>
    %100 = vector.shape_cast %99 : vector<1x256x128xf32> to vector<256x128xf32>
    %cst_58 = arith.constant dense<0.000000e+00> : vector<32x128xf32>
    %101 = tpu.matmul %98, %100, %cst_58 {dimension_numbers = #tpu.dot_dimension_numbers<[1], [0], [0], [1], [0, 0, 1, 1], [], []>} : vector<32x256xf32>, vector<256x128xf32>, vector<32x128xf32> -> vector<32x128xf32>
    %c0_59 = arith.constant 0 : index
    %c0_60 = arith.constant 0 : index
    %c0_61 = arith.constant 0 : index
    %102 = vector.load %arg20[%c0_59, %c0_60, %c0_61] : memref<1x1x128xf32, #tpu.memory_space<vmem>>, vector<1x1x128xf32>
    %103 = vector.shape_cast %102 : vector<1x1x128xf32> to vector<1x128xf32>
    %104 = vector.broadcast %103 : vector<1x128xf32> to vector<32x128xf32>
    %105 = arith.addf %101, %104 : vector<32x128xf32>
    %106 = arith.addf %105, %89 : vector<32x128xf32>
    %c0_62 = arith.constant 0 : index
    %c0_63 = arith.constant 0 : index
    %c0_64 = arith.constant 0 : index
    %107 = vector.load %arg21[%c0_62, %c0_63, %c0_64] : memref<1x1x128xf32, #tpu.memory_space<vmem>>, vector<1x1x128xf32>
    %108 = vector.shape_cast %107 : vector<1x1x128xf32> to vector<1x128xf32>
    %c0_65 = arith.constant 0 : index
    %c0_66 = arith.constant 0 : index
    %c0_67 = arith.constant 0 : index
    %109 = vector.load %arg22[%c0_65, %c0_66, %c0_67] : memref<1x1x128xf32, #tpu.memory_space<vmem>>, vector<1x1x128xf32>
    %110 = vector.shape_cast %109 : vector<1x1x128xf32> to vector<1x128xf32>
    %cst_68 = arith.constant dense<0.000000e+00> : vector<32xf32>
    %111 = vector.multi_reduction <add>, %106, %cst_68 [1] : vector<32x128xf32> to vector<32xf32>
    %112 = vector.shape_cast %111 : vector<32xf32> to vector<32x1xf32>
    %cst_69 = arith.constant 1.280000e+02 : f32
    %113 = vector.broadcast %cst_69 : f32 to vector<32x1xf32>
    %114 = arith.divf %112, %113 : vector<32x1xf32>
    %115 = vector.broadcast %114 : vector<32x1xf32> to vector<32x128xf32>
    %116 = arith.subf %106, %115 : vector<32x128xf32>
    %117 = arith.mulf %116, %116 : vector<32x128xf32>
    %cst_70 = arith.constant dense<0.000000e+00> : vector<32xf32>
    %118 = vector.multi_reduction <add>, %117, %cst_70 [1] : vector<32x128xf32> to vector<32xf32>
    %119 = vector.shape_cast %118 : vector<32xf32> to vector<32x1xf32>
    %cst_71 = arith.constant 1.280000e+02 : f32
    %120 = vector.broadcast %cst_71 : f32 to vector<32x1xf32>
    %121 = arith.divf %119, %120 : vector<32x1xf32>
    %122 = vector.broadcast %114 : vector<32x1xf32> to vector<32x128xf32>
    %123 = arith.subf %106, %122 : vector<32x128xf32>
    %cst_72 = arith.constant 9.99999997E-7 : f32
    %124 = vector.broadcast %cst_72 : f32 to vector<32x1xf32>
    %125 = arith.addf %121, %124 : vector<32x1xf32>
    %126 = math.rsqrt %125 : vector<32x1xf32>
    %127 = vector.broadcast %126 : vector<32x1xf32> to vector<32x128xf32>
    %128 = arith.mulf %123, %127 : vector<32x128xf32>
    %129 = vector.broadcast %108 : vector<1x128xf32> to vector<32x128xf32>
    %130 = arith.mulf %128, %129 : vector<32x128xf32>
    %131 = vector.broadcast %110 : vector<1x128xf32> to vector<32x128xf32>
    %132 = arith.addf %130, %131 : vector<32x128xf32>
    %c0_73 = arith.constant 0 : index
    %c0_74 = arith.constant 0 : index
    %133 = vector.load %arg24[%c0_73, %c0_74] : memref<32x128xf32, #tpu.memory_space<vmem>>, vector<32x128xf32>
    tpu.vector_store %arg24[%c0_73, %c0_74], %132 {strides = array<i32>} : memref<32x128xf32, #tpu.memory_space<vmem>>, vector<32x128xf32>,
    %c1_i32 = arith.constant 1 : i32
    %134 = arith.cmpi eq, %arg1, %c1_i32 : i32
    %135 = arith.extui %134 : i1 to i32
    %c0_i32_75 = arith.constant 0 : i32
    %136 = arith.cmpi ne, %135, %c0_i32_75 : i32
    scf.if %136 {
      %c0_76 = arith.constant 0 : index
      %c0_77 = arith.constant 0 : index
      %137 = vector.load %arg24[%c0_76, %c0_77] : memref<32x128xf32, #tpu.memory_space<vmem>>, vector<32x128xf32>
      %138 = vector.shape_cast %137 : vector<32x128xf32> to vector<4x8x128xf32>
      %c0_78 = arith.constant 0 : index
      %c0_79 = arith.constant 0 : index
      %c0_80 = arith.constant 0 : index
      %139 = vector.load %arg23[%c0_78, %c0_79, %c0_80] : memref<4x8x128xf32, #tpu.memory_space<vmem>>, vector<4x8x128xf32>
      tpu.vector_store %arg23[%c0_78, %c0_79, %c0_80], %138 {strides = array<i32>} : memref<4x8x128xf32, #tpu.memory_space<vmem>>, vector<4x8x128xf32>,
    } else {
    }
    return
  }
  func.func @transform_0(%arg0: i32, %arg1: i32) -> (i32, i32, i32) {
    %c0_i32 = arith.constant 0 : i32
    %c0_i32_0 = arith.constant 0 : i32
    %c0_i32_1 = arith.constant 0 : i32
    return %arg0, %c0_i32, %c0_i32_0 : i32, i32, i32
  }
  func.func @transform_1(%arg0: i32, %arg1: i32) -> (i32, i32, i32) {
    %c0_i32 = arith.constant 0 : i32
    %c0_i32_0 = arith.constant 0 : i32
    %c0_i32_1 = arith.constant 0 : i32
    return %arg0, %c0_i32, %c0_i32_0 : i32, i32, i32
  }
  func.func @transform_2(%arg0: i32, %arg1: i32) -> (i32, i32) {
    %c0_i32 = arith.constant 0 : i32
    %c0_i32_0 = arith.constant 0 : i32
    %c0_i32_1 = arith.constant 0 : i32
    return %c0_i32, %c0_i32_0 : i32, i32
  }
  func.func @transform_3(%arg0: i32, %arg1: i32) -> (i32, i32) {
    %c0_i32 = arith.constant 0 : i32
    %c0_i32_0 = arith.constant 0 : i32
    %c0_i32_1 = arith.constant 0 : i32
    return %c0_i32, %c0_i32_0 : i32, i32
  }
  func.func @transform_4(%arg0: i32, %arg1: i32) -> (i32, i32) {
    %c0_i32 = arith.constant 0 : i32
    %c0_i32_0 = arith.constant 0 : i32
    %c0_i32_1 = arith.constant 0 : i32
    return %c0_i32, %c0_i32_0 : i32, i32
  }
  func.func @transform_5(%arg0: i32, %arg1: i32) -> (i32, i32, i32) {
    %c0_i32 = arith.constant 0 : i32
    %c0_i32_0 = arith.constant 0 : i32
    %c0_i32_1 = arith.constant 0 : i32
    return %arg1, %c0_i32, %c0_i32_0 : i32, i32, i32
  }
  func.func @transform_6(%arg0: i32, %arg1: i32) -> (i32, i32, i32) {
    %c0_i32 = arith.constant 0 : i32
    %c0_i32_0 = arith.constant 0 : i32
    %c0_i32_1 = arith.constant 0 : i32
    return %arg1, %c0_i32, %c0_i32_0 : i32, i32, i32
  }
  func.func @transform_7(%arg0: i32, %arg1: i32) -> (i32, i32, i32) {
    %c0_i32 = arith.constant 0 : i32
    %c0_i32_0 = arith.constant 0 : i32
    %c0_i32_1 = arith.constant 0 : i32
    return %arg1, %c0_i32, %c0_i32_0 : i32, i32, i32
  }
  func.func @transform_8(%arg0: i32, %arg1: i32) -> (i32, i32, i32) {
    %c0_i32 = arith.constant 0 : i32
    %c0_i32_0 = arith.constant 0 : i32
    %c0_i32_1 = arith.constant 0 : i32
    return %arg1, %c0_i32, %c0_i32_0 : i32, i32, i32
  }
  func.func @transform_9(%arg0: i32, %arg1: i32) -> (i32, i32, i32) {
    %c0_i32 = arith.constant 0 : i32
    %c0_i32_0 = arith.constant 0 : i32
    %c0_i32_1 = arith.constant 0 : i32
    return %arg1, %c0_i32, %c0_i32_0 : i32, i32, i32
  }
  func.func @transform_10(%arg0: i32, %arg1: i32) -> (i32, i32, i32) {
    %c0_i32 = arith.constant 0 : i32
    %c0_i32_0 = arith.constant 0 : i32
    %c0_i32_1 = arith.constant 0 : i32
    return %arg1, %c0_i32, %c0_i32_0 : i32, i32, i32
  }
  func.func @transform_11(%arg0: i32, %arg1: i32) -> (i32, i32, i32) {
    %c0_i32 = arith.constant 0 : i32
    %c0_i32_0 = arith.constant 0 : i32
    %c0_i32_1 = arith.constant 0 : i32
    return %arg1, %c0_i32, %c0_i32_0 : i32, i32, i32
  }
  func.func @transform_12(%arg0: i32, %arg1: i32) -> (i32, i32, i32) {
    %c0_i32 = arith.constant 0 : i32
    %c0_i32_0 = arith.constant 0 : i32
    %c0_i32_1 = arith.constant 0 : i32
    return %arg1, %c0_i32, %c0_i32_0 : i32, i32, i32
  }
  func.func @transform_13(%arg0: i32, %arg1: i32) -> (i32, i32, i32) {
    %c0_i32 = arith.constant 0 : i32
    %c0_i32_0 = arith.constant 0 : i32
    %c0_i32_1 = arith.constant 0 : i32
    return %arg1, %c0_i32, %c0_i32_0 : i32, i32, i32
  }
  func.func @transform_14(%arg0: i32, %arg1: i32) -> (i32, i32, i32) {
    %c0_i32 = arith.constant 0 : i32
    %c0_i32_0 = arith.constant 0 : i32
    %c0_i32_1 = arith.constant 0 : i32
    return %arg1, %c0_i32, %c0_i32_0 : i32, i32, i32
  }
  func.func @transform_15(%arg0: i32, %arg1: i32) -> (i32, i32, i32) {
    %c0_i32 = arith.constant 0 : i32
    %c0_i32_0 = arith.constant 0 : i32
    %c0_i32_1 = arith.constant 0 : i32
    return %arg1, %c0_i32, %c0_i32_0 : i32, i32, i32
  }
  func.func @transform_16(%arg0: i32, %arg1: i32) -> (i32, i32, i32) {
    %c0_i32 = arith.constant 0 : i32
    %c0_i32_0 = arith.constant 0 : i32
    %c0_i32_1 = arith.constant 0 : i32
    return %arg1, %c0_i32, %c0_i32_0 : i32, i32, i32
  }
  func.func @transform_17(%arg0: i32, %arg1: i32) -> (i32, i32, i32) {
    %c0_i32 = arith.constant 0 : i32
    %c0_i32_0 = arith.constant 0 : i32
    %c0_i32_1 = arith.constant 0 : i32
    return %arg1, %c0_i32, %c0_i32_0 : i32, i32, i32
  }
  func.func @transform_18(%arg0: i32, %arg1: i32) -> (i32, i32, i32) {
    %c0_i32 = arith.constant 0 : i32
    %c0_i32_0 = arith.constant 0 : i32
    %c0_i32_1 = arith.constant 0 : i32
    return %arg1, %c0_i32, %c0_i32_0 : i32, i32, i32
  }
  func.func @transform_19(%arg0: i32, %arg1: i32) -> (i32, i32, i32) {
    %c0_i32 = arith.constant 0 : i32
    %c0_i32_0 = arith.constant 0 : i32
    %c0_i32_1 = arith.constant 0 : i32
    return %arg1, %c0_i32, %c0_i32_0 : i32, i32, i32
  }
  func.func @transform_20(%arg0: i32, %arg1: i32) -> (i32, i32, i32) {
    %c0_i32 = arith.constant 0 : i32
    %c0_i32_0 = arith.constant 0 : i32
    %c0_i32_1 = arith.constant 0 : i32
    return %arg1, %c0_i32, %c0_i32_0 : i32, i32, i32
  }
  func.func @transform_21(%arg0: i32, %arg1: i32) -> (i32, i32, i32) {
    %c0_i32 = arith.constant 0 : i32
    %c0_i32_0 = arith.constant 0 : i32
    %c0_i32_1 = arith.constant 0 : i32
    return %arg0, %c0_i32, %c0_i32_0 : i32, i32, i32
  }
}

</mosaic_0001>

<bundles_post_ra>
// kernel: tpu_custom_call.1
= control target key start
LH: loop header
LB: loop body
LE: loop exit
PB: predicated region body
PF: predicated region fallthrough
CT: control target
= control target key end

     0   :  { %s11066_s0 = inlined_call_operand.hbm [shape: f32[8,8,128], index: 0, kind: input, shape index: {}]   ;;  %s11067_s1 = inlined_call_operand.hbm [shape: f32[8,1,8], index: 1, kind: input, shape index: {}]   ;;  %s11068_s2 = inlined_call_operand.hbm [shape: f32[8,128], index: 2, kind: input, shape index: {}]   ;;  %s11069_s3 = inlined_call_operand.hbm [shape: f32[1,128], index: 3, kind: input, shape index: {}]   ;;  %s11070_s4 = inlined_call_operand.hbm [shape: f32[1,128], index: 4, kind: input, shape index: {}]   ;;  %s11071_s5 = inlined_call_operand.hbm [shape: f32[2,128,128], index: 5, kind: input, shape index: {}]   ;;  %s11072_s6 = inlined_call_operand.vmem [shape: f32[2,1,128], index: 6, kind: input, shape index: {}]   ;;  %s11073_s7 = inlined_call_operand.hbm [shape: f32[2,128,128], index: 7, kind: input, shape index: {}]   ;;  %s11074_s8 = inlined_call_operand.vmem [shape: f32[2,1,128], index: 8, kind: input, shape index: {}]   ;;  %s11075_s9 = inlined_call_operand.hbm [shape: f32[2,128,128], index: 9, kind: input, shape index: {}]   ;;  %s11076_s10 = inlined_call_operand.vmem [shape: f32[2,1,128], index: 10, kind: input, shape index: {}]   ;;  %s11077_s11 = inlined_call_operand.hbm [shape: f32[2,128,128], index: 11, kind: input, shape index: {}]   ;;  %s11078_s12 = inlined_call_operand.vmem [shape: f32[2,1,128], index: 12, kind: input, shape index: {}]   ;;  %s11079_s13 = inlined_call_operand.vmem [shape: f32[2,1,128], index: 13, kind: input, shape index: {}]   ;;  %s11080_s14 = inlined_call_operand.vmem [shape: f32[2,1,128], index: 14, kind: input, shape index: {}]   ;;  %s11081_s15 = inlined_call_operand.hbm [shape: f32[2,128,256], index: 15, kind: input, shape index: {}]   ;;  %s11082_s16 = inlined_call_operand.vmem [shape: f32[2,1,256], index: 16, kind: input, shape index: {}]   ;;  %s11083_s17 = inlined_call_operand.hbm [shape: f32[2,256,128], index: 17, kind: input, shape index: {}]   ;;  %s11084_s18 = inlined_call_operand.vmem [shape: f32[2,1,128], index: 18, kind: input, shape index: {}]   ;;  %s11085_s19 = inlined_call_operand.vmem [shape: f32[2,1,128], index: 19, kind: input, shape index: {}]   ;;  %s11086_s20 = inlined_call_operand.vmem [shape: f32[2,1,128], index: 20, kind: input, shape index: {}]   ;;  %s11087_s21 = inlined_call_operand.hbm [shape: f32[8,8,128], index: 21, kind: output, shape index: {}]  }
   0x1   :  { %11157 = sst [smem:[#allocation55_spill]] %s11066_s0 }
   0x2   :  { %11158 = sst [smem:[#allocation56_spill]] %s11067_s1 }
   0x3   :  { %11159 = sst [smem:[#allocation57_spill]] %s11068_s2 }
   0x4   :  { %11160 = sst [smem:[#allocation58_spill]] %s11069_s3 }
   0x5   :  { %11161 = sst [smem:[#allocation59_spill]] %s11070_s4 }
   0x6   :  { %11162 = sst [smem:[#allocation60_spill]] %s11071_s5 }
   0x7   :  { %11163 = sst [smem:[#allocation61_spill]] %s11072_s6 }
   0x8   :  { %11164 = sst [smem:[#allocation62_spill]] %s11073_s7 }
   0x9   :  { %11165 = sst [smem:[#allocation63_spill]] %s11074_s8 }
   0xa   :  { %11166 = sst [smem:[#allocation64_spill]] %s11075_s9 }
   0xb   :  { %11167 = sst [smem:[#allocation65_spill]] %s11076_s10 }
   0xc   :  { %11168 = sst [smem:[#allocation66_spill]] %s11077_s11 }
   0xd   :  { %11169 = sst [smem:[#allocation67_spill]] %s11078_s12 }
   0xe   :  { %11170 = sst [smem:[#allocation68_spill]] %s11079_s13 }
   0xf   :  { %11171 = sst [smem:[#allocation69_spill]] %s11080_s14 }
  0x10   :  { %11172 = sst [smem:[#allocation70_spill]] %s11081_s15 }
  0x11   :  { %11173 = sst [smem:[#allocation71_spill]] %s11082_s16 }
  0x12   :  { %11174 = sst [smem:[#allocation72_spill]] %s11083_s17 }
  0x13   :  { %11175 = sst [smem:[#allocation73_spill]] %s11084_s18 }
  0x14   :  { %11176 = sst [smem:[#allocation74_spill]] %s11085_s19 }
  0x15   :  { %11177 = sst [smem:[#allocation75_spill]] %s11086_s20 }
  0x16   :  { %11178 = sst [smem:[#allocation76_spill]] %s11087_s21 }
  0x17   :  { %26 = vsyncpa [#allocation4], 0 }
  0x18   :  { %28 = vsyncpa [#allocation4 + $0x1], 0 }
  0x19   :  { %29 = vsyncpa [#allocation7], 0 }
  0x1a   :  { %31 = vsyncpa [#allocation7 + $0x1], 0 }
  0x1b   :  { %32 = vsyncpa [#allocation10], 0 }
  0x1c   :  { %33 = vsyncpa [#allocation13], 0 }
  0x1d   :  { %35 = vsyncpa [#allocation13 + $0x1], 0 }
  0x1e   :  { %36 = vsyncpa [#allocation16], 0 }
  0x1f   :  { %38 = vsyncpa [#allocation16 + $0x1], 0 }
  0x20   :  { %39 = vsyncpa [#allocation19], 0 }
  0x21   :  { %41 = vsyncpa [#allocation19 + $0x1], 0 }
  0x22   :  { %42 = vsyncpa [#allocation5], 0 }
  0x23   :  { %44 = vsyncpa [#allocation5 + $0x1], 0  ;;  %s9178_s2 = smov 0   ;;  %s9180_s25 = smov 0  }
  0x24   :  { %s9182_s26 = smov 0   ;;  %s9184_s27 = smov 0  }
  0x25   :  { %s9186_s3 = smov 0   ;;  %s9188_s28 = smov 0  }
  0x26   :  { %s9190_s29 = smov 0   ;;  %s9192_s0 = smov 0  }
  0x27   :  { %s9194_s4 = smov 0   ;;  %s9196_s30 = smov 0  }
  0x28   :  { %s9198_s5 = smov 0  }
  0x29 LB: > { %11179 = sst [smem:[#allocation30_spill]] %s9004_s25  ;;  %s9232_s22 = sadd.s32 4294967295, %s9040_s5   ;;  %s9040_s5 = sphi %s9198_s5, %s50_s5   ;;  %s9036_s30 = sphi %s9196_s30, %s11305_s30   ;;  %s9032_s4 = sphi %s9194_s4, %s11304_s4   ;;  %s9028_s0 = sphi %s9192_s0, %s11303_s0   ;;  %s9024_s29 = sphi %s9190_s29, %s11302_s29   ;;  %s9020_s28 = sphi %s9188_s28, %s11301_s28   ;;  %s9016_s3 = sphi %s9186_s3, %s11300_s3   ;;  %s9012_s27 = sphi %s9184_s27, %s11299_s27   ;;  %s9008_s26 = sphi %s9182_s26, %s11298_s26   ;;  %s9004_s25 = sphi %s9180_s25, %s11297_s25   ;;  %s9000_s2 = sphi %s9178_s2, %s11296_s2  }
  0x2a   : > { %11180 = sst [smem:[#allocation31_spill]] %s9008_s26  ;;  %s7403_s23 = sadd.s32 4294967294, %s9040_s5  }
  0x2b   : > { %11181 = sst [smem:[#allocation32_spill]] %s9012_s27  ;;  %p82_p0 = scmp.ne.s32.totalorder %s9016_s3, %s9012_s27 }
  0x2c   : > { %11182 = sst [smem:[#allocation33_spill]] %s9016_s3  ;;  %p11097_p1 = scmp.eq.s32.totalorder %s9232_s22, 0 }
  0x2d   : > { %11183 = sst [smem:[#allocation34_spill]] %s9020_s28  ;;  %p197_p2 = scmp.ne.s32.totalorder %s9004_s25, %s9000_s2 }
  0x2e   : > { %11184 = sst [smem:[#allocation35_spill]] %s9024_s29  ;;  %p9242_p4 = por %p11097_p1, %p82_p0 }
  0x2f   : > { %11185 = sst [smem:[#allocation36_spill]] %s9028_s0  ;;  %p617_p5 = scmp.eq.s32.totalorder %s7403_s23, 3 }
  0x30   : > { %11186 = sst [smem:[#allocation37_spill]] %s9032_s4  ;;  %p9248_p6 = por %p197_p2, %p11097_p1 }
  0x31   : > { %11187 = sst [smem:[#allocation38_spill]] %s9036_s30  ;;  %p7404_p7 = scmp.ge.s32.totalorder %s9040_s5, 1 }
  0x32   : > { %11188 = sst [smem:[#allocation39_spill]] %s9040_s5  ;;  %p9253_p8 = por %p617_p5, %p82_p0 }
  0x33   : > { %s11189_s1 = scalar_select %p9242_p4, 1, 0 }
  0x34   : > { %s11191_s24 = scalar_select %p9248_p6, 1, 0 }
  0x35   : > { %11190 = sst [smem:[#allocation40_spill]] %s11189_s1  ;;  %p624_p9 = scmp.lt.s32.totalorder %s9040_s5, 5 }
  0x36   : > { %11192 = sst [smem:[#allocation41_spill]] %s11191_s24  ;;  %s9042_s27 = smov [#allocation8]  }
  0x37   : > { %s11193_s21 = scalar_select %p9253_p8, 1, 0 }
  0x38   : > { %p9258_p10 = pnand %p7404_p7, %p624_p9  ;;  %s637_s0 = sshll.u32 %s9042_s27, 4  ;;  %s638_s0 = int_to_ptr.vmem [resolvable:$true] %s637_s0 }
  0x39   : > { %11194 = sst [smem:[#allocation42_spill]] %s11193_s21  ;;  %s9043_s23 = smov [#allocation9]  }
  0x3a   : > { %s11195_s2 = scalar_select %p9258_p10, 1, 0 }
  0x3b   : > { %p8296_p11 = pneg %p9258_p10  ;;  %s648_s20 = sshll.u32 %s9043_s23, 4  ;;  %s9270_s20 = int_to_ptr.vmem [resolvable:$true] %s648_s20 }
  0x3c   : > { %11196 = sst [smem:[#allocation43_spill]] %s11195_s2  ;;  %s11198_s18 = sld [smem:[#allocation57_spill]] }
  0x3d   : > { %p9266_p12 = pnand %p8296_p11, %p11097_p1 }
  0x3f   : > { %s11197_s19 = scalar_select %p9266_p12, 1, 0 }
  0x40   : > { %p9280_p0 = pneg %p9266_p12 }
  0x42   : > { %s8570_s14 = scalar_lea.hbm %s11198_s18, 128 }
  0x43   : > { %p8571_p13 = scmp.ne.s32.totalorder %s11198_s18, %s8570_s14  ;;  %p8577_p7 = scmp.lt.u32.totalorder %s8570_s14, %s11198_s18 }
  0x44   : > { %s11199_s27 = scalar_select %p9280_p0, 1, 0 }
  0x45   : > { %p8573_p2 = pnand %p9280_p0, %p8571_p13 }
  0x47   : > { %p8574_p5 = pneg %p8573_p2 }
  0x49   : > { %p8579_p9 = pnand %p8577_p7, %p8574_p5 }
  0x4b   : > { %8582 = shalt.err (!%p8579_p9)
}
  0x4c   : > { %s8583_s16 = scalar_lea.vmem %s638_s0, 128  ;;  %p8591_p8 = scmp.lt.s32.totalorder %s638_s0, %s638_s0 }
  0x4d   : > { %p8584_p11 = scmp.ne.s32.totalorder %s638_s0, %s8583_s16  ;;  %p8592_p6 = scmp.lt.s32.totalorder %s8583_s16, %s8583_s16 }
  0x4f   : > { %p8586_p1 = pnand %p8584_p11, %p9280_p0  ;;  %p8593_p4 = por %p8592_p6, %p8591_p8 }
  0x51   : > { %p8587_p3 = pneg %p8586_p1 }
  0x53   : > { %p8594_p10 = pnand %p8593_p4, %p8587_p3 }
  0x55   : > { %8597 = shalt.err (!%p8594_p10)
}
  0x56   : > { %8299 = dma.hbm_to_vmem [thread:$0]  (!%p9266_p12), %s11198_s18, 128, %s638_s0, [#allocation7]  }
  0x57   : > { %s11200_s21 = sld [smem:[#allocation58_spill]] }
  0x5d   : > { %s8598_s23 = scalar_lea.hbm %s11200_s21, 16 }
  0x5e   : > { %p8599_p1 = scmp.ne.s32.totalorder %s11200_s21, %s8598_s23  ;;  %p8605_p3 = scmp.lt.u32.totalorder %s8598_s23, %s11200_s21 }
  0x60   : > { %p8601_p13 = pnand %p8599_p1, %p9280_p0 }
  0x62   : > { %p8602_p6 = pneg %p8601_p13 }
  0x64   : > { %p8607_p4 = pnand %p8605_p3, %p8602_p6 }
  0x66   : > { %8610 = shalt.err (!%p8607_p4)
}
  0x67   : > { %s8611_s0 = scalar_lea.vmem %s9270_s20, 16  ;;  %s8618_s6 = scalar_lea.vmem %s9270_s20, 32 }
  0x68   : > { %p8612_p8 = scmp.ne.s32.totalorder %s9270_s20, %s8611_s0  ;;  %p8619_p5 = scmp.lt.s32.totalorder %s9270_s20, %s9270_s20 }
  0x69   : > { %p8620_p7 = scmp.lt.s32.totalorder %s8618_s6, %s8611_s0 }
  0x6a   : > { %p8614_p10 = pnand %p8612_p8, %p9280_p0 }
  0x6b   : > { %p8621_p9 = por %p8620_p7, %p8619_p5 }
  0x6c   : > { %p8615_p2 = pneg %p8614_p10 }
  0x6e   : > { %p8622_p11 = pnand %p8621_p9, %p8615_p2 }
  0x70   : > { %8625 = shalt.err (!%p8622_p11)
}
  0x71   : > { %8302 = dma.hbm_to_vmem [thread:$0]  (!%p9266_p12), %s11200_s21, 16, %s9270_s20, [#allocation10]  }
  0x72   : > { %s59_s12 = sadd.s32 1, %s9032_s4  ;;  %p11112_p1 = scmp.eq.s32.totalorder %s9040_s5, 0 }
  0x73   : > { %p9322_p13 = scmp.ge.s32.totalorder %s59_s12, 2  ;;  %s184_s10 = sadd.s32 1, %s9008_s26 }
  0x74   : > { %p191_p6 = scmp.ne.s32.totalorder %s9008_s26, %s9004_s25  ;;  %p11111_p3 = scmp.lt.s32.totalorder %s9040_s5, 4 }
  0x75   : > { %s11201_s13 = scalar_select %p9322_p13, 1, 0 }
  0x76   : > { %s11307_s12 = smov (%p9322_p13, %s59_s12), 0  ;;  %p193_p4 = por %p191_p6, %p11112_p1 }
  0x77   : > { %11202 = sst [smem:[#allocation44_spill]] %s11307_s12  ;;  %s181_s14 = ssub.s32 %s9032_s4, %s11307_s12 }
  0x78   : > { %p182_p8 = scmp.eq.s32.totalorder %s181_s14, 0  ;;  %s9339_s20 = sand.u32 1, %s9040_s5  }
  0x79   : > { %s11105_s23 = sand.u32 1, %s9008_s26   ;;  %s9350_s6 = sshll.u32 %s9032_s4, 11 }
  0x7a   : > { %s9343_s16 = scalar_select %p182_p8, %s9008_s26, %s184_s10  }
  0x7b   : > { %s9347_s0 = sshll.u32 %s11105_s23, 7  ;;  %11205 = sst [smem:[#allocation47_spill]] %s9350_s6 }
  0x7c   : > { %11203 = sst [smem:[#allocation45_spill]] %s9343_s16  ;;  %s716_s14 = scalar_lea.vmem [#allocation12], %s9347_s0 }
  0x7d   : > { %11204 = sst [smem:[#allocation46_spill]] %s9347_s0  ;;  %s11206_s18 = sld [smem:[#allocation60_spill]] }
  0x7e   : > { %s723_s12 = sshll.u32 %s716_s14, 4  ;;  %p9361_p10 = pnand %p11111_p3, %p193_p4  ;;  %s9365_s12 = int_to_ptr.vmem [resolvable:$true] %s723_s12 }
  0x80   : > { %s11207_s10 = scalar_select %p9361_p10, 1, 0 }
  0x81   : > { %p9372_p5 = pneg %p9361_p10 }
  0x82   : > { %11208 = sst [smem:[#allocation48_spill]] %s11207_s10 }
  0x83   : > { %s9356_s21 = scalar_lea.hbm %s11206_s18, %s9350_s6  ;;  %s8631_s24 = scalar_lea.hbm %s11206_s18, 4096 }
  0x84   : > { %s8626_s16 = scalar_lea.hbm %s9356_s21, 2048  ;;  %p8632_p11 = scmp.lt.u32.totalorder %s9356_s21, %s11206_s18 }
  0x85   : > { %p8627_p2 = scmp.ne.s32.totalorder %s9356_s21, %s8626_s16  ;;  %p8633_p6 = scmp.lt.u32.totalorder %s8631_s24, %s8626_s16 }
  0x86   : > { %s11209_s8 = scalar_select %p9372_p5, 1, 0 }
  0x87   : > { %p8629_p7 = pnand %p9372_p5, %p8627_p2  ;;  %p8634_p4 = por %p8633_p6, %p8632_p11 }
  0x88   : > { %11210 = sst [smem:[#allocation49_spill]] %s11209_s8  ;;  %p8635_p8 = scmp.lt.u32.totalorder %s8626_s16, %s9356_s21 }
  0x89   : > { %p8630_p9 = pneg %p8629_p7 }
  0x8a   : > { %p8636_p3 = por %p8635_p8, %p8634_p4 }
  0x8c   : > { %p8637_p1 = pnand %p8636_p3, %p8630_p9 }
  0x8e   : > { %8640 = shalt.err (!%p8637_p1)
}
  0x8f   : > { %s8641_s23 = scalar_lea.vmem %s9365_s12, 2048  ;;  %s9044_s29 = smov [#allocation12]  }
  0x90   : > { %p8642_p2 = scmp.ne.s32.totalorder %s9365_s12, %s8641_s23  ;;  %s8646_s14 = sshll.u32 %s9044_s29, 4  ;;  %s8647_s14 = int_to_ptr.vmem [resolvable:$false] %s8646_s14 }
  0x91   : > { %s8648_s25 = scalar_lea.vmem %s8647_s14, 4096  ;;  %p8649_p12 = scmp.lt.s32.totalorder %s9365_s12, %s8647_s14 }
  0x92   : > { %p8644_p7 = pnand %p8642_p2, %p9372_p5  ;;  %p8650_p0 = scmp.lt.s32.totalorder %s8648_s25, %s8641_s23 }
  0x94   : > { %p8645_p13 = pneg %p8644_p7  ;;  %p8651_p11 = por %p8650_p0, %p8649_p12 }
  0x96   : > { %p8652_p6 = pnand %p8651_p11, %p8645_p13 }
  0x98   : > { %8655 = shalt.err (!%p8652_p6)
}
  0x99   : > { %s11121_s1 = smov 128   ;;  %s11123_s24 = smov 8  }
  0x9a   : > { %s11211_s16 = scalar_lea.sflag [#allocation13], %s9339_s20  ;;  %s11212_s9 = sld [smem:[#allocation64_spill]] }
  0x9b   : > { %8315 = dma.hbm_to_vmem [thread:$0]  (!%p9361_p10), %s9356_s21, 2048, %s9365_s12, %s11211_s16, %s11121_s1, %s11121_s1, %s11123_s24  }
  0x9c   : > { %s770_s25 = scalar_lea.vmem [#allocation15], %s9347_s0  ;;  %s11120_s2 = scalar_lea.sflag [#allocation16], %s9339_s20 }
  0x9d   : > { %s777_s18 = sshll.u32 %s770_s25, 4  ;;  %s9407_s18 = int_to_ptr.vmem [resolvable:$true] %s777_s18 }
  0xa0   : > { %s9404_s14 = scalar_lea.hbm %s11212_s9, %s9350_s6  ;;  %s8661_s16 = scalar_lea.hbm %s11212_s9, 4096 }
  0xa1   : > { %s8656_s11 = scalar_lea.hbm %s9404_s14, 2048  ;;  %p8662_p13 = scmp.lt.u32.totalorder %s9404_s14, %s11212_s9 }
  0xa2   : > { %p8657_p12 = scmp.ne.s32.totalorder %s9404_s14, %s8656_s11  ;;  %p8663_p3 = scmp.lt.u32.totalorder %s8661_s16, %s8656_s11 }
  0xa3   : > { %p8665_p4 = scmp.lt.u32.totalorder %s8656_s11, %s9404_s14 }
  0xa4   : > { %p8659_p0 = pnand %p8657_p12, %p9372_p5  ;;  %p8664_p9 = por %p8663_p3, %p8662_p13 }
  0xa6   : > { %p8660_p1 = pneg %p8659_p0  ;;  %p8666_p8 = por %p8665_p4, %p8664_p9 }
  0xa8   : > { %p8667_p2 = pnand %p8666_p8, %p8660_p1 }
  0xaa   : > { %8670 = shalt.err (!%p8667_p2)
}
  0xab   : > { %s8671_s25 = scalar_lea.vmem %s9407_s18, 2048  ;;  %s9047_s21 = smov [#allocation15]  }
  0xac   : > { %p8672_p7 = scmp.ne.s32.totalorder %s9407_s18, %s8671_s25  ;;  %s8676_s12 = sshll.u32 %s9047_s21, 4  ;;  %s8677_s12 = int_to_ptr.vmem [resolvable:$false] %s8676_s12 }
  0xad   : > { %s8678_s23 = scalar_lea.vmem %s8677_s12, 4096  ;;  %p8679_p12 = scmp.lt.s32.totalorder %s9407_s18, %s8677_s12 }
  0xae   : > { %p8674_p11 = pnand %p8672_p7, %p9372_p5  ;;  %p8680_p0 = scmp.lt.s32.totalorder %s8678_s23, %s8671_s25 }
  0xb0   : > { %p8675_p6 = pneg %p8674_p11  ;;  %p8681_p13 = por %p8680_p0, %p8679_p12 }
  0xb2   : > { %p8682_p3 = pnand %p8681_p13, %p8675_p6 }
  0xb4   : > { %8685 = shalt.err (!%p8682_p3)
}
  0xb5   : > { %8321 = dma.hbm_to_vmem [thread:$0]  (!%p9361_p10), %s9404_s14, 2048, %s9407_s18, %s11120_s2, %s11121_s1, %s11121_s1, %s11123_s24  }
  0xb6   : > { %s11213_s11 = sand.u32 1, %s9008_s26   ;;  %s7555_s29 = sshll.u32 %s9032_s4, 12 }
  0xb7   : > { %s9438_s16 = sshll.u32 %s11213_s11, 8  ;;  %s11214_s15 = sld [smem:[#allocation70_spill]] }
  0xb8   : > { %s836_s23 = scalar_lea.vmem [#allocation18], %s9438_s16  ;;  %s11138_s18 = scalar_lea.sflag [#allocation19], %s9339_s20 }
  0xb9   : > { %s843_s9 = sshll.u32 %s836_s23, 4  ;;  %s9449_s9 = int_to_ptr.vmem [resolvable:$true] %s843_s9 }
  0xbd   : > { %s9446_s12 = scalar_lea.hbm %s11214_s15, %s7555_s29  ;;  %s8691_s25 = scalar_lea.hbm %s11214_s15, 8192 }
  0xbe   : > { %s8686_s14 = scalar_lea.hbm %s9446_s12, 4096  ;;  %p8692_p8 = scmp.lt.u32.totalorder %s9446_s12, %s11214_s15 }
  0xbf   : > { %p8687_p1 = scmp.ne.s32.totalorder %s9446_s12, %s8686_s14  ;;  %p8693_p2 = scmp.lt.u32.totalorder %s8691_s25, %s8686_s14 }
  0xc0   : > { %p8695_p11 = scmp.lt.u32.totalorder %s8686_s14, %s9446_s12 }
  0xc1   : > { %p8689_p9 = pnand %p8687_p1, %p9372_p5  ;;  %p8694_p7 = por %p8693_p2, %p8692_p8 }
  0xc3   : > { %p8690_p4 = pneg %p8689_p9  ;;  %p8696_p6 = por %p8695_p11, %p8694_p7 }
  0xc5   : > { %p8697_p12 = pnand %p8696_p6, %p8690_p4 }
  0xc7   : > { %8700 = shalt.err (!%p8697_p12)
}
  0xc8   : > { %s8701_s23 = scalar_lea.vmem %s9449_s9, 4096  ;;  %s9048_s2 = smov [#allocation18]  }
  0xc9   : > { %p8702_p0 = scmp.ne.s32.totalorder %s9449_s9, %s8701_s23  ;;  %s8706_s11 = sshll.u32 %s9048_s2, 4  ;;  %s8707_s11 = int_to_ptr.vmem [resolvable:$false] %s8706_s11 }
  0xca   : > { %s8708_s1 = scalar_lea.vmem %s8707_s11, 8192  ;;  %p8709_p1 = scmp.lt.s32.totalorder %s9449_s9, %s8707_s11 }
  0xcb   : > { %p8704_p13 = pnand %p8702_p0, %p9372_p5  ;;  %p8710_p9 = scmp.lt.s32.totalorder %s8708_s1, %s8701_s23 }
  0xcd   : > { %p8705_p3 = pneg %p8704_p13  ;;  %p8711_p8 = por %p8710_p9, %p8709_p1 }
  0xcf   : > { %p8712_p2 = pnand %p8711_p8, %p8705_p3 }
  0xd1   : > { %8715 = shalt.err (!%p8712_p2)
}
  0xd2   : > { %s9049_s14 = smov 256   ;;  %s11139_s25 = smov 16  }
  0xd3   : > { %8327 = dma.hbm_to_vmem [thread:$0]  (!%p9361_p10), %s9446_s12, 4096, %s9449_s9, %s11138_s18, %s9049_s14, %s9049_s14, %s11139_s25  }
  0xd4   : > { %s11215_s17 = sld [smem:[#allocation72_spill]]  ;;  %s864_s11 = scalar_lea.vmem [#allocation20], %s9438_s16 }
  0xd5   : > { %s871_s1 = sshll.u32 %s864_s11, 4  ;;  %s9051_s24 = smov [#allocation11]   ;;  %s9484_s1 = int_to_ptr.vmem [resolvable:$true] %s871_s1 }
  0xd6   : > { %s659_s15 = sshll.u32 %s9051_s24, 4  ;;  %s11216_s8 = sld [smem:[#allocation59_spill]]  ;;  %s660_s15 = int_to_ptr.vmem [resolvable:$true] %s659_s15 }
  0xd7   : > { %p11217_p7 = scmp.ne.s32.totalorder %s11199_s27, 0 }
  0xda   : > { %s9481_s23 = scalar_lea.hbm %s11215_s17, %s7555_s29 }
  0xdc   : > { %s8716_s10 = scalar_lea.hbm %s11216_s8, 16 }
  0xdd   : > { %p8717_p4 = scmp.ne.s32.totalorder %s11216_s8, %s8716_s10  ;;  %p8723_p12 = scmp.lt.u32.totalorder %s8716_s10, %s11216_s8 }
  0xdf   : > { %p8719_p11 = pnand %p8717_p4, %p11217_p7 }
  0xe1   : > { %p8720_p6 = pneg %p8719_p11 }
  0xe3   : > { %p8725_p0 = pnand %p8723_p12, %p8720_p6 }
  0xe5   : > { %8728 = shalt.err (!%p8725_p0)
}
  0xe6   : > { %s8729_s16 = scalar_lea.vmem %s660_s15, 16  ;;  %s8736_s7 = scalar_lea.vmem %s660_s15, 32 }
  0xe7   : > { %p8730_p13 = scmp.ne.s32.totalorder %s660_s15, %s8729_s16  ;;  %p8737_p9 = scmp.lt.s32.totalorder %s660_s15, %s660_s15 }
  0xe8   : > { %p8738_p8 = scmp.lt.s32.totalorder %s8736_s7, %s8729_s16 }
  0xe9   : > { %p8732_p3 = pnand %p8730_p13, %p11217_p7 }
  0xea   : > { %p8739_p2 = por %p8738_p8, %p8737_p9 }
  0xeb   : > { %p8733_p1 = pneg %p8732_p3 }
  0xed   : > { %p8740_p10 = pnand %p8739_p2, %p8733_p1 }
  0xef   : > { %8743 = shalt.err (!%p8740_p10)
}
  0xf0   : > { %p11218_p4 = scmp.ne.s32.totalorder %s11197_s19, 0  ;;  %s69_s27 = sadd.s32 1, %s9020_s28 }
  0xf1   : > { %s62_s6 = sadd.s32 1, %s9036_s30  ;;  %p76_p10 = scmp.ne.s32.totalorder %s9020_s28, %s9016_s3 }
  0xf2   : > { %8305 = dma.hbm_to_vmem [thread:$0]  (!%p11218_p4), %s11216_s8, 16, %s660_s15, [#allocation10]  }
  0xf3   : > { %p11219_p7 = scmp.ne.s32.totalorder %s11201_s13, 0  ;;  %p11220_p11 = scmp.eq.s32.totalorder %s9040_s5, 0 }
  0xf4   : > { %p11222_p12 = scmp.eq.s32.totalorder %s9232_s22, 3  ;;  %s9524_s15 = sand.u32 1, %s9020_s28  }
  0xf5   : > { %s11309_s6 = smov (!%p11219_p7, %s62_s6), %s9036_s30  ;;  %p9513_p6 = por %p11220_p11, %p76_p10 }
  0xf6   : > { %p9519_p0 = por %p11222_p12, %p76_p10  ;;  %p64_p13 = scmp.ge.s32.totalorder %s11309_s6, 2 }
  0xf7   : > { %s7409_s24 = sshll.u32 %s9524_s15, 5  ;;  %s7549_s13 = sshll.u32 %s9036_s30, 9 }
  0xf8   : > { %s11223_s10 = scalar_select %p9519_p0, 1, 0 }
  0xf9   : > { %s11311_s6 = smov (%p64_p13, %s11309_s6), 0  ;;  %s11226_s2 = sld [smem:[#allocation55_spill]] }
  0xfa   : > { %11224 = sst [smem:[#allocation50_spill]] %s11223_s10  ;;  %s66_s12 = ssub.s32 %s9036_s30, %s11311_s6 }
  0xfb   : > { %11225 = sst [smem:[#allocation51_spill]] %s11311_s6  ;;  %p67_p3 = scmp.eq.s32.totalorder %s66_s12, 0 }
  0xfc   : > { %s674_s29 = scalar_lea.vmem [#allocation3], %s7409_s24  ;;  %p11228_p1 = scmp.lt.s32.totalorder %s9040_s5, 4 }
  0xfd   : > { %s681_s16 = sshll.u32 %s674_s29, 4  ;;  %s671_s0 = scalar_lea.sflag [#allocation4], %s9524_s15  ;;  %s9537_s16 = int_to_ptr.vmem [resolvable:$true] %s681_s16 }
  0xfe   : > { %p9543_p9 = pnand %p11228_p1, %p9513_p6 }
  0xff   : > { %s11227_s11 = smov %s11226_s2  ;;  %s9535_s9 = scalar_lea.hbm %s11226_s2, %s7549_s13 }
 0x100   : > { %s9548_s26 = scalar_select %p67_p3, %s9020_s28, %s69_s27  }
 0x101   : > { %s8744_s13 = scalar_lea.hbm %s9535_s9, 512  ;;  %p8746_p2 = pneg %p9543_p9 }
 0x102   : > { %11230 = sst [smem:[#allocation52_spill]] %s9548_s26  ;;  %p8745_p8 = scmp.ne.s32.totalorder %s9535_s9, %s8744_s13 }
 0x103   : > { %s8749_s12 = scalar_lea.hbm %s11227_s11, 1024  ;;  %p8750_p7 = scmp.lt.u32.totalorder %s9535_s9, %s11227_s11 }
 0x104   : > { %p8747_p4 = pnand %p8746_p2, %p8745_p8  ;;  %p8751_p11 = scmp.lt.u32.totalorder %s8749_s12, %s8744_s13 }
 0x105   : > { %p8753_p12 = scmp.lt.u32.totalorder %s8744_s13, %s9535_s9 }
 0x106   : > { %p8748_p10 = pneg %p8747_p4  ;;  %p8752_p6 = por %p8751_p11, %p8750_p7 }
 0x108   : > { %p8754_p13 = por %p8753_p12, %p8752_p6 }
 0x10a   : > { %p8755_p3 = pnand %p8754_p13, %p8748_p10 }
 0x10c   : > { %8758 = shalt.err (!%p8755_p3)
}
 0x10d   : > { %s8759_s27 = scalar_lea.vmem %s9537_s16, 512  ;;  %s9052_s2 = smov [#allocation3]  }
 0x10e   : > { %p8760_p1 = scmp.ne.s32.totalorder %s9537_s16, %s8759_s27  ;;  %s8764_s29 = sshll.u32 %s9052_s2, 4  ;;  %s8765_s29 = int_to_ptr.vmem [resolvable:$false] %s8764_s29 }
 0x10f   : > { %s8766_s24 = scalar_lea.vmem %s8765_s29, 1024  ;;  %p8767_p0 = scmp.lt.s32.totalorder %s9537_s16, %s8765_s29 }
 0x110   : > { %p8762_p8 = pnand %p8760_p1, %p8746_p2  ;;  %p8768_p7 = scmp.lt.s32.totalorder %s8766_s24, %s8759_s27 }
 0x112   : > { %p8763_p4 = pneg %p8762_p8  ;;  %p8769_p11 = por %p8768_p7, %p8767_p0 }
 0x114   : > { %p8770_p6 = pnand %p8769_p11, %p8763_p4 }
 0x116   : > { %8773 = shalt.err (!%p8770_p6)
}
 0x117   : > { %s11231_s13 = smov 8   ;;  %s11232_s19 = smov 128  }
 0x118   : > { %8309 = dma.hbm_to_vmem [thread:$0]  (!%p9543_p9), %s9535_s9, 512, %s9537_s16, %s671_s0, %s11232_s19, %s11232_s19, %s11231_s13  }
 0x119   : > { %s7412_s12 = sshll.u32 %s9524_s15, 2  ;;  %s7550_s14 = sshll.u32 %s9036_s30, 6 }
 0x11a   : > { %s11233_s2 = sld [smem:[#allocation56_spill]]  ;;  %s695_s18 = scalar_lea.vmem [#allocation6], %s7412_s12 }
 0x11b   : > { %s702_s25 = sshll.u32 %s695_s18, 4  ;;  %s692_s8 = scalar_lea.sflag [#allocation7], %s9339_s20  ;;  %s9588_s25 = int_to_ptr.vmem [resolvable:$true] %s702_s25 }
 0x120   : > { %s11234_s24 = smov %s11233_s2  ;;  %s9586_s29 = scalar_lea.hbm %s11233_s2, %s7550_s14 }
 0x121   : > { %s8774_s11 = scalar_lea.hbm %s9586_s29, 64  ;;  %s8779_s16 = scalar_lea.hbm %s11234_s24, 128 }
 0x122   : > { %p8775_p0 = scmp.ne.s32.totalorder %s9586_s29, %s8774_s11  ;;  %p8780_p13 = scmp.lt.u32.totalorder %s9586_s29, %s11234_s24 }
 0x123   : > { %p8781_p3 = scmp.lt.u32.totalorder %s8779_s16, %s8774_s11  ;;  %p8783_p8 = scmp.lt.u32.totalorder %s8774_s11, %s9586_s29 }
 0x124   : > { %p8777_p10 = pnand %p8775_p0, %p8746_p2 }
 0x125   : > { %p8782_p1 = por %p8781_p3, %p8780_p13 }
 0x126   : > { %p8778_p12 = pneg %p8777_p10 }
 0x127   : > { %p8784_p4 = por %p8783_p8, %p8782_p1 }
 0x129   : > { %p8785_p7 = pnand %p8784_p4, %p8778_p12 }
 0x12b   : > { %8788 = shalt.err (!%p8785_p7)
}
 0x12c   : > { %s8789_s18 = scalar_lea.vmem %s9588_s25, 64  ;;  %s9053_s12 = smov [#allocation6]  }
 0x12d   : > { %p8790_p11 = scmp.ne.s32.totalorder %s9588_s25, %s8789_s18  ;;  %s8794_s21 = sshll.u32 %s9053_s12, 4  ;;  %s8795_s21 = int_to_ptr.vmem [resolvable:$false] %s8794_s21 }
 0x12e   : > { %s8796_s27 = scalar_lea.vmem %s8795_s21, 128  ;;  %p8797_p10 = scmp.lt.s32.totalorder %s9588_s25, %s8795_s21 }
 0x12f   : > { %p8792_p6 = pnand %p8790_p11, %p8746_p2  ;;  %p8798_p13 = scmp.lt.s32.totalorder %s8796_s27, %s8789_s18 }
 0x131   : > { %p8793_p0 = pneg %p8792_p6  ;;  %p8799_p3 = por %p8798_p13, %p8797_p10 }
 0x133   : > { %p8800_p1 = pnand %p8799_p3, %p8793_p0 }
 0x135   : > { %8803 = shalt.err (!%p8800_p1)
}
 0x136   : > { %s9054_s11 = smov 1   ;;  %s11235_s2 = smov 16  }
 0x137   : > { %s11236_s15 = sld [smem:[#allocation47_spill]]  ;;  %s11237_s9 = sld [smem:[#allocation46_spill]] }
 0x138   : > { %8312 = dma.hbm_to_vmem [thread:$0]  (!%p9543_p9), %s9586_s29, 64, %s9588_s25, %s692_s8, %s11235_s2, %s11235_s2, %s9054_s11  }
 0x139   : > { %s11239_s12 = sld [smem:[#allocation62_spill]] }
 0x13d   : > { %s743_s7 = scalar_lea.vmem [#allocation14], %s11237_s9 }
 0x13e   : > { %s750_s21 = sshll.u32 %s743_s7, 4  ;;  %s9625_s21 = int_to_ptr.vmem [resolvable:$true] %s750_s21 }
 0x13f   : > { %s9622_s18 = scalar_lea.hbm %s11239_s12, %s11236_s15  ;;  %s8809_s25 = scalar_lea.hbm %s11239_s12, 4096 }
 0x140   : > { %s8804_s27 = scalar_lea.hbm %s9622_s18, 2048  ;;  %p8810_p9 = scmp.lt.u32.totalorder %s9622_s18, %s11239_s12 }
 0x141   : > { %p8805_p2 = scmp.ne.s32.totalorder %s9622_s18, %s8804_s27  ;;  %p8811_p4 = scmp.lt.u32.totalorder %s8809_s25, %s8804_s27 }
 0x142   : > { %p8813_p11 = scmp.lt.u32.totalorder %s8804_s27, %s9622_s18 }
 0x143   : > { %p8807_p12 = pnand %p8805_p2, %p9372_p5  ;;  %p8812_p7 = por %p8811_p4, %p8810_p9 }
 0x145   : > { %p8808_p8 = pneg %p8807_p12  ;;  %p8814_p6 = por %p8813_p11, %p8812_p7 }
 0x147   : > { %p8815_p0 = pnand %p8814_p6, %p8808_p8 }
 0x149   : > { %8818 = shalt.err (!%p8815_p0)
}
 0x14a   : > { %s8819_s2 = scalar_lea.vmem %s9625_s21, 2048  ;;  %s9055_s24 = smov [#allocation14]  }
 0x14b   : > { %p8820_p10 = scmp.ne.s32.totalorder %s9625_s21, %s8819_s2  ;;  %s8824_s0 = sshll.u32 %s9055_s24, 4  ;;  %s8825_s0 = int_to_ptr.vmem [resolvable:$false] %s8824_s0 }
 0x14c   : > { %s8826_s14 = scalar_lea.vmem %s8825_s0, 4096  ;;  %p8827_p1 = scmp.lt.s32.totalorder %s9625_s21, %s8825_s0 }
 0x14d   : > { %p8822_p13 = pnand %p8820_p10, %p9372_p5  ;;  %p8828_p2 = scmp.lt.s32.totalorder %s8826_s14, %s8819_s2 }
 0x14f   : > { %p8823_p3 = pneg %p8822_p13  ;;  %p8829_p12 = por %p8828_p2, %p8827_p1 }
 0x151   : > { %p8830_p9 = pnand %p8829_p12, %p8823_p3 }
 0x153   : > { %8833 = shalt.err (!%p8830_p9)
}
 0x154   : > { %s11240_s7 = sld [smem:[#allocation48_spill]]  ;;  %s11242_s27 = scalar_lea.sflag [#allocation13], %s9339_s20 }
 0x155   : > { %s11243_s29 = sld [smem:[#allocation66_spill]]  ;;  %s797_s24 = scalar_lea.vmem [#allocation17], %s11237_s9 }
 0x156   : > { %s804_s0 = sshll.u32 %s797_s24, 4  ;;  %s9660_s0 = int_to_ptr.vmem [resolvable:$true] %s804_s0 }
 0x15a   : > { %p11241_p8 = scmp.ne.s32.totalorder %s11240_s7, 0 }
 0x15b   : > { %s11244_s11 = smov %s11243_s29  ;;  %s9657_s2 = scalar_lea.hbm %s11243_s29, %s11236_s15 }
 0x15c   : > { %8318 = dma.hbm_to_vmem [thread:$0]  (!%p11241_p8), %s9622_s18, 2048, %s9625_s21, %s11242_s27, %s11232_s19, %s11232_s19, %s11231_s13  }
 0x15d   : > { %s8834_s14 = scalar_lea.hbm %s9657_s2, 2048  ;;  %s8839_s21 = scalar_lea.hbm %s11244_s11, 4096 }
 0x15e   : > { %p8835_p4 = scmp.ne.s32.totalorder %s9657_s2, %s8834_s14  ;;  %p8840_p6 = scmp.lt.u32.totalorder %s9657_s2, %s11244_s11 }
 0x15f   : > { %p8841_p0 = scmp.lt.u32.totalorder %s8839_s21, %s8834_s14  ;;  %p8843_p13 = scmp.lt.u32.totalorder %s8834_s14, %s9657_s2 }
 0x160   : > { %p8837_p7 = pnand %p8835_p4, %p9372_p5 }
 0x161   : > { %p8842_p10 = por %p8841_p0, %p8840_p6 }
 0x162   : > { %p8838_p11 = pneg %p8837_p7 }
 0x163   : > { %p8844_p3 = por %p8843_p13, %p8842_p10 }
 0x165   : > { %p8845_p1 = pnand %p8844_p3, %p8838_p11 }
 0x167   : > { %8848 = shalt.err (!%p8845_p1)
}
 0x168   : > { %s8849_s9 = scalar_lea.vmem %s9660_s0, 2048  ;;  %s9056_s12 = smov [#allocation17]  }
 0x169   : > { %p8850_p2 = scmp.ne.s32.totalorder %s9660_s0, %s8849_s9  ;;  %s8854_s8 = sshll.u32 %s9056_s12, 4  ;;  %s8855_s8 = int_to_ptr.vmem [resolvable:$false] %s8854_s8 }
 0x16a   : > { %s8856_s25 = scalar_lea.vmem %s8855_s8, 4096  ;;  %p8857_p4 = scmp.lt.s32.totalorder %s9660_s0, %s8855_s8 }
 0x16b   : > { %p8852_p12 = pnand %p8850_p2, %p9372_p5  ;;  %p8858_p7 = scmp.lt.s32.totalorder %s8856_s25, %s8849_s9 }
 0x16d   : > { %p8853_p9 = pneg %p8852_p12  ;;  %p8859_p6 = por %p8858_p7, %p8857_p4 }
 0x16f   : > { %p8860_p0 = pnand %p8859_p6, %p8853_p9 }
 0x171   : > { %8863 = shalt.err (!%p8860_p0)
}
 0x172   : > { %s11245_s29 = scalar_lea.sflag [#allocation16], %s9339_s20  ;;  %s8864_s24 = scalar_lea.hbm %s9481_s23, 4096 }
 0x173   : > { %8324 = dma.hbm_to_vmem [thread:$0]  (!%p11241_p8), %s9657_s2, 2048, %s9660_s0, %s11245_s29, %s11232_s19, %s11232_s19, %s11231_s13  }
 0x174   : > { %p8865_p11 = scmp.ne.s32.totalorder %s9481_s23, %s8864_s24  ;;  %s8869_s21 = scalar_lea.hbm %s11215_s17, 8192 }
 0x175   : > { %p8870_p3 = scmp.lt.u32.totalorder %s9481_s23, %s11215_s17  ;;  %p8871_p1 = scmp.lt.u32.totalorder %s8869_s21, %s8864_s24 }
 0x176   : > { %p8867_p10 = pnand %p8865_p11, %p9372_p5  ;;  %p8873_p12 = scmp.lt.u32.totalorder %s8864_s24, %s9481_s23 }
 0x177   : > { %p8872_p2 = por %p8871_p1, %p8870_p3 }
 0x178   : > { %p8868_p13 = pneg %p8867_p10 }
 0x179   : > { %p8874_p9 = por %p8873_p12, %p8872_p2 }
 0x17b   : > { %p8875_p4 = pnand %p8874_p9, %p8868_p13 }
 0x17d   : > { %8878 = shalt.err (!%p8875_p4)
}
 0x17e   : > { %s8879_s2 = scalar_lea.vmem %s9484_s1, 4096  ;;  %s9057_s0 = smov [#allocation20]  }
 0x17f   : > { %p8880_p7 = scmp.ne.s32.totalorder %s9484_s1, %s8879_s2  ;;  %s8884_s9 = sshll.u32 %s9057_s0, 4  ;;  %s8885_s9 = int_to_ptr.vmem [resolvable:$false] %s8884_s9 }
 0x180   : > { %s8886_s12 = scalar_lea.vmem %s8885_s9, 8192  ;;  %p8887_p11 = scmp.lt.s32.totalorder %s9484_s1, %s8885_s9 }
 0x181   : > { %p8882_p6 = pnand %p8880_p7, %p9372_p5  ;;  %p8888_p10 = scmp.lt.s32.totalorder %s8886_s12, %s8879_s2 }
 0x183   : > { %p8883_p0 = pneg %p8882_p6  ;;  %p8889_p3 = por %p8888_p10, %p8887_p11 }
 0x185   : > { %p8890_p1 = pnand %p8889_p3, %p8883_p0 }
 0x187   : > { %8893 = shalt.err (!%p8890_p1)
}
 0x188   : > { %s11246_s8 = scalar_lea.sflag [#allocation19], %s9339_s20  ;;  %s11247_s16 = sld [smem:[#allocation43_spill]] }
 0x189   : > { %8330 = dma.hbm_to_vmem [thread:$0]  (!%p11241_p8), %s9481_s23, 4096, %s9484_s1, %s11246_s8, %s11232_s19, %s11232_s19, %s11231_s13  }
 0x18e   : > { %p11248_p5 = scmp.ne.s32.totalorder %s11247_s16, 0 }
 0x190   : > { %901 = sbr.rel (%p11248_p5) target bundleno = 3305 (0xce9), region = 104 }
 0x197   : > { %s11249_s25 = sld [smem:[#allocation40_spill]]  ;;  %s9717_s29 = sand.u32 1, %s9016_s3  }
 0x198   : > { %s11144_s24 = sshll.u32 %s9717_s29, 5  ;;  %s904_s7 = scalar_lea.sflag [#allocation4], %s9717_s29 }
 0x199   : > { %s9723_s14 = scalar_lea.vmem [#allocation3], %s11144_s24 }
 0x19d   : > { %p11250_p13 = scmp.ne.s32.totalorder %s11249_s25, 0 }
 0x19f   : > { %8967 = dma.done.wait (%p11250_p13), %s904_s7, 512  }
 0x1a0   : > { %8969 = vsyncadd (%p11250_p13), %s904_s7, 4294966784  ;;  %s912_s20 = sand.u32 1, %s9232_s22   ;;  %s7435_s23 = sshll.u32 %s9717_s29, 2 }
 0x1a1   : > { %s913_s1 = scalar_lea.sflag [#allocation7], %s912_s20  ;;  %s9731_s13 = scalar_lea.vmem [#allocation6], %s7435_s23 }
 0x1a2   : > { %8971 = dma.done.wait (%p11250_p13), %s913_s1, 64  }
 0x1a3   : > { %8973 = vsyncadd (%p11250_p13), %s913_s1, 4294967232  ;;  %p11251_p8 = scmp.eq.s32.totalorder %s9232_s22, 0 }
 0x1a5   : > { %8975 = dma.done.wait (%p11251_p8), [#allocation7], 128   ;;  %p11252_p2 = pmov %p11251_p8 }
 0x1a7   : > { %8977 = vsyncadd (%p11252_p2), [#allocation7], 4294967168  ;;  %p11253_p12 = pmov %p11252_p2 }
 0x1a8   : > { %p11254_p9 = pmov %p11252_p2 }
 0x1a9   : > { %8979 = dma.done.wait (%p11253_p12), [#allocation10], 32  }
 0x1aa   : > { %8981 = vsyncadd (%p11254_p9), [#allocation10], 4294967264  ;;  %s11255_s19 = sld [smem:[#allocation30_spill]]  ;;  %s11256_s18 = sld [smem:[#allocation41_spill]] }
 0x1ab   : > { %s934_s15 = scalar_lea.sflag [#allocation13], %s912_s20 }
 0x1b0   : > { %s935_s21 = sand.u32 1, %s11255_s19   ;;  %p11257_p4 = scmp.ne.s32.totalorder %s11256_s18, 0 }
 0x1b1   : > { %s7439_s27 = sshll.u32 %s935_s21, 7 }
 0x1b2   : > { %s9746_s2 = scalar_lea.vmem [#allocation12], %s7439_s27 }
 0x1b3   : > { %8983 = dma.done.wait (%p11257_p4), %s934_s15, 4096  }
 0x1b4   : > { %8985 = vsyncadd (%p11257_p4), %s934_s15, 4294963200  ;;  %s9752_s0 = scalar_lea.vmem [#allocation14], %s7439_s27  ;;  %s952_s9 = scalar_lea.sflag [#allocation16], %s912_s20 }
 0x1b5   : > { %s9754_s12 = scalar_lea.vmem [#allocation15], %s7439_s27 }
 0x1b6   : > { %8987 = dma.done.wait (%p11257_p4), %s952_s9, 4096  }
 0x1b7   : > { %8989 = vsyncadd (%p11257_p4), %s952_s9, 4294963200  ;;  %s7443_s22 = sshll.u32 %s935_s21, 8  ;;  %s9760_s8 = scalar_lea.vmem [#allocation17], %s7439_s27 }
 0x1b8   : > { %11258 = sst [smem:[#allocation53_spill]] %s9760_s8  ;;  %s970_s16 = scalar_lea.sflag [#allocation19], %s912_s20 }
 0x1b9   : > { %s9762_s25 = scalar_lea.vmem [#allocation18], %s7443_s22 }
 0x1ba   : > { %11259 = sst [smem:[#allocation54_spill]] %s9762_s25 }
 0x1bb   : > { %8991 = dma.done.wait (%p11257_p4), %s970_s16, 8192  }
 0x1bc   : > { %8993 = vsyncadd (%p11257_p4), %s970_s16, 4294959104  ;;  %s11260_s7 = sld [smem:[#allocation35_spill]]  ;;  %s11263_s11 = sld [smem:[#allocation65_spill]] }
 0x1bd   : > { %s11266_s25 = sld [smem:[#allocation69_spill]]  ;;  %s11267_s27 = sld [smem:[#allocation73_spill]] }
 0x1be   : > { %s11269_s19 = sld [smem:[#allocation74_spill]]  ;;  %s11270_s26 = sld [smem:[#allocation75_spill]] }
 0x1bf   : > { %s9814_s5 = scalar_lea.vmem [#allocation20], %s7443_s22  ;;  %s11271_s10 = sshll.u32 %s9717_s29, 5 }
 0x1c2   : > { %p1109_p7 = scmp.lt.s32.totalorder %s11260_s7, 1  ;;  %p7447_p6 = scmp.ne.s32.totalorder %s11260_s7, 0 }
 0x1c3   : > { %v1145_v0 = vld [vmem:[%s9723_s14] sm:$0xff] (!%p7447_p6)  ;;  %v1149_v1 = vld [vmem:[#allocation8] sm:$0xff] (!%p7447_p6)  ;;  %v1147_v2 = vld [vmem:[%s9723_s14 + $0x10] sm:$0xff] (!%p7447_p6) }
 0x1c4   : > { %s9770_s23 = scalar_select %p1109_p7, %s11260_s7, 1 }
 0x1c5   : > { %v1150_v3 = vadd.f32 (!%p7447_p6), %v1149_v1, %v1145_v0  ;;  %v1152_v4 = vadd.f32 (!%p7447_p6), %v1149_v1, %v1147_v2  ;;  %v1146_v5 = vld [vmem:[%s9723_s14 + $0x8] sm:$0xff] (!%p7447_p6)  ;;  %v1148_v6 = vld [vmem:[%s9723_s14 + $0x18] sm:$0xff] (!%p7447_p6)  ;;  %v7448_v38 = vld [vmem:[#allocation9] ss:$0 sm:$0xff] (!%p7447_p6) }
 0x1c6   : > { %s1117_s17 = scalar_lea.vmem %s11263_s11, %s9770_s23  ;;  %s1126_s21 = scalar_lea.vmem %s11266_s25, %s9770_s23  ;;  %v1151_v7 = vadd.f32 (!%p7447_p6), %v1149_v1, %v1146_v5  ;;  %v1153_v8 = vadd.f32 (!%p7447_p6), %v1149_v1, %v1148_v6  ;;  %v7449_v40 = vld [vmem:[#allocation11] ss:$0 sm:$0xff] (!%p7447_p6) }
 0x1c7   : > { %s7446_s20 = sshll.u32 %s9770_s23, 1  ;;  %s1133_s15 = scalar_lea.vmem %s11267_s27, %s9770_s23  ;;  %1156 = vadd.xlane.f32.xlu0 (!%p7447_p6), %v1150_v3  ;;  %1160 = vadd.xlane.f32.xlu1 (!%p7447_p6), %v1152_v4 }
 0x1c8   : > { %s11268_s11 = sld [smem:[#allocation71_spill]]  ;;  %s1136_s30 = scalar_lea.vmem %s11269_s19, %s9770_s23 }
 0x1c9   : > { %s1139_s3 = scalar_lea.vmem %s11270_s26, %s9770_s23  ;;  %s9818_s25 = scalar_lea.vmem [#allocation21], %s11271_s10 }
 0x1ca   : > { %1144 = sbr.rel (%p7447_p6) target bundleno = 775 (0x307), region = 152 }
 0x1cb   : > { %1158 = vadd.xlane.f32.xlu0 (!%p7447_p6), %v1151_v7  ;;  %1162 = vadd.xlane.f32.xlu1 (!%p7447_p6), %v1153_v8 }
 0x1ce   : > { %s9804_s16 = scalar_lea.vmem %s11268_s11, %s7446_s20 }
 0x254   : > { %v1157_v9 = vpop.xlane.xlu0 %1156  ;;  %v1161_v10 = vpop.xlane.xlu1 %1160 }
 0x255   : > { %v1165_v11 = vmul.f32 0.0078125, %v1157_v9  ;;  %v1167_v12 = vmul.f32 0.0078125, %v1161_v10 }
 0x257   : > { %v1169_v13 = vsub.f32 %v1150_v3, %v1165_v11  ;;  %v1171_v14 = vsub.f32 %v1152_v4, %v1167_v12 }
 0x258   : > { %v1159_v15 = vpop.xlane.xlu0 %1158  ;;  %v1163_v16 = vpop.xlane.xlu1 %1162 }
 0x259   : > { %v1166_v17 = vmul.f32 0.0078125, %v1159_v15  ;;  %v1173_v18 = vmul.f32 %v1169_v13, %v1169_v13  ;;  %v1168_v19 = vmul.f32 0.0078125, %v1163_v16  ;;  %v1175_v22 = vmul.f32 %v1171_v14, %v1171_v14 }
 0x25b   : > { %v1170_v20 = vsub.f32 %v1151_v7, %v1166_v17  ;;  %1177 = vadd.xlane.f32.xlu0 %v1173_v18  ;;  %v1172_v21 = vsub.f32 %v1153_v8, %v1168_v19 }
 0x25d   : > { %v1174_v23 = vmul.f32 %v1170_v20, %v1170_v20  ;;  %v1176_v24 = vmul.f32 %v1172_v21, %v1172_v21 }
 0x25f   : > { %1181 = vadd.xlane.f32.xlu0 %v1175_v22  ;;  %1179 = vadd.xlane.f32.xlu1 %v1174_v23 }
 0x263   : > { %1183 = vadd.xlane.f32.xlu1 %v1176_v24 }
 0x2e8   : > { %v1178_v25 = vpop.xlane.xlu0 %1177 }
 0x2e9   : > { %v1185_v26 = vmul.f32 0.0078125, %v1178_v25 }
 0x2eb   : > { %v1189_v27 = vadd.f32 1e-06, %v1185_v26 }
 0x2ec   : > { %v1180_v28 = vpop.xlane.xlu1 %1179  ;;  %v1182_v29 = vpop.xlane.xlu0 %1181 }
 0x2ed   : > { %8448 = vrsqrt.f32 %v1189_v27  ;;  %v1186_v30 = vmul.f32 0.0078125, %v1180_v28  ;;  %v1187_v31 = vmul.f32 0.0078125, %v1182_v29 }
 0x2ef   : > { %v1190_v32 = vadd.f32 1e-06, %v1186_v30  ;;  %v1191_v33 = vadd.f32 1e-06, %v1187_v31 }
 0x2f0   : > { %v1184_v34 = vpop.xlane.xlu1 %1183 }
 0x2f1   : > { %8450 = vrsqrt.f32 %v1190_v32  ;;  %v1188_v35 = vmul.f32 0.0078125, %v1184_v34 }
 0x2f2   : > { %8452 = vrsqrt.f32 %v1191_v33 }
 0x2f3   : > { %v1192_v36 = vadd.f32 1e-06, %v1188_v35 }
 0x2f5   : > { %8454 = vrsqrt.f32 %v1192_v36 }
 0x2f7   : > { %v8449_v37 = vpop.eup %8448 }
 0x2f8   : > { %v1197_v39 = vmul.f32 %v8449_v37, %v1169_v13 }
 0x2fa   : > { %v1207_v41 = vmul.f32 %v7448_v38, %v1197_v39 }
 0x2fb   : > { %v8451_v42 = vpop.eup %8450 }
 0x2fc   : > { %v8453_v43 = vpop.eup %8452  ;;  %v1217_v44 = vadd.f32 %v7449_v40, %v1207_v41  ;;  %v1198_v45 = vmul.f32 %v8451_v42, %v1170_v20 }
 0x2fd   : > { %v1199_v46 = vmul.f32 %v8453_v43, %v1171_v14 }
 0x2fe   : > { %1221 = vst [vmem:[#allocation2] sm:$0xff] %v1217_v44  ;;  %v1208_v47 = vmul.f32 %v7448_v38, %v1198_v45 }
 0x2ff   : > { %v8455_v48 = vpop.eup %8454  ;;  %v1209_v49 = vmul.f32 %v7448_v38, %v1199_v46 }
 0x300   : > { %v1218_v50 = vadd.f32 %v7449_v40, %v1208_v47  ;;  %v1200_v51 = vmul.f32 %v8455_v48, %v1172_v21 }
 0x301   : > { %v1219_v52 = vadd.f32 %v7449_v40, %v1209_v49 }
 0x302   : > { %1222 = vst [vmem:[#allocation2 + $0x8] sm:$0xff] %v1218_v50  ;;  %v1210_v53 = vmul.f32 %v7448_v38, %v1200_v51 }
 0x303   : > { %1223 = vst [vmem:[#allocation2 + $0x10] sm:$0xff] %v1219_v52 }
 0x304   : > { %v1220_v54 = vadd.f32 %v7449_v40, %v1210_v53 }
 0x306   : > { %1224 = vst [vmem:[#allocation2 + $0x18] sm:$0xff] %v1220_v54 }
 0x307 PF: > { %v1337_v55 = vld [vmem:[%s9752_s0] sm:$0xff]  ;;  %v1338_v56 = vld [vmem:[%s9752_s0 + $0x8] sm:$0xff]  ;;  %v1339_v60 = vld [vmem:[%s9752_s0 + $0x10] sm:$0xff]  ;;  %s9058_s9 = smov 32   ;;  %s9059_s18 = smov 96   ;;  %vm9062_vm0 = vmmov 0  }
 0x308   : > { %v1229_v57 = vld [vmem:[%s9746_s2] sm:$0xff]  ;;  %v8090_v58 = vpack.c.bf16 %v1338_v56, %v1337_v55  ;;  %v1230_v59 = vld [vmem:[%s9746_s2 + $0x8] sm:$0xff]  ;;  %v1340_v61 = vld [vmem:[%s9752_s0 + $0x18] sm:$0xff]  ;;  %s9060_s27 = smov 64   ;;  %vm3333_vm1 = vcmask 261120   ;;  %vm4550_vm2 = vcmask 64512  }
 0x309   : > { %v8058_v62 = vpack.c.bf16 %v1230_v59, %v1229_v57  ;;  %v8094_v63 = vpack.c.bf16 %v1340_v61, %v1339_v60  ;;  %v1231_v0 = vld [vmem:[%s9746_s2 + $0x10] sm:$0xff]  ;;  %v1232_v1 = vld [vmem:[%s9746_s2 + $0x18] sm:$0xff]  ;;  %v1341_v2 = vld [vmem:[%s9752_s0 + $0x20] sm:$0xff]  ;;  %vm6491_vm3 = vcmask 523264   ;;  %vm6496_vm4 = vcmask 785408   ;;  %s11278_s19 = sld [smem:[#allocation67_spill]] }
 0x30a   : > { %8091 = vmatprep.subr.bf16.mxu1 %v8090_v58  ;;  %v8062_v3 = vpack.c.bf16 %v1232_v1, %v1231_v0  ;;  %v1342_v4 = vld [vmem:[%s9752_s0 + $0x28] sm:$0xff]  ;;  %v1233_v5 = vld [vmem:[%s9746_s2 + $0x20] sm:$0xff]  ;;  %v1343_v9 = vld [vmem:[%s9752_s0 + $0x30] sm:$0xff]  ;;  %s11280_s28 = sld [smem:[#allocation54_spill]]  ;;  %s11281_s14 = sld [smem:[#allocation68_spill]] }
 0x30b   : > { %v1234_v6 = vld [vmem:[%s9746_s2 + $0x28] sm:$0xff]  ;;  %8093 = vmatpush3.bf16.msra.mxu1 %v8090_v58  ;;  %8059 = vmatprep.subr.bf16.mxu0 %v8058_v62  ;;  %v8098_v7 = vpack.c.bf16 %v1342_v4, %v1341_v2  ;;  %v1344_v10 = vld [vmem:[%s9752_s0 + $0x38] sm:$0xff]  ;;  %v1235_v11 = vld [vmem:[%s9746_s2 + $0x30] sm:$0xff] }
 0x30c   : > { %8095 = vmatprep.subr.bf16.mxu1 %v8094_v63  ;;  %8061 = vmatpush3.bf16.msra.mxu0 %v8058_v62  ;;  %v8066_v8 = vpack.c.bf16 %v1234_v6, %v1233_v5  ;;  %v1236_v12 = vld [vmem:[%s9746_s2 + $0x38] sm:$0xff]  ;;  %v8102_v13 = vpack.c.bf16 %v1344_v10, %v1343_v9  ;;  %v1345_v15 = vld [vmem:[%s9752_s0 + $0x40] sm:$0xff]  ;;  %v1346_v16 = vld [vmem:[%s9752_s0 + $0x48] sm:$0xff] }
 0x30d   : > { %8063 = vmatprep.subr.bf16.mxu0 %v8062_v3  ;;  %v8070_v14 = vpack.c.bf16 %v1236_v12, %v1235_v11  ;;  %v9843_v17 = vld [vmem:[#allocation2] sm:$0xff]  ;;  %v1237_v18 = vld [vmem:[%s9746_s2 + $0x40] sm:$0xff]  ;;  %v8106_v20 = vpack.c.bf16 %v1346_v16, %v1345_v15  ;;  %v1348_v23 = vld [vmem:[%s9752_s0 + $0x58] sm:$0xff] }
 0x30e   : > { %v1238_v19 = vld [vmem:[%s9746_s2 + $0x48] sm:$0xff]  ;;  %7816 = vmatprep.mubr.f32.mxu1 %v9843_v17  ;;  %7778 = vmatprep.mubr.f32.mxu0 %v9843_v17  ;;  %v1347_v22 = vld [vmem:[%s9752_s0 + $0x50] sm:$0xff]  ;;  %v1240_v25 = vld [vmem:[%s9746_s2 + $0x58] sm:$0xff] }
 0x30f   : > { %8097 = vmatpush3.bf16.msra.mxu1 %v8094_v63  ;;  %v8074_v21 = vpack.c.bf16 %v1238_v19, %v1237_v18  ;;  %v1239_v24 = vld [vmem:[%s9746_s2 + $0x50] sm:$0xff]  ;;  %v8110_v26 = vpack.c.bf16 %v1348_v23, %v1347_v22  ;;  %v1349_v28 = vld [vmem:[%s9752_s0 + $0x60] sm:$0xff]  ;;  %v1350_v29 = vld [vmem:[%s9752_s0 + $0x68] sm:$0xff]  ;;  %s11279_s4 = scalar_lea.vmem %s11278_s19, %s9770_s23 }
 0x310   : > { %8099 = vmatprep.subr.bf16.mxu1 %v8098_v7  ;;  %8065 = vmatpush3.bf16.msra.mxu0 %v8062_v3  ;;  %v8078_v27 = vpack.c.bf16 %v1240_v25, %v1239_v24  ;;  %v1241_v30 = vld [vmem:[%s9746_s2 + $0x60] sm:$0xff]  ;;  %v1242_v31 = vld [vmem:[%s9746_s2 + $0x68] sm:$0xff]  ;;  %v8114_v32 = vpack.c.bf16 %v1350_v29, %v1349_v28  ;;  %v1351_v34 = vld [vmem:[%s9752_s0 + $0x70] sm:$0xff] }
 0x311   : > { %8067 = vmatprep.subr.bf16.mxu0 %v8066_v8  ;;  %v8082_v33 = vpack.c.bf16 %v1242_v31, %v1241_v30  ;;  %v1352_v35 = vld [vmem:[%s9752_s0 + $0x78] sm:$0xff]  ;;  %v1243_v36 = vld [vmem:[%s9746_s2 + $0x70] sm:$0xff]  ;;  %v1445_v40 = vld [vmem:[%s9754_s12] sm:$0xff]  ;;  %s11272_s0 = sld [smem:[#allocation63_spill]]  ;;  %v9063_v31 = vmov 1983009808  }
 0x312   : > { %v1244_v37 = vld [vmem:[%s9746_s2 + $0x78] sm:$0xff]  ;;  %v8118_v38 = vpack.c.bf16 %v1352_v35, %v1351_v34  ;;  %v1446_v41 = vld [vmem:[%s9754_s12 + $0x8] sm:$0xff]  ;;  %v1447_v43 = vld [vmem:[%s9754_s12 + $0x10] sm:$0xff]  ;;  %v9064_v34 = vmov 1934713408   ;;  %s11282_s2 = scalar_lea.vmem %s11281_s14, %s9770_s23 }
 0x313   : > { %8101 = vmatpush3.bf16.msra.mxu1 %v8098_v7  ;;  %v8086_v39 = vpack.c.bf16 %v1244_v37, %v1243_v36  ;;  %v8122_v42 = vpack.c.bf16 %v1446_v41, %v1445_v40  ;;  %v1448_v44 = vld [vmem:[%s9754_s12 + $0x18] sm:$0xff]  ;;  %v1449_v48 = vld [vmem:[%s9754_s12 + $0x20] sm:$0xff]  ;;  %v1450_v49 = vld [vmem:[%s9754_s12 + $0x28] sm:$0xff]  ;;  %v1628_v35 = vunpack.c.l.s4 %v9064_v34 }
 0x314   : > { %8103 = vmatprep.subr.bf16.mxu1 %v8102_v13  ;;  %8069 = vmatpush3.bf16.msra.mxu0 %v8066_v8  ;;  %v1226_v45 = vld [vmem:[#allocation2 + $0x8] sm:$0xff]  ;;  %v1227_v46 = vld [vmem:[#allocation2 + $0x10] sm:$0xff]  ;;  %v8126_v47 = vpack.c.bf16 %v1448_v44, %v1447_v43  ;;  %v1228_v50 = vld [vmem:[#allocation2 + $0x18] sm:$0xff]  ;;  %v8130_v51 = vpack.c.bf16 %v1450_v49, %v1449_v48 }
 0x315   : > { %8071 = vmatprep.subr.bf16.mxu0 %v8070_v14  ;;  %v1451_v52 = vld [vmem:[%s9754_s12 + $0x30] sm:$0xff]  ;;  %v1452_v53 = vld [vmem:[%s9754_s12 + $0x38] sm:$0xff]  ;;  %v1453_v55 = vld [vmem:[%s9754_s12 + $0x40] sm:$0xff]  ;;  %v1629_v40 = vunpack.c.0.s8 %v1628_v35 }
 0x316   : > { %v8134_v54 = vpack.c.bf16 %v1452_v53, %v1451_v52  ;;  %v1454_v56 = vld [vmem:[%s9754_s12 + $0x48] sm:$0xff]  ;;  %v1455_v58 = vld [vmem:[%s9754_s12 + $0x50] sm:$0xff]  ;;  %v1456_v59 = vld [vmem:[%s9754_s12 + $0x58] sm:$0xff] }
 0x317   : > { %8105 = vmatpush3.bf16.msra.mxu1 %v8102_v13  ;;  %v8138_v57 = vpack.c.bf16 %v1454_v56, %v1453_v55  ;;  %v8142_v60 = vpack.c.bf16 %v1456_v59, %v1455_v58  ;;  %v1457_v61 = vld [vmem:[%s9754_s12 + $0x60] sm:$0xff]  ;;  %v1458_v62 = vld [vmem:[%s9754_s12 + $0x68] sm:$0xff]  ;;  %v1459_v0 = vld [vmem:[%s9754_s12 + $0x70] sm:$0xff]  ;;  %s11273_s22 = scalar_lea.vmem %s11272_s0, %s9770_s23 }
 0x318   : > { %8107 = vmatprep.subr.bf16.mxu1 %v8106_v20  ;;  %8073 = vmatpush3.bf16.msra.mxu0 %v8070_v14  ;;  %v8146_v63 = vpack.c.bf16 %v1458_v62, %v1457_v61  ;;  %v1460_v1 = vld [vmem:[%s9754_s12 + $0x78] sm:$0xff]  ;;  %v7451_v3 = vld [vmem:[%s11273_s22] ss:$0 sm:$0xff]  ;;  %s11274_s12 = sld [smem:[#allocation61_spill]] }
 0x319   : > { %8075 = vmatprep.subr.bf16.mxu0 %v8074_v21  ;;  %v8150_v2 = vpack.c.bf16 %v1460_v1, %v1459_v0  ;;  %v7452_v23 = vld [vmem:[%s1117_s17] ss:$0 sm:$0xff]  ;;  %s11277_s17 = sld [smem:[#allocation53_spill]] }
 0x31b   : > { %8109 = vmatpush3.bf16.msra.mxu1 %v8106_v20 }
 0x31c   : > { %8111 = vmatprep.subr.bf16.mxu1 %v8110_v26  ;;  %8077 = vmatpush3.bf16.msra.mxu0 %v8074_v21 }
 0x31d   : > { %8079 = vmatprep.subr.bf16.mxu0 %v8078_v27 }
 0x31e   : > { %s11275_s20 = scalar_lea.vmem %s11274_s12, %s9770_s23 }
 0x31f   : > { %8113 = vmatpush3.bf16.msra.mxu1 %v8110_v26  ;;  %v7450_v7 = vld [vmem:[%s11275_s20] ss:$0 sm:$0xff] }
 0x320   : > { %8115 = vmatprep.subr.bf16.mxu1 %v8114_v32  ;;  %8081 = vmatpush3.bf16.msra.mxu0 %v8078_v27 }
 0x321   : > { %8083 = vmatprep.subr.bf16.mxu0 %v8082_v33 }
 0x323   : > { %8117 = vmatpush3.bf16.msra.mxu1 %v8114_v32  ;;  %v1596_v32 = vunpack.c.l.s4 %v9063_v31 }
 0x324   : > { %8119 = vmatprep.subr.bf16.mxu1 %v8118_v38  ;;  %8085 = vmatpush3.bf16.msra.mxu0 %v8082_v33  ;;  %v1598_v33 = vlaneseq }
 0x325   : > { %8087 = vmatprep.subr.bf16.mxu0 %v8086_v39  ;;  %v1597_v36 = vunpack.c.0.s8 %v1596_v32 }
 0x326   : > { %v9989_v37 = vshrl.u32 %v1598_v33, 7 }
 0x327   : > { %8121 = vmatpush3.bf16.msra.mxu1 %v8118_v38 }
 0x328   : > { %8089 = vmatpush3.bf16.msra.mxu0 %v8086_v39  ;;  %v9992_v41 = vsub.s32 %v1597_v36, %v9989_v37  ;;  %v9997_v48 = vsub.s32 %v1629_v40, %v9989_v37 }
 0x329   : > { %8123 = vmatprep.subr.bf16.mxu0 %v8122_v42 }
 0x32a   : > { %7817 = vmatmul.mubr.f32.vlgmr.msra.gmra.mrb[0].mxu1 %v1226_v45 }
 0x32b   : > { %7779 = vmatmul.mubr.f32.vlgmr.msra.gmra.mrb[0].mxu0 %v1226_v45  ;;  %7819 = vmatprep.mubr.f32.mxu1 %v1227_v46 }
 0x32c   : > { %7781 = vmatprep.mubr.f32.mxu0 %v1227_v46  ;;  %8125 = vmatpush3.bf16.msra.mxu0 %v8122_v42 }
 0x32d   : > { %8127 = vmatprep.subr.bf16.mxu0 %v8126_v47 }
 0x32e   : > { %7820 = vmatmul.mubr.f32.gmra.mrb[2].mxu1 %v1228_v50 }
 0x32f   : > { %7782 = vmatmul.mubr.f32.gmra.mrb[2].mxu0 %v1228_v50 }
 0x330   : > { %8129 = vmatpush3.bf16.msra.mxu0 %v8126_v47  ;;  %7854 = vmatprep.mubr.f32.mxu0 %v9843_v17  ;;  %v9061_v17 = vmov 0.0  }
 0x331   : > { %8131 = vmatprep.subr.bf16.mxu0 %v8130_v51  ;;  %7860 = vmatprep.subr.mxu1 %v9061_v17 }
 0x332   : > { %7862 = vmatprep.mubr.msk.f32.mxu1 %vm9062_vm0, %v9061_v17 }
 0x334   : > { %8133 = vmatpush3.bf16.msra.mxu0 %v8130_v51 }
 0x335   : > { %8135 = vmatprep.subr.bf16.mxu0 %v8134_v54 }
 0x338   : > { %8137 = vmatpush3.bf16.msra.mxu0 %v8134_v54 }
 0x339   : > { %8139 = vmatprep.subr.bf16.mxu0 %v8138_v57 }
 0x33c   : > { %8141 = vmatpush3.bf16.msra.mxu0 %v8138_v57 }
 0x33d   : > { %8143 = vmatprep.subr.bf16.mxu0 %v8142_v60 }
 0x340   : > { %8145 = vmatpush3.bf16.msra.mxu0 %v8142_v60 }
 0x341   : > { %8147 = vmatprep.subr.bf16.mxu0 %v8146_v63 }
 0x344   : > { %8149 = vmatpush3.bf16.msra.mxu0 %v8146_v63 }
 0x345   : > { %8151 = vmatprep.subr.bf16.mxu0 %v8150_v2 }
 0x348   : > { %8153 = vmatpush3.bf16.msra.mxu0 %v8150_v2 }
 0x349   : > { %7900 = vmatprep.subr.mxu0 %v9061_v17 }
 0x34b   : > { %7855 = vmatmul.mubr.f32.vlgmr.msra.gmra.mrb[4].mxu0 %v1226_v45 }
 0x34c   : > { %7857 = vmatprep.mubr.f32.mxu0 %v1227_v46 }
 0x34f   : > { %7858 = vmatmul.mubr.f32.gmra.mrb[6].mxu0 %v1228_v50 }
 0x350   : > { %7902 = vmatprep.mubr.msk.f32.mxu0 %vm9062_vm0, %v9061_v17 }
 0x3fd   : > { %v7818_v4 = vpop.f32.mrb[0].mxu1 }
 0x3fe   : > { %v1426_v5 = vpop.f32.mrb[1].mxu1  ;;  %v7780_v6 = vpop.f32.mrb[0].mxu0  ;;  %v9904_v15 = vadd.f32 %v7818_v4, %v7451_v3 }
 0x3ff   : > { %v9888_v8 = vadd.f32 %v7451_v3, %v1426_v5  ;;  %v1318_v9 = vpop.f32.mrb[1].mxu0  ;;  %v9910_v16 = vadd.f32 %v7780_v6, %v7450_v7 }
 0x400   : > { %v9894_v10 = vadd.f32 %v7450_v7, %v1318_v9 }
 0x401   : > { %2165 = vrot.lane.b32.xlu1 %v9888_v8, %s9058_s9  ;;  %2141 = vrot.lane.b32.xlu0 %v9888_v8, %s9059_s18  ;;  %v7821_v11 = vpop.f32.mrb[2].mxu1 }
 0x402   : > { %v1436_v12 = vpop.f32.mrb[3].mxu1  ;;  %v7783_v13 = vpop.f32.mrb[2].mxu0  ;;  %v9918_v18 = vadd.f32 %v7821_v11, %v7451_v3 }
 0x403   : > { %v1328_v14 = vpop.f32.mrb[3].mxu0  ;;  %v9932_v19 = vadd.f32 %v7451_v3, %v1436_v12  ;;  %v9948_v21 = vadd.f32 %v7783_v13, %v7450_v7 }
 0x404   : > { %v9938_v20 = vadd.f32 %v7450_v7, %v1328_v14 }
 0x405   : > { %2153 = vrot.lane.b32.xlu0 %v9888_v8, %s9060_s27  ;;  %1557 = vrot.lane.b32.xlu1 %v9894_v10, %s9059_s18 }
 0x409   : > { %1569 = vrot.lane.b32.xlu0 %v9894_v10, %s9060_s27  ;;  %1581 = vrot.lane.b32.xlu1 %v9894_v10, %s9058_s9 }
 0x40d   : > { %2143 = vrot.lane.b32.xlu0 %v9904_v15, %s9059_s18  ;;  %2155 = vrot.lane.b32.xlu1 %v9904_v15, %s9060_s27 }
 0x411   : > { %2167 = vrot.lane.b32.xlu0 %v9904_v15, %s9058_s9  ;;  %1559 = vrot.lane.b32.xlu1 %v9910_v16, %s9059_s18 }
 0x415   : > { %1571 = vrot.lane.b32.xlu0 %v9910_v16, %s9060_s27  ;;  %1583 = vrot.lane.b32.xlu1 %v9910_v16, %s9058_s9 }
 0x419   : > { %2147 = vrot.lane.b32.xlu0 %v9918_v18, %s9059_s18  ;;  %2159 = vrot.lane.b32.xlu1 %v9918_v18, %s9060_s27 }
 0x41d   : > { %2145 = vrot.lane.b32.xlu0 %v9932_v19, %s9059_s18  ;;  %2157 = vrot.lane.b32.xlu1 %v9932_v19, %s9060_s27 }
 0x41e   : > { %v7856_v22 = vpop.f32.mrb[4].mxu0 }
 0x41f   : > { %v9963_v24 = vadd.f32 %v7856_v22, %v7452_v23  ;;  %v1534_v25 = vpop.f32.mrb[5].mxu0 }
 0x420   : > { %v9971_v29 = vadd.f32 %v7452_v23, %v1534_v25 }
 0x421   : > { %2169 = vrot.lane.b32.xlu0 %v9932_v19, %s9058_s9  ;;  %1561 = vrot.lane.b32.xlu1 %v9938_v20, %s9059_s18 }
 0x422   : > { %v7859_v26 = vpop.f32.mrb[6].mxu0 }
 0x423   : > { %v9969_v27 = vadd.f32 %v7859_v26, %v7452_v23  ;;  %v1544_v28 = vpop.f32.mrb[7].mxu0 }
 0x424   : > { %v9977_v30 = vadd.f32 %v7452_v23, %v1544_v28 }
 0x425   : > { %1573 = vrot.lane.b32.xlu0 %v9938_v20, %s9060_s27  ;;  %1585 = vrot.lane.b32.xlu1 %v9938_v20, %s9058_s9 }
 0x429   : > { %2171 = vrot.lane.b32.xlu0 %v9918_v18, %s9058_s9  ;;  %1563 = vrot.lane.b32.xlu1 %v9948_v21, %s9059_s18 }
 0x42d   : > { %1575 = vrot.lane.b32.xlu0 %v9948_v21, %s9060_s27  ;;  %1587 = vrot.lane.b32.xlu1 %v9948_v21, %s9058_s9 }
 0x431   : > { %2739 = vrot.lane.b32.xlu1 %v9963_v24, %s9060_s27  ;;  %2727 = vrot.lane.b32.xlu0 %v9963_v24, %s9059_s18 }
 0x435   : > { %2751 = vrot.lane.b32.xlu1 %v9963_v24, %s9058_s9  ;;  %2737 = vrot.lane.b32.xlu0 %v9971_v29, %s9060_s27 }
 0x439   : > { %2725 = vrot.lane.b32.xlu1 %v9971_v29, %s9059_s18  ;;  %2741 = vrot.lane.b32.xlu0 %v9977_v30, %s9060_s27 }
 0x43d   : > { %2749 = vrot.lane.b32.xlu1 %v9971_v29, %s9058_s9 }
 0x441   : > { %2729 = vrot.lane.b32.xlu1 %v9977_v30, %s9059_s18 }
 0x445   : > { %2753 = vrot.lane.b32.xlu1 %v9977_v30, %s9058_s9 }
 0x473   : > { %v2166_v38 = vpop.permute.xlu1 %2165  ;;  %v2142_v39 = vpop.permute.xlu0 %2141 }
 0x474   : > { %v2193_v42 = vcombine.low %v2142_v39, %v2166_v38  ;;  %v2194_v43 = vcombine.high %v2142_v39, %v2166_v38 }
 0x476   : > { %v2201_v49 = vrot.slane %v2193_v42, %v9992_v41  ;;  %v2208_v50 = vrot.slane %v2194_v43, %v9992_v41 }
 0x477   : > { %v2154_v44 = vpop.permute.xlu0 %2153  ;;  %v1558_v45 = vpop.permute.xlu1 %1557 }
 0x478   : > { %v2177_v46 = vcombine.low %v9888_v8, %v2154_v44  ;;  %v2178_v47 = vcombine.high %v9888_v8, %v2154_v44 }
 0x47a   : > { %v2185_v51 = vrot.slane %v2177_v46, %v9992_v41  ;;  %v2192_v52 = vrot.slane %v2178_v47, %v9992_v41 }
 0x47b   : > { %v1570_v53 = vpop.permute.xlu0 %1569  ;;  %v1582_v54 = vpop.permute.xlu1 %1581 }
 0x47c   : > { %v2209_v55 = vcombine.low %v2185_v51, %v2201_v49  ;;  %v2210_v56 = vcombine.high %v2185_v51, %v2201_v49  ;;  %v2225_v57 = vcombine.low %v2192_v52, %v2208_v50  ;;  %v2226_v58 = vcombine.high %v2192_v52, %v2208_v50 }
 0x47d   : > { %v1593_v59 = vcombine.low %v9894_v10, %v1570_v53  ;;  %v1594_v60 = vcombine.high %v9894_v10, %v1570_v53  ;;  %v1609_v61 = vcombine.low %v1558_v45, %v1582_v54  ;;  %v1610_v62 = vcombine.high %v1558_v45, %v1582_v54 }
 0x47e   : > { %v2217_v63 = vrot.slane %v2209_v55, %v9997_v48  ;;  %v2224_v0 = vrot.slane %v2210_v56, %v9997_v48  ;;  %v2233_v1 = vrot.slane %v2225_v57, %v9997_v48  ;;  %v2240_v2 = vrot.slane %v2226_v58, %v9997_v48 }
 0x47f   : > { %v1601_v3 = vrot.slane %v1593_v59, %v9992_v41  ;;  %v1608_v4 = vrot.slane %v1594_v60, %v9992_v41  ;;  %v1617_v5 = vrot.slane %v1609_v61, %v9992_v41  ;;  %v1624_v6 = vrot.slane %v1610_v62, %v9992_v41  ;;  %v2144_v7 = vpop.permute.xlu0 %2143  ;;  %v2156_v8 = vpop.permute.xlu1 %2155 }
 0x480   : > { %v2449_v9 = vcombine.low %v2217_v63, %v2224_v0  ;;  %v7461_v10 = vcombine.high %v2217_v63, %v2224_v0  ;;  %v2465_v11 = vcombine.low %v2233_v1, %v2240_v2  ;;  %v7462_v12 = vcombine.high %v2233_v1, %v2240_v2 }
 0x481   : > { %v1625_v13 = vcombine.low %v1601_v3, %v1617_v5  ;;  %v1626_v14 = vcombine.high %v1601_v3, %v1617_v5  ;;  %v1641_v22 = vcombine.low %v1608_v4, %v1624_v6  ;;  %v1642_v23 = vcombine.high %v1608_v4, %v1624_v6 }
 0x482   : > { %v10018_v34 = vrot.slane %v2449_v9, %v9992_v41  ;;  %v10021_v35 = vrot.slane %v7461_v10, %v9992_v41  ;;  %v10024_v36 = vrot.slane %v2465_v11, %v9992_v41  ;;  %v10027_v38 = vrot.slane %v7462_v12, %v9992_v41 }
 0x483   : > { %v1633_v25 = vrot.slane %v1625_v13, %v9997_v48  ;;  %v1640_v26 = vrot.slane %v1626_v14, %v9997_v48  ;;  %v1649_v28 = vrot.slane %v1641_v22, %v9997_v48  ;;  %v1656_v31 = vrot.slane %v1642_v23, %v9997_v48  ;;  %v2168_v32 = vpop.permute.xlu0 %2167  ;;  %v1560_v33 = vpop.permute.xlu1 %1559 }
 0x484   : > { %v2245_v44 = vcombine.low %v9904_v15, %v2156_v8  ;;  %v2246_v45 = vcombine.high %v9904_v15, %v2156_v8  ;;  %v2261_v46 = vcombine.low %v2144_v7, %v2168_v32  ;;  %v2262_v47 = vcombine.high %v2144_v7, %v2168_v32 }
 0x485   : > { %v1865_v39 = vcombine.low %v1633_v25, %v1640_v26  ;;  %v7453_v40 = vcombine.high %v1633_v25, %v1640_v26  ;;  %v1881_v42 = vcombine.low %v1649_v28, %v1656_v31  ;;  %v7454_v43 = vcombine.high %v1649_v28, %v1656_v31 }
 0x486   : > { %v2253_v55 = vrot.slane %v2245_v44, %v9992_v41  ;;  %v2260_v15 = vrot.slane %v2246_v45, %v9992_v41  ;;  %v2269_v56 = vrot.slane %v2261_v46, %v9992_v41  ;;  %v2276_v57 = vrot.slane %v2262_v47, %v9992_v41 }
 0x487   : > { %v10032_v49 = vrot.slane %v1865_v39, %v9992_v41  ;;  %v10035_v50 = vrot.slane %v7453_v40, %v9992_v41  ;;  %v10038_v51 = vrot.slane %v1881_v42, %v9992_v41  ;;  %v10041_v52 = vrot.slane %v7454_v43, %v9992_v41  ;;  %v1572_v53 = vpop.permute.xlu0 %1571  ;;  %v1584_v54 = vpop.permute.xlu1 %1583 }
 0x488   : > { %v2481_v58 = vcombine.low %v10018_v34, %v10021_v35  ;;  %v2497_v59 = vcombine.low %v10024_v36, %v10027_v38  ;;  %v2277_v60 = vcombine.low %v2253_v55, %v2269_v56  ;;  %v2278_v61 = vcombine.high %v2253_v55, %v2269_v56 }
 0x489   : > { %v2293_v62 = vcombine.low %v2260_v15, %v2276_v57  ;;  %v2294_v63 = vcombine.high %v2260_v15, %v2276_v57  ;;  %v1897_v0 = vcombine.low %v10032_v49, %v10035_v50  ;;  %v1913_v1 = vcombine.low %v10038_v51, %v10041_v52 }
 0x48a   : > { %v1661_v2 = vcombine.low %v9910_v16, %v1572_v53  ;;  %v1662_v3 = vcombine.high %v9910_v16, %v1572_v53  ;;  %v2285_v6 = vrot.slane %v2277_v60, %v9997_v48  ;;  %v2292_v7 = vrot.slane %v2278_v61, %v9997_v48 }
 0x48b   : > { %v10057_v4 = vpop.permute.xlu0 %2147  ;;  %v2160_v5 = vpop.permute.xlu1 %2159  ;;  %v2301_v8 = vrot.slane %v2293_v62, %v9997_v48  ;;  %v2308_v9 = vrot.slane %v2294_v63, %v9997_v48  ;;  %v1677_v12 = vcombine.low %v1560_v33, %v1584_v54  ;;  %v1678_v13 = vcombine.high %v1560_v33, %v1584_v54 }
 0x48c   : > { %v1669_v10 = vrot.slane %v1661_v2, %v9992_v41  ;;  %v1676_v11 = vrot.slane %v1662_v3, %v9992_v41  ;;  %v2517_v14 = vcombine.low %v2285_v6, %v2292_v7  ;;  %v7463_v16 = vcombine.high %v2285_v6, %v2292_v7 }
 0x48d   : > { %v2533_v22 = vcombine.low %v2301_v8, %v2308_v9  ;;  %v7464_v23 = vcombine.high %v2301_v8, %v2308_v9  ;;  %v2482_v25 = vcombine.high %v10018_v34, %v10021_v35  ;;  %v2498_v26 = vcombine.high %v10024_v36, %v10027_v38 }
 0x48e   : > { %v1685_v28 = vrot.slane %v1677_v12, %v9992_v41  ;;  %v1692_v31 = vrot.slane %v1678_v13, %v9992_v41  ;;  %v1905_v40 = vrot.slane %v1897_v0, %v9997_v48  ;;  %v1921_v33 = vrot.slane %v1913_v1, %v9997_v48 }
 0x48f   : > { %v10071_v32 = vpop.permute.xlu0 %2145  ;;  %v2158_v39 = vpop.permute.xlu1 %2157  ;;  %v2489_v42 = vrot.slane %v2481_v58, %v9997_v48  ;;  %v2505_v43 = vrot.slane %v2497_v59, %v9997_v48  ;;  %v10078_v36 = vrot.slane %v2517_v14, %v9992_v41  ;;  %v10081_v38 = vrot.slane %v7463_v16, %v9992_v41 }
 0x490   : > { %v1693_v44 = vcombine.low %v1669_v10, %v1685_v28  ;;  %v1694_v34 = vcombine.high %v1669_v10, %v1685_v28  ;;  %v1709_v35 = vcombine.low %v1676_v11, %v1692_v31  ;;  %v1710_v45 = vcombine.high %v1676_v11, %v1692_v31 }
 0x491   : > { %v10084_v46 = vrot.slane %v2533_v22, %v9992_v41  ;;  %v10087_v47 = vrot.slane %v7464_v23, %v9992_v41  ;;  %v1898_v57 = vcombine.high %v10032_v49, %v10035_v50  ;;  %v2513_v58 = vcombine.low %v2489_v42, %v2505_v43 }
 0x492   : > { %v1701_v53 = vrot.slane %v1693_v44, %v9997_v48  ;;  %v1708_v54 = vrot.slane %v1694_v34, %v9997_v48  ;;  %v10092_v55 = vrot.slane %v1709_v35, %v9997_v48  ;;  %v1724_v15 = vrot.slane %v1710_v45, %v9997_v48 }
 0x493   : > { %v2170_v56 = vpop.permute.xlu0 %2169  ;;  %v2381_v59 = vcombine.low %v9918_v18, %v2160_v5  ;;  %v2382_v60 = vcombine.high %v9918_v18, %v2160_v5  ;;  %v1562_v61 = vpop.permute.xlu1 %1561  ;;  %v1929_v1 = vcombine.low %v1905_v40, %v1921_v33  ;;  %v1914_v2 = vcombine.high %v10038_v51, %v10041_v52  ;;  %7861 = vmatpush3.xpose.msk.msra.mxu1 %vm3333_vm1, %v2513_v58 }
 0x494   : > { %v1933_v62 = vcombine.low %v1701_v53, %v1708_v54  ;;  %v7455_v63 = vcombine.high %v1701_v53, %v1708_v54  ;;  %v1949_v0 = vcombine.low %v10092_v55, %v1724_v15  ;;  %v2549_v3 = vcombine.low %v10078_v36, %v10081_v38  ;;  %7865 = vmatprep.subr.mxu1 %v9061_v17 }
 0x495   : > { %v2550_v49 = vcombine.high %v10078_v36, %v10081_v38  ;;  %v2313_v50 = vcombine.low %v9932_v19, %v2158_v39  ;;  %v2565_v18 = vcombine.low %v10084_v46, %v10087_v47  ;;  %v2566_v5 = vcombine.high %v10084_v46, %v10087_v47 }
 0x496   : > { %v7456_v6 = vcombine.high %v10092_v55, %v1724_v15  ;;  %v10114_v51 = vrot.slane %v2381_v59, %v9992_v41  ;;  %v10118_v52 = vrot.slane %v2382_v60, %v9992_v41  ;;  %v2514_v7 = vcombine.high %v2489_v42, %v2505_v43  ;;  %7863 = vmatmul.mubr.msk.f32.vlgmr.msra.gmra.mrb[4].mxu1 %vm3333_vm1, %v1929_v1 }
 0x497   : > { %v2314_v8 = vcombine.high %v9932_v19, %v2158_v39  ;;  %v2496_v9 = vrot.slane %v2482_v25, %v9997_v48  ;;  %v1574_v10 = vpop.permute.xlu0 %1573  ;;  %v10123_v11 = vrot.slane %v1933_v62, %v9992_v41  ;;  %v10126_v12 = vrot.slane %v7455_v63, %v9992_v41  ;;  %7867 = vmatprep.mubr.msk.f32.mxu1 %vm9062_vm0, %v9061_v17  ;;  %v1586_v23 = vpop.permute.xlu1 %1585 }
 0x498   : > { %v10129_v13 = vrot.slane %v1949_v0, %v9992_v41  ;;  %v2321_v14 = vrot.slane %v2313_v50, %v9992_v41  ;;  %7866 = vmatpush3.xpose.msk.msra.mxu1 %vm3333_vm1, %v2514_v7  ;;  %v1930_v19 = vcombine.high %v1905_v40, %v1921_v33  ;;  %v2512_v16 = vrot.slane %v2498_v26, %v9997_v48 }
 0x499   : > { %v2329_v22 = vcombine.low %v10071_v32, %v2170_v56  ;;  %7870 = vmatprep.subr.mxu1 %v9061_v17  ;;  %v2330_v25 = vcombine.high %v10071_v32, %v2170_v56  ;;  %v1912_v28 = vrot.slane %v1898_v57, %v9997_v48  ;;  %v1928_v31 = vrot.slane %v1914_v2, %v9997_v48 }
 0x49a   : > { %v1729_v39 = vcombine.low %v9938_v20, %v1574_v10  ;;  %v2328_v42 = vrot.slane %v2314_v8, %v9992_v41  ;;  %v2515_v43 = vcombine.low %v2496_v9, %v2512_v16  ;;  %v1730_v26 = vcombine.high %v9938_v20, %v1574_v10 }
 0x49b   : > { %v2337_v40 = vrot.slane %v2329_v22, %v9992_v41  ;;  %7868 = vmatmul.mubr.msk.f32.vlgmr.msra.gmra.mrb[6].mxu1 %vm3333_vm1, %v1930_v19  ;;  %v2344_v33 = vrot.slane %v2330_v25, %v9992_v41  ;;  %v1931_v44 = vcombine.low %v1912_v28, %v1928_v31  ;;  %v1745_v34 = vcombine.low %v1562_v61, %v1586_v23  ;;  %v2172_v19 = vpop.permute.xlu0 %2171 }
 0x49c   : > { %v1737_v32 = vrot.slane %v1729_v39, %v9992_v41  ;;  %7871 = vmatpush3.xpose.msk.msra.mxu1 %vm3333_vm1, %v2515_v43  ;;  %7872 = vmatprep.mubr.msk.f32.mxu1 %vm9062_vm0, %v9061_v17  ;;  %v1744_v53 = vrot.slane %v1730_v26, %v9992_v41  ;;  %v1746_v20 = vcombine.high %v1562_v61, %v1586_v23  ;;  %v1564_v43 = vpop.permute.xlu1 %1563 }
 0x49d   : > { %v2345_v35 = vcombine.low %v2321_v14, %v2337_v40  ;;  %v2346_v45 = vcombine.high %v2321_v14, %v2337_v40  ;;  %v2361_v54 = vcombine.low %v2328_v42, %v2344_v33  ;;  %v2362_v55 = vcombine.high %v2328_v42, %v2344_v33  ;;  %7875 = vmatprep.subr.mxu1 %v9061_v17 }
 0x49e   : > { %v1753_v15 = vrot.slane %v1745_v34, %v9992_v41  ;;  %v10156_v56 = vrot.slane %v7456_v6, %v9992_v41  ;;  %v2516_v59 = vcombine.high %v2496_v9, %v2512_v16  ;;  %v1760_v60 = vrot.slane %v1746_v20, %v9992_v41 }
 0x49f   : > { %v2353_v57 = vrot.slane %v2345_v35, %v9997_v48  ;;  %v2360_v58 = vrot.slane %v2346_v45, %v9997_v48  ;;  %7873 = vmatmul.mubr.msk.f32.vlgmr.msra.gmra.mrb[8].mxu1 %vm3333_vm1, %v1931_v44  ;;  %v1932_v63 = vcombine.high %v1912_v28, %v1928_v31  ;;  %v10163_v0 = vrot.slane %v2549_v3, %v9997_v48 }
 0x4a0   : > { %v1761_v62 = vcombine.low %v1737_v32, %v1753_v15  ;;  %v2369_v61 = vrot.slane %v2361_v54, %v9997_v48  ;;  %v2376_v1 = vrot.slane %v2362_v55, %v9997_v48  ;;  %7876 = vmatpush3.xpose.msk.msra.mxu1 %vm3333_vm1, %v2516_v59  ;;  %v1762_v2 = vcombine.high %v1737_v32, %v1753_v15  ;;  %v1576_v59 = vpop.permute.xlu0 %1575 }
 0x4a1   : > { %7877 = vmatprep.mubr.msk.f32.mxu1 %vm9062_vm0, %v9061_v17  ;;  %v2585_v50 = vcombine.low %v2353_v57, %v2360_v58  ;;  %v7465_v6 = vcombine.high %v2353_v57, %v2360_v58  ;;  %v1777_v8 = vcombine.low %v1744_v53, %v1760_v60  ;;  %7880 = vmatprep.subr.mxu1 %v9061_v17 }
 0x4a2   : > { %v1769_v7 = vrot.slane %v1761_v62, %v9997_v48  ;;  %v1965_v3 = vcombine.low %v10123_v11, %v10126_v12  ;;  %v1966_v9 = vcombine.high %v10123_v11, %v10126_v12  ;;  %v1776_v10 = vrot.slane %v1762_v2, %v9997_v48 }
 0x4a3   : > { %v1778_v14 = vcombine.high %v1744_v53, %v1760_v60  ;;  %v1981_v16 = vcombine.low %v10129_v13, %v10156_v56  ;;  %v1982_v22 = vcombine.high %v10129_v13, %v10156_v56  ;;  %v1785_v23 = vrot.slane %v1777_v8, %v9997_v48  ;;  %7878 = vmatmul.mubr.msk.f32.vlgmr.msra.gmra.mrb[10].mxu1 %vm3333_vm1, %v1932_v63 }
 0x4a4   : > { %v2573_v25 = vrot.slane %v2565_v18, %v9997_v48  ;;  %v2601_v28 = vcombine.low %v2369_v61, %v2376_v1  ;;  %v7466_v31 = vcombine.high %v2369_v61, %v2376_v1  ;;  %v2001_v42 = vcombine.low %v1769_v7, %v1776_v10  ;;  %7882 = vmatprep.mubr.msk.f32.mxu1 %vm9062_vm0, %v9061_v17 }
 0x4a5   : > { %v1792_v39 = vrot.slane %v1778_v14, %v9997_v48  ;;  %v10191_v40 = vrot.slane %v2585_v50, %v9992_v41  ;;  %v10194_v26 = vrot.slane %v7465_v6, %v9992_v41  ;;  %v7457_v33 = vcombine.high %v1769_v7, %v1776_v10  ;;  %v1588_v6 = vpop.permute.xlu1 %1587 }
 0x4a6   : > { %v2581_v44 = vcombine.low %v10163_v0, %v2573_v25  ;;  %v10198_v18 = vrot.slane %v2001_v42, %v9992_v41  ;;  %v2397_v35 = vcombine.low %v10057_v4, %v2172_v19  ;;  %v2398_v53 = vcombine.high %v10057_v4, %v2172_v19 }
 0x4a7   : > { %v2017_v32 = vcombine.low %v1785_v23, %v1792_v39  ;;  %v7458_v34 = vcombine.high %v1785_v23, %v1792_v39  ;;  %v10202_v45 = vrot.slane %v7457_v33, %v9992_v41  ;;  %v1973_v54 = vrot.slane %v1965_v3, %v9997_v48 }
 0x4a8   : > { %7881 = vmatpush3.xpose.msk.msra.mxu1 %vm3333_vm1, %v2581_v44  ;;  %v1989_v55 = vrot.slane %v1981_v16, %v9997_v48  ;;  %v10209_v20 = vrot.slane %v2601_v28, %v9992_v41  ;;  %v2405_v58 = vrot.slane %v2397_v35, %v9992_v41  ;;  %v10220_v4 = vrot.slane %v7466_v31, %v9992_v41 }
 0x4a9   : > { %v10212_v15 = vrot.slane %v2017_v32, %v9992_v41  ;;  %v10215_v57 = vrot.slane %v7458_v34, %v9992_v41  ;;  %7885 = vmatprep.subr.mxu1 %v9061_v17  ;;  %v2617_v60 = vcombine.low %v10191_v40, %v10194_v26  ;;  %v2412_v62 = vrot.slane %v2398_v53, %v9992_v41 }
 0x4aa   : > { %v1997_v63 = vcombine.low %v1973_v54, %v1989_v55  ;;  %v2618_v61 = vcombine.high %v10191_v40, %v10194_v26  ;;  %v2413_v1 = vcombine.low %v10114_v51, %v2405_v58  ;;  %v2414_v2 = vcombine.high %v10114_v51, %v2405_v58 }
 0x4ab   : > { %v2582_v50 = vcombine.high %v10163_v0, %v2573_v25  ;;  %v2033_v7 = vcombine.low %v10198_v18, %v10202_v45  ;;  %v2429_v8 = vcombine.low %v10118_v52, %v2412_v62  ;;  %v2430_v3 = vcombine.high %v10118_v52, %v2412_v62 }
 0x4ac   : > { %7883 = vmatmul.mubr.msk.f32.vlgmr.msra.gmra.mrb[12].mxu1 %vm3333_vm1, %v1997_v63  ;;  %v1797_v10 = vcombine.low %v9948_v21, %v1576_v59  ;;  %v2049_v14 = vcombine.low %v10212_v15, %v10215_v57  ;;  %v2421_v19 = vrot.slane %v2413_v1, %v9997_v48  ;;  %v2428_v51 = vrot.slane %v2414_v2, %v9997_v48 }
 0x4ad   : > { %7886 = vmatpush3.xpose.msk.msra.mxu1 %vm3333_vm1, %v2582_v50  ;;  %v1798_v0 = vcombine.high %v9948_v21, %v1576_v59  ;;  %v2437_v16 = vrot.slane %v2429_v8, %v9997_v48  ;;  %v2444_v23 = vrot.slane %v2430_v3, %v9997_v48  ;;  %v1813_v25 = vcombine.low %v1564_v43, %v1588_v6 }
 0x4ae   : > { %v1805_v52 = vrot.slane %v1797_v10, %v9992_v41  ;;  %7887 = vmatprep.mubr.msk.f32.mxu1 %vm9062_vm0, %v9061_v17  ;;  %v2653_v28 = vcombine.low %v2421_v19, %v2428_v51  ;;  %v7467_v31 = vcombine.high %v2421_v19, %v2428_v51  ;;  %v1814_v42 = vcombine.high %v1564_v43, %v1588_v6 }
 0x4af   : > { %v1812_v39 = vrot.slane %v1798_v0, %v9992_v41  ;;  %7890 = vmatprep.subr.mxu1 %v9061_v17  ;;  %v2669_v33 = vcombine.low %v2437_v16, %v2444_v23  ;;  %v7468_v44 = vcombine.high %v2437_v16, %v2444_v23  ;;  %v1821_v21 = vrot.slane %v1813_v25, %v9992_v41 }
 0x4b0   : > { %v1998_v32 = vcombine.high %v1973_v54, %v1989_v55  ;;  %v2633_v34 = vcombine.low %v10209_v20, %v10220_v4  ;;  %v2634_v35 = vcombine.high %v10209_v20, %v10220_v4  ;;  %v10255_v53 = vrot.slane %v2033_v7, %v9997_v48 }
 0x4b1   : > { %v1828_v58 = vrot.slane %v1814_v42, %v9992_v41  ;;  %v10259_v43 = vrot.slane %v2049_v14, %v9997_v48  ;;  %v10262_v59 = vrot.slane %v2653_v28, %v9992_v41  ;;  %v1829_v62 = vcombine.low %v1805_v52, %v1821_v21 }
 0x4b2   : > { %v1830_v63 = vcombine.high %v1805_v52, %v1821_v21  ;;  %7888 = vmatmul.mubr.msk.f32.vlgmr.msra.gmra.mrb[14].mxu1 %vm3333_vm1, %v1998_v32  ;;  %v10266_v54 = vrot.slane %v7467_v31, %v9992_v41  ;;  %v2564_v4 = vrot.slane %v2550_v49, %v9997_v48  ;;  %v10275_v1 = vrot.slane %v2669_v33, %v9992_v41 }
 0x4b3   : > { %v1845_v55 = vcombine.low %v1812_v39, %v1828_v58  ;;  %v1846_v20 = vcombine.high %v1812_v39, %v1828_v58  ;;  %7892 = vmatprep.mubr.msk.f32.mxu1 %vm9062_vm0, %v9061_v17  ;;  %v10278_v2 = vrot.slane %v7468_v44, %v9992_v41  ;;  %v1837_v50 = vrot.slane %v1829_v62, %v9997_v48 }
 0x4b4   : > { %v1844_v6 = vrot.slane %v1830_v63, %v9997_v48  ;;  %v2580_v36 = vrot.slane %v2566_v5, %v9997_v48  ;;  %v1980_v38 = vrot.slane %v1966_v9, %v9997_v48  ;;  %v1996_v10 = vrot.slane %v1982_v22, %v9997_v48 }
 0x4b5   : > { %v1853_v7 = vrot.slane %v1845_v55, %v9997_v48  ;;  %v1860_v8 = vrot.slane %v1846_v20, %v9997_v48  ;;  %v2625_v14 = vrot.slane %v2617_v60, %v9997_v48  ;;  %v2034_v19 = vcombine.high %v10198_v18, %v10202_v45 }
 0x4b6   : > { %v2069_v49 = vcombine.low %v1837_v50, %v1844_v6  ;;  %v7459_v3 = vcombine.high %v1837_v50, %v1844_v6  ;;  %v2583_v47 = vcombine.low %v2564_v4, %v2580_v36  ;;  %v2050_v5 = vcombine.high %v10212_v15, %v10215_v57 }
 0x4b7   : > { %v2085_v51 = vcombine.low %v1853_v7, %v1860_v8  ;;  %v7460_v46 = vcombine.high %v1853_v7, %v1860_v8  ;;  %v2641_v9 = vrot.slane %v2633_v34, %v9997_v48  ;;  %v2685_v13 = vcombine.low %v10262_v59, %v10266_v54 }
 0x4b8   : > { %v2076_v11 = vrot.slane %v2069_v49, %v9992_v41  ;;  %v2084_v12 = vrot.slane %v7459_v3, %v9992_v41  ;;  %v2701_v56 = vcombine.low %v10275_v1, %v10278_v2  ;;  %7891 = vmatpush3.xpose.msk.msra.mxu1 %vm3333_vm1, %v2583_v47  ;;  %v1999_v45 = vcombine.low %v1980_v38, %v1996_v10 }
 0x4b9   : > { %v2092_v22 = vrot.slane %v2085_v51, %v9992_v41  ;;  %v2100_v18 = vrot.slane %v7460_v46, %v9992_v41  ;;  %7895 = vmatprep.subr.mxu1 %v9061_v17  ;;  %v2584_v15 = vcombine.high %v2564_v4, %v2580_v36  ;;  %v2649_v57 = vcombine.low %v2625_v14, %v2641_v9  ;;  %v2740_v4 = vpop.permute.xlu1 %2739 }
 0x4ba   : > { %v2065_v60 = vcombine.low %v10255_v53, %v10259_v43  ;;  %v2101_v0 = vcombine.low %v2076_v11, %v2084_v12  ;;  %v2632_v23 = vrot.slane %v2618_v61, %v9997_v48  ;;  %v2648_v52 = vrot.slane %v2634_v35, %v9997_v48 }
 0x4bb   : > { %v2117_v16 = vcombine.low %v2092_v22, %v2100_v18  ;;  %v2686_v25 = vcombine.high %v10262_v59, %v10266_v54  ;;  %v2702_v28 = vcombine.high %v10275_v1, %v10278_v2  ;;  %7893 = vmatmul.mubr.msk.f32.vlgmr.msra.gmra.mrb[16].mxu1 %vm3333_vm1, %v1999_v45  ;;  %7901 = vmatpush3.xpose.msk.msra.mxu0 %vm3333_vm1, %v2649_v57 }
 0x4bc   : > { %7896 = vmatpush3.xpose.msk.msra.mxu1 %vm3333_vm1, %v2584_v15  ;;  %7897 = vmatprep.mubr.msk.f32.mxu1 %vm9062_vm0, %v9061_v17  ;;  %v2048_v40 = vrot.slane %v2034_v19, %v9997_v48  ;;  %v2064_v26 = vrot.slane %v2050_v5, %v9997_v48  ;;  %v2693_v61 = vrot.slane %v2685_v13, %v9997_v48 }
 0x4bd   : > { %7905 = vmatprep.subr.mxu1 %v9061_v17  ;;  %7910 = vmatprep.subr.mxu0 %v9061_v17  ;;  %v2000_v31 = vcombine.high %v1980_v38, %v1996_v10  ;;  %v2651_v39 = vcombine.low %v2632_v23, %v2648_v52  ;;  %v2709_v42 = vrot.slane %v2701_v56, %v9997_v48  ;;  %v2752_v38 = vpop.permute.xlu1 %2751 }
 0x4be   : > { %7903 = vmatmul.mubr.msk.f32.vlgmr.msra.gmra.mrb[8].mxu0 %vm3333_vm1, %v2065_v60  ;;  %v2650_v33 = vcombine.high %v2625_v14, %v2641_v9  ;;  %v2109_v44 = vrot.slane %v2101_v0, %v9997_v48  ;;  %v2125_v21 = vrot.slane %v2117_v16, %v9997_v48  ;;  %v2102_v34 = vcombine.high %v2076_v11, %v2084_v12 }
 0x4bf   : > { %7898 = vmatmul.mubr.msk.f32.vlgmr.msra.gmra.mrb[18].mxu1 %vm3333_vm1, %v2000_v31  ;;  %7911 = vmatpush3.xpose.msk.msra.mxu0 %vm3333_vm1, %v2651_v39  ;;  %v2717_v32 = vcombine.low %v2693_v61, %v2709_v42  ;;  %v2118_v35 = vcombine.high %v2092_v22, %v2100_v18  ;;  %v2067_v58 = vcombine.low %v2048_v40, %v2064_v26 }
 0x4c0   : > { %7906 = vmatpush3.xpose.msk.msra.mxu1 %vm3333_vm1, %v2650_v33  ;;  %7907 = vmatprep.mubr.msk.f32.mxu1 %vm9062_vm0, %v9061_v17  ;;  %v2066_v59 = vcombine.high %v10255_v53, %v10259_v43  ;;  %v2700_v62 = vrot.slane %v2686_v25, %v9997_v48  ;;  %v2716_v63 = vrot.slane %v2702_v28, %v9997_v48 }
 0x4c1   : > { %7912 = vmatprep.mubr.msk.f32.mxu0 %vm9062_vm0, %v9061_v17  ;;  %7915 = vmatprep.subr.mxu1 %v9061_v17  ;;  %v2652_v54 = vcombine.high %v2632_v23, %v2648_v52  ;;  %v2133_v55 = vcombine.low %v2109_v44, %v2125_v21  ;;  %v2068_v53 = vcombine.high %v2048_v40, %v2064_v26  ;;  %v2726_v47 = vpop.permute.xlu1 %2725 }
 0x4c2   : > { %7920 = vmatprep.subr.mxu0 %v9061_v17  ;;  %7913 = vmatmul.mubr.msk.f32.vlgmr.msra.gmra.mrb[10].mxu0 %vm3333_vm1, %v2067_v58  ;;  %v2116_v43 = vrot.slane %v2102_v34, %v9997_v48  ;;  %v2132_v20 = vrot.slane %v2118_v35, %v9997_v48  ;;  %v2719_v1 = vcombine.low %v2700_v62, %v2716_v63 }
 0x4c3   : > { %7908 = vmatmul.mubr.msk.f32.vlgmr.msra.gmra.mrb[20].mxu1 %vm3333_vm1, %v2066_v59  ;;  %7921 = vmatpush3.xpose.msk.msra.mxu0 %vm3333_vm1, %v2717_v32  ;;  %v2829_v2 = vcombine.low %v9963_v24, %v2740_v4  ;;  %v2830_v50 = vcombine.high %v9963_v24, %v2740_v4  ;;  %v2718_v6 = vcombine.high %v2693_v61, %v2709_v42  ;;  %v2728_v24 = vpop.permute.xlu0 %2727 }
 0x4c4   : > { %7916 = vmatpush3.xpose.msk.msra.mxu1 %vm3333_vm1, %v2652_v54  ;;  %7917 = vmatprep.mubr.msk.f32.mxu1 %vm9062_vm0, %v9061_v17  ;;  %v2134_v7 = vcombine.high %v2109_v44, %v2125_v21  ;;  %v2135_v8 = vcombine.low %v2116_v43, %v2132_v20  ;;  %v2845_v3 = vcombine.low %v2728_v24, %v2752_v38 }
 0x4c5   : > { %7922 = vmatprep.mubr.msk.f32.mxu0 %vm9062_vm0, %v9061_v17  ;;  %7925 = vmatprep.subr.mxu1 %v9061_v17  ;;  %v2837_v36 = vrot.slane %v2829_v2, %v9992_v41  ;;  %v2844_v49 = vrot.slane %v2830_v50, %v9992_v41  ;;  %v2846_v10 = vcombine.high %v2728_v24, %v2752_v38  ;;  %v2750_v15 = vpop.permute.xlu1 %2749 }
 0x4c6   : > { %7930 = vmatprep.subr.mxu0 %v9061_v17  ;;  %7923 = vmatmul.mubr.msk.f32.vlgmr.msra.gmra.mrb[12].mxu0 %vm3333_vm1, %v2133_v55  ;;  %v2720_v14 = vcombine.high %v2700_v62, %v2716_v63  ;;  %v2853_v19 = vrot.slane %v2845_v3, %v9992_v41  ;;  %v2136_v46 = vcombine.high %v2116_v43, %v2132_v20 }
 0x4c7   : > { %7918 = vmatmul.mubr.msk.f32.vlgmr.msra.gmra.mrb[22].mxu1 %vm3333_vm1, %v2068_v53  ;;  %7931 = vmatpush3.xpose.msk.msra.mxu0 %vm3333_vm1, %v2719_v1  ;;  %v2860_v51 = vrot.slane %v2846_v10, %v9992_v41  ;;  %v2738_v45 = vpop.permute.xlu0 %2737  ;;  %v2777_v25 = vcombine.low %v2726_v47, %v2750_v15  ;;  %v2778_v28 = vcombine.high %v2726_v47, %v2750_v15 }
 0x4c8   : > { %7926 = vmatpush3.xpose.msk.msra.mxu1 %vm3333_vm1, %v2718_v6  ;;  %7927 = vmatprep.mubr.msk.f32.mxu1 %vm9062_vm0, %v9061_v17  ;;  %v2861_v5 = vcombine.low %v2837_v36, %v2853_v19  ;;  %v2862_v11 = vcombine.high %v2837_v36, %v2853_v19  ;;  %v2761_v23 = vcombine.low %v9971_v29, %v2738_v45 }
 0x4c9   : > { %7932 = vmatprep.mubr.msk.f32.mxu0 %vm9062_vm0, %v9061_v17  ;;  %7935 = vmatprep.subr.mxu1 %v9061_v17  ;;  %v2877_v12 = vcombine.low %v2844_v49, %v2860_v51  ;;  %v2878_v9 = vcombine.high %v2844_v49, %v2860_v51  ;;  %v2762_v52 = vcombine.high %v9971_v29, %v2738_v45  ;;  %v7477_v45 = vld [vmem:[%s9731_s13] ss:$0 sm:$0xff] }
 0x4ca   : > { %7933 = vmatmul.mubr.msk.f32.vlgmr.msra.gmra.mrb[14].mxu0 %vm3333_vm1, %v2135_v8  ;;  %7940 = vmatprep.subr.mxu0 %v9061_v17  ;;  %v2869_v13 = vrot.slane %v2861_v5, %v9997_v48  ;;  %v2876_v56 = vrot.slane %v2862_v11, %v9997_v48  ;;  %v2769_v40 = vrot.slane %v2761_v23, %v9992_v41 }
 0x4cb   : > { %7928 = vmatmul.mubr.msk.f32.vlgmr.msra.gmra.mrb[24].mxu1 %vm3333_vm1, %v2134_v7  ;;  %7942 = vmatprep.mubr.msk.f32.mxu0 %vm9062_vm0, %v9061_v17  ;;  %v2885_v22 = vrot.slane %v2877_v12, %v9997_v48  ;;  %v2892_v18 = vrot.slane %v2878_v9, %v9997_v48  ;;  %v2776_v26 = vrot.slane %v2762_v52, %v9992_v41 }
 0x4cc   : > { %7936 = vmatpush3.xpose.msk.msra.mxu1 %vm3333_vm1, %v2720_v14  ;;  %7937 = vmatprep.mubr.msk.f32.mxu1 %vm9062_vm0, %v9061_v17  ;;  %v3101_v57 = vcombine.low %v2869_v13, %v2876_v56  ;;  %v7471_v60 = vcombine.high %v2869_v13, %v2876_v56  ;;  %v2785_v61 = vrot.slane %v2777_v25, %v9992_v41 }
 0x4cd   : > { %7945 = vmatprep.subr.mxu1 %v9061_v17  ;;  %v3117_v0 = vcombine.low %v2885_v22, %v2892_v18  ;;  %v7472_v16 = vcombine.high %v2885_v22, %v2892_v18  ;;  %v2792_v31 = vrot.slane %v2778_v28, %v9992_v41 }
 0x4ce   : > { %v2793_v39 = vcombine.low %v2769_v40, %v2785_v61  ;;  %v2794_v42 = vcombine.high %v2769_v40, %v2785_v61  ;;  %v3108_v6 = vrot.slane %v3101_v57, %v9992_v41  ;;  %v3116_v7 = vrot.slane %v7471_v60, %v9992_v41 }
 0x4cf   : > { %7938 = vmatmul.mubr.msk.f32.vlgmr.msra.gmra.mrb[26].mxu1 %vm3333_vm1, %v2136_v46  ;;  %v2809_v33 = vcombine.low %v2776_v26, %v2792_v31  ;;  %v2810_v44 = vcombine.high %v2776_v26, %v2792_v31  ;;  %v3124_v8 = vrot.slane %v3117_v0, %v9992_v41  ;;  %v3132_v36 = vrot.slane %v7472_v16, %v9992_v41  ;;  %v7478_v31 = vld [vmem:[%s9731_s13 + $0x1] ss:$0 sm:$0xff] }
 0x4d0   : > { %7947 = vmatprep.mubr.msk.f32.mxu1 %vm9062_vm0, %v9061_v17  ;;  %v2801_v21 = vrot.slane %v2793_v39, %v9997_v48  ;;  %v2808_v32 = vrot.slane %v2794_v42, %v9997_v48  ;;  %v3133_v49 = vcombine.low %v3108_v6, %v3116_v7  ;;  %v3134_v10 = vcombine.high %v3108_v6, %v3116_v7 }
 0x4d1   : > { %v2817_v29 = vrot.slane %v2809_v33, %v9997_v48  ;;  %v2824_v34 = vrot.slane %v2810_v44, %v9997_v48  ;;  %v3149_v3 = vcombine.low %v3124_v8, %v3132_v36  ;;  %v3150_v14 = vcombine.high %v3124_v8, %v3132_v36 }
 0x4d2   : > { %v3033_v35 = vcombine.low %v2801_v21, %v2808_v32  ;;  %v7469_v58 = vcombine.high %v2801_v21, %v2808_v32  ;;  %v10422_v46 = vrot.slane %v3133_v49, %v9997_v48  ;;  %v10428_v5 = vrot.slane %v3134_v10, %v9997_v48  ;;  %v7480_v49 = vld [vmem:[%s9731_s13 + $0x3] ss:$0 sm:$0xff] }
 0x4d3   : > { %v3049_v59 = vcombine.low %v2817_v29, %v2824_v34  ;;  %v7470_v62 = vcombine.high %v2817_v29, %v2824_v34  ;;  %v10425_v47 = vrot.slane %v3149_v3, %v9997_v48  ;;  %v10431_v11 = vrot.slane %v3150_v14, %v9997_v48 }
 0x4d4   : > { %v3040_v63 = vrot.slane %v3033_v35, %v9992_v41  ;;  %v3048_v54 = vrot.slane %v7469_v58, %v9992_v41  ;;  %v7479_v35 = vld [vmem:[%s9731_s13 + $0x2] ss:$0 sm:$0xff] }
 0x4d5   : > { %v3056_v55 = vrot.slane %v3049_v59, %v9992_v41  ;;  %v3064_v53 = vrot.slane %v7470_v62, %v9992_v41  ;;  %v3165_v13 = vcombine.low %v10422_v46, %v10425_v47  ;;  %v3166_v56 = vcombine.high %v10422_v46, %v10425_v47 }
 0x4d6   : > { %v3065_v43 = vcombine.low %v3040_v63, %v3048_v54  ;;  %v3066_v38 = vcombine.high %v3040_v63, %v3048_v54  ;;  %v3167_v22 = vcombine.low %v10428_v5, %v10431_v11  ;;  %v3168_v18 = vcombine.high %v10428_v5, %v10431_v11 }
 0x4d7   : > { %v3081_v20 = vcombine.low %v3056_v55, %v3064_v53  ;;  %v3082_v24 = vcombine.high %v3056_v55, %v3064_v53 }
 0x4d8   : > { %v3073_v4 = vrot.slane %v3065_v43, %v9997_v48  ;;  %v10416_v19 = vrot.slane %v3066_v38, %v9997_v48 }
 0x4d9   : > { %v3089_v1 = vrot.slane %v3081_v20, %v9997_v48  ;;  %v10419_v51 = vrot.slane %v3082_v24, %v9997_v48 }
 0x4db   : > { %v3097_v2 = vcombine.low %v3073_v4, %v3089_v1  ;;  %v3098_v50 = vcombine.high %v3073_v4, %v3089_v1  ;;  %v3099_v12 = vcombine.low %v10416_v19, %v10419_v51  ;;  %v3100_v9 = vcombine.high %v10416_v19, %v10419_v51 }
 0x4dd   : > { %7941 = vmatpush3.msra.mxu0 %v3097_v2  ;;  %7946 = vmatpush3.msra.mxu1 %v3098_v50 }
 0x4de   : > { %7950 = vmatprep.subr.mxu0 %v9061_v17  ;;  %7955 = vmatprep.subr.mxu1 %v9061_v17 }
 0x569   : > { %v3406_v15 = vpop.f32.mrb[4].mxu1 }
 0x56a   : > { %v10446_v57 = vadd.f32 %v7477_v45, %v3406_v15  ;;  %v7864_v60 = vpop.f32.mrb[5].mxu1 }
 0x56c   : > { %v4551_v0 = vsel %vm4550_vm2, %v10446_v57, -inf }
 0x56d   : > { %4552 = vmax.xlane.f32.xlu0 %v4551_v0 }
 0x56e   : > { %v3482_v16 = vpop.f32.mrb[6].mxu1 }
 0x56f   : > { %v10450_v23 = vadd.f32 %v7477_v45, %v3482_v16  ;;  %v7869_v52 = vpop.f32.mrb[7].mxu1 }
 0x571   : > { %v4554_v25 = vsel %vm4550_vm2, %v10450_v23, -inf }
 0x572   : > { %4555 = vmax.xlane.f32.xlu1 %v4554_v25  ;;  %v3558_v28 = vpop.f32.mrb[8].mxu1 }
 0x573   : > { %v7874_v40 = vpop.f32.mrb[9].mxu1  ;;  %v10462_v55 = vadd.f32 %v7477_v45, %v3558_v28 }
 0x575   : > { %v4557_v50 = vsel %vm4550_vm2, %v10462_v55, -inf }
 0x576   : > { %v3634_v26 = vpop.f32.mrb[10].mxu1 }
 0x577   : > { %v7879_v61 = vpop.f32.mrb[11].mxu1  ;;  %v10470_v38 = vadd.f32 %v7477_v45, %v3634_v26 }
 0x579   : > { %v4560_v52 = vsel %vm4550_vm2, %v10470_v38, -inf }
 0x57f   : > { %v3710_v39 = vpop.f32.mrb[12].mxu1 }
 0x580   : > { %v10455_v42 = vadd.f32 %v7478_v31, %v3710_v39  ;;  %v7884_v33 = vpop.f32.mrb[13].mxu1 }
 0x582   : > { %v4563_v44 = vsel %vm4550_vm2, %v10455_v42, -inf }
 0x583   : > { %4564 = vmax.xlane.f32.xlu1 %v4563_v44 }
 0x585   : > { %v3786_v21 = vpop.f32.mrb[14].mxu1 }
 0x586   : > { %v7889_v32 = vpop.f32.mrb[15].mxu1  ;;  %v10485_v40 = vadd.f32 %v7478_v31, %v3786_v21 }
 0x588   : > { %v4566_v32 = vsel %vm4550_vm2, %v10485_v40, -inf }
 0x58e   : > { %v3862_v29 = vpop.f32.mrb[16].mxu1 }
 0x58f   : > { %v7894_v34 = vpop.f32.mrb[17].mxu1  ;;  %v10477_v0 = vadd.f32 %v7478_v31, %v3862_v29 }
 0x591   : > { %v4014_v58 = vpop.f32.mrb[8].mxu0  ;;  %v4569_v39 = vsel %vm4550_vm2, %v10477_v0, -inf }
 0x592   : > { %v3938_v59 = vpop.f32.mrb[18].mxu1  ;;  %v10460_v62 = vadd.f32 %v7479_v35, %v4014_v58  ;;  %v7904_v63 = vpop.f32.mrb[9].mxu0 }
 0x593   : > { %v7899_v54 = vpop.f32.mrb[19].mxu1  ;;  %v10493_v33 = vadd.f32 %v7478_v31, %v3938_v59  ;;  %v2730_v63 = vpop.permute.xlu1 %2729 }
 0x594   : > { %v4575_v53 = vsel %vm4550_vm2, %v10460_v62, -inf  ;;  %v2742_v54 = vpop.permute.xlu0 %2741 }
 0x595   : > { %4576 = vmax.xlane.f32.xlu0 %v4575_v53  ;;  %v4166_v43 = vpop.f32.mrb[10].mxu0  ;;  %v4572_v34 = vsel %vm4550_vm2, %v10493_v33, -inf }
 0x596   : > { %v4090_v20 = vpop.f32.mrb[20].mxu1  ;;  %v7914_v4 = vpop.f32.mrb[11].mxu0  ;;  %v10466_v2 = vadd.f32 %v7479_v35, %v4166_v43 }
 0x597   : > { %v7909_v1 = vpop.f32.mrb[21].mxu1  ;;  %v10487_v26 = vadd.f32 %v7479_v35, %v4090_v20  ;;  %v2754_v53 = vpop.permute.xlu1 %2753 }
 0x598   : > { %v4581_v24 = vsel %vm4550_vm2, %v10466_v2, -inf }
 0x599   : > { %4558 = vmax.xlane.f32.xlu0 %v4557_v50  ;;  %v4318_v6 = vpop.f32.mrb[12].mxu0  ;;  %v4578_v21 = vsel %vm4550_vm2, %v10487_v26, -inf }
 0x59a   : > { %v4242_v7 = vpop.f32.mrb[22].mxu1  ;;  %v7924_v8 = vpop.f32.mrb[13].mxu0  ;;  %v10479_v16 = vadd.f32 %v7480_v49, %v4318_v6 }
 0x59b   : > { %v7919_v36 = vpop.f32.mrb[23].mxu1  ;;  %v10495_v44 = vadd.f32 %v7479_v35, %v4242_v7 }
 0x59c   : > { %v4587_v61 = vsel %vm4550_vm2, %v10479_v16, -inf  ;;  %v2913_v36 = vcombine.low %v2730_v63, %v2754_v53 }
 0x59d   : > { %4582 = vmax.xlane.f32.xlu0 %v4581_v24  ;;  %v4470_v3 = vpop.f32.mrb[14].mxu0  ;;  %v4584_v58 = vsel %vm4550_vm2, %v10495_v44, -inf  ;;  %v2898_v24 = vcombine.high %v9977_v30, %v2742_v54 }
 0x59e   : > { %v4394_v10 = vpop.f32.mrb[24].mxu1  ;;  %v10475_v14 = vadd.f32 %v7480_v49, %v4470_v3  ;;  %v7934_v15 = vpop.f32.mrb[15].mxu0  ;;  %v2921_v19 = vrot.slane %v2913_v36, %v9992_v41 }
 0x59f   : > { %v7929_v60 = vpop.f32.mrb[25].mxu1  ;;  %v10501_v29 = vadd.f32 %v7480_v49, %v4394_v10  ;;  %v2912_v51 = vrot.slane %v2898_v24, %v9992_v41 }
 0x5a0   : > { %v4593_v45 = vsel %vm4550_vm2, %v10475_v14, -inf }
 0x5a1   : > { %4561 = vmax.xlane.f32.xlu0 %v4560_v52  ;;  %4594 = vmax.xlane.f32.xlu1 %v4593_v45  ;;  %v4590_v35 = vsel %vm4550_vm2, %v10501_v29, -inf }
 0x5a2   : > { %v4546_v25 = vpop.f32.mrb[26].mxu1 }
 0x5a3   : > { %v7939_v28 = vpop.f32.mrb[27].mxu1  ;;  %v10507_v31 = vadd.f32 %v7480_v49, %v4546_v25  ;;  %v2914_v49 = vcombine.high %v2730_v63, %v2754_v53 }
 0x5a5   : > { %4588 = vmax.xlane.f32.xlu0 %v4587_v61  ;;  %4570 = vmax.xlane.f32.xlu1 %v4569_v39  ;;  %v4596_v59 = vsel %vm4550_vm2, %v10507_v31, -inf }
 0x5a9   : > { %4567 = vmax.xlane.f32.xlu0 %v4566_v32  ;;  %4579 = vmax.xlane.f32.xlu1 %v4578_v21 }
 0x5ad   : > { %4573 = vmax.xlane.f32.xlu0 %v4572_v34  ;;  %4585 = vmax.xlane.f32.xlu1 %v4584_v58 }
 0x5b1   : > { %4591 = vmax.xlane.f32.xlu0 %v4590_v35 }
 0x5b5   : > { %4597 = vmax.xlane.f32.xlu0 %v4596_v59 }
 0x5be   : > { %2743 = vrot.lane.b32.xlu1 %v9969_v27, %s9060_s27 }
 0x5c2   : > { %2755 = vrot.lane.b32.xlu1 %v9969_v27, %s9058_s9 }
 0x5cb   : > { %2731 = vrot.lane.b32.xlu0 %v9969_v27, %s9059_s18 }
 0x5fa   : > { %v4553_v43 = vpop.xlane.xlu0 %4552 }
 0x5fb   : > { %v4599_v20 = vsub.f32 %v10446_v57, %v4553_v43 }
 0x5fd   : > { %v4615_v4 = vmul.f32 1.442695, %v4599_v20 }
 0x5ff   : > { %v4556_v1 = vpop.xlane.xlu1 %4555  ;;  %8486 = vpow2.f32 %v4615_v4 }
 0x600   : > { %v4600_v50 = vsub.f32 %v10450_v23, %v4556_v1 }
 0x602   : > { %v4617_v6 = vmul.f32 1.442695, %v4600_v50 }
 0x604   : > { %8488 = vpow2.f32 %v4617_v6 }
 0x609   : > { %v8487_v7 = vpop.eup %8486 }
 0x60a   : > { %7943 = vmatmul.mubr.msk.f32.vlgmr.msra.gmra.mrb[16].mxu0 %vm4550_vm2, %v8487_v7  ;;  %v4647_v8 = vsel %vm4550_vm2, %v8487_v7, 0.0 }
 0x60b   : > { %7951 = vmatpush3.msra.mxu0 %v3099_v12  ;;  %4648 = vadd.xlane.f32.xlu0 %v4647_v8  ;;  %v2897_v12 = vcombine.low %v9977_v30, %v2742_v54 }
 0x60c   : > { %7952 = vmatprep.mubr.msk.f32.mxu0 %vm9062_vm0, %v9061_v17  ;;  %7960 = vmatprep.subr.mxu0 %v9061_v17 }
 0x60d   : > { %v2905_v60 = vrot.slane %v2897_v12, %v9992_v41 }
 0x60e   : > { %v8489_v57 = vpop.eup %8488 }
 0x60f   : > { %7948 = vmatmul.mubr.msk.f32.vlgmr.msra.gmra.mrb[28].mxu1 %vm4550_vm2, %v8489_v57  ;;  %v4650_v23 = vsel %vm4550_vm2, %v8489_v57, 0.0  ;;  %v2929_v28 = vcombine.low %v2905_v60, %v2921_v19  ;;  %v2930_v61 = vcombine.high %v2905_v60, %v2921_v19 }
 0x610   : > { %7956 = vmatpush3.msra.mxu1 %v3100_v9  ;;  %4651 = vadd.xlane.f32.xlu1 %v4650_v23  ;;  %v4565_v10 = vpop.xlane.xlu1 %4564  ;;  %v2928_v9 = vrot.slane %v2914_v49, %v9992_v41 }
 0x611   : > { %7957 = vmatprep.mubr.msk.f32.mxu1 %vm9062_vm0, %v9061_v17  ;;  %7965 = vmatprep.subr.mxu1 %v9061_v17  ;;  %v4603_v45 = vsub.f32 %v10455_v42, %v4565_v10  ;;  %v2937_v35 = vrot.slane %v2929_v28, %v9997_v48  ;;  %v2944_v59 = vrot.slane %v2930_v61, %v9997_v48 }
 0x612   : > { %v2945_v39 = vcombine.low %v2912_v51, %v2928_v9  ;;  %v2946_v32 = vcombine.high %v2912_v51, %v2928_v9 }
 0x613   : > { %v4623_v21 = vmul.f32 1.442695, %v4603_v45  ;;  %v3169_v4 = vcombine.low %v2937_v35, %v2944_v59  ;;  %v7473_v1 = vcombine.high %v2937_v35, %v2944_v59 }
 0x614   : > { %v2953_v42 = vrot.slane %v2945_v39, %v9997_v48  ;;  %v2960_v63 = vrot.slane %v2946_v32, %v9997_v48 }
 0x615   : > { %v3184_v24 = vrot.slane %v7473_v1, %v9992_v41 }
 0x616   : > { %v7474_v6 = vcombine.high %v2953_v42, %v2960_v63 }
 0x618   : > { %v3200_v10 = vrot.slane %v7474_v6, %v9992_v41 }
 0x622   : > { %v4577_v3 = vpop.xlane.xlu0 %4576 }
 0x623   : > { %v4607_v15 = vsub.f32 %v10460_v62, %v4577_v3 }
 0x625   : > { %v4631_v52 = vmul.f32 1.442695, %v4607_v15 }
 0x626   : > { %v4559_v25 = vpop.xlane.xlu0 %4558 }
 0x627   : > { %8490 = vpow2.f32 %v4631_v52  ;;  %v4601_v30 = vsub.f32 %v10462_v55, %v4559_v25 }
 0x629   : > { %v4619_v62 = vmul.f32 1.442695, %v4601_v30 }
 0x62a   : > { %v4583_v34 = vpop.xlane.xlu0 %4582 }
 0x62b   : > { %8492 = vpow2.f32 %v4619_v62  ;;  %v4609_v58 = vsub.f32 %v10466_v2, %v4583_v34  ;;  %v3185_v2 = vcombine.low %v2953_v42, %v2960_v63 }
 0x62c   : > { %8494 = vpow2.f32 %v4623_v21 }
 0x62d   : > { %v4635_v54 = vmul.f32 1.442695, %v4609_v58  ;;  %v3192_v49 = vrot.slane %v3185_v2, %v9992_v41 }
 0x62e   : > { %v4562_v55 = vpop.xlane.xlu0 %4561  ;;  %v4595_v53 = vpop.xlane.xlu1 %4594 }
 0x62f   : > { %8496 = vpow2.f32 %v4635_v54  ;;  %v4602_v43 = vsub.f32 %v10470_v38, %v4562_v55  ;;  %v3176_v38 = vrot.slane %v3169_v4, %v9992_v41  ;;  %v4613_v15 = vsub.f32 %v10475_v14, %v4595_v53 }
 0x630   : > { %v3217_v28 = vcombine.low %v3192_v49, %v3200_v10  ;;  %v3218_v34 = vcombine.high %v3192_v49, %v3200_v10 }
 0x631   : > { %v10552_v20 = vpop.eup %8490  ;;  %v4621_v50 = vmul.f32 1.442695, %v4602_v43  ;;  %v3201_v45 = vcombine.low %v3176_v38, %v3184_v24  ;;  %v4643_v25 = vmul.f32 1.442695, %v4613_v15  ;;  %v3202_v21 = vcombine.high %v3176_v38, %v3184_v24 }
 0x632   : > { %v4589_v7 = vpop.xlane.xlu0 %4588  ;;  %v4571_v8 = vpop.xlane.xlu1 %4570  ;;  %v4671_v57 = vsel %vm4550_vm2, %v10552_v20, 0.0  ;;  %v10607_v46 = vrot.slane %v3218_v34, %v9997_v48 }
 0x633   : > { %8498 = vpow2.f32 %v4621_v50  ;;  %v4611_v23 = vsub.f32 %v10479_v16, %v4589_v7  ;;  %v4605_v12 = vsub.f32 %v10477_v0, %v4571_v8  ;;  %4672 = vadd.xlane.f32.xlu1 %v4671_v57 }
 0x635   : > { %v8493_v36 = vpop.eup %8492  ;;  %v4627_v3 = vmul.f32 1.442695, %v4605_v12  ;;  %v4639_v60 = vmul.f32 1.442695, %v4611_v23 }
 0x636   : > { %v4568_v19 = vpop.xlane.xlu0 %4567  ;;  %7953 = vmatmul.mubr.msk.f32.vlgmr.msra.gmra.mrb[18].mxu0 %vm4550_vm2, %v8493_v36  ;;  %v4580_v16 = vpop.xlane.xlu1 %4579  ;;  %v4653_v0 = vsel %vm4550_vm2, %v8493_v36, 0.0 }
 0x637   : > { %v4604_v51 = vsub.f32 %v10485_v40, %v4568_v19  ;;  %7961 = vmatpush3.msra.mxu0 %v3165_v13  ;;  %4654 = vadd.xlane.f32.xlu0 %v4653_v0  ;;  %v8495_v9 = vpop.eup %8494  ;;  %8500 = vpow2.f32 %v4627_v3  ;;  %v4608_v61 = vsub.f32 %v10487_v26, %v4580_v16 }
 0x638   : > { %7962 = vmatprep.mubr.msk.f32.mxu0 %vm9062_vm0, %v9061_v17  ;;  %7970 = vmatprep.subr.mxu0 %v9061_v17  ;;  %8502 = vpow2.f32 %v4639_v60  ;;  %v4659_v42 = vsel %vm4550_vm2, %v8495_v9, 0.0 }
 0x639   : > { %v10572_v14 = vpop.eup %8496  ;;  %v4625_v52 = vmul.f32 1.442695, %v4604_v51  ;;  %v4633_v35 = vmul.f32 1.442695, %v4608_v61 }
 0x63a   : > { %v4574_v30 = vpop.xlane.xlu0 %4573  ;;  %7963 = vmatmul.mubr.msk.f32.vlgmr.msra.gmra.mrb[20].mxu0 %vm4550_vm2, %v8495_v9  ;;  %v4586_v40 = vpop.xlane.xlu1 %4585  ;;  %v4677_v13 = vsel %vm4550_vm2, %v10572_v14, 0.0 }
 0x63b   : > { %8504 = vpow2.f32 %v4625_v52  ;;  %v4606_v39 = vsub.f32 %v10493_v33, %v4574_v30  ;;  %7971 = vmatpush3.msra.mxu0 %v3167_v22  ;;  %4678 = vadd.xlane.f32.xlu1 %v4677_v13  ;;  %v10588_v33 = vrot.slane %v3201_v45, %v9997_v48  ;;  %v10591_v22 = vrot.slane %v3217_v28, %v9997_v48 }
 0x63c   : > { %7972 = vmatprep.mubr.msk.f32.mxu0 %vm9062_vm0, %v9061_v17  ;;  %7980 = vmatprep.subr.mxu0 %v9061_v17  ;;  %8506 = vpow2.f32 %v4643_v25  ;;  %v4610_v59 = vsub.f32 %v10495_v44, %v4586_v40  ;;  %v10604_v44 = vrot.slane %v3202_v21, %v9997_v48 }
 0x63d   : > { %v8499_v32 = vpop.eup %8498  ;;  %v4629_v62 = vmul.f32 1.442695, %v4606_v39  ;;  %v3233_v53 = vcombine.low %v10588_v33, %v10591_v22 }
 0x63e   : > { %v4592_v58 = vpop.xlane.xlu0 %4591  ;;  %7958 = vmatmul.mubr.msk.f32.vlgmr.msra.gmra.mrb[30].mxu1 %vm4550_vm2, %v8499_v32  ;;  %v4656_v26 = vsel %vm4550_vm2, %v8499_v32, 0.0  ;;  %v2744_v63 = vpop.permute.xlu1 %2743  ;;  %v4637_v47 = vmul.f32 1.442695, %v4610_v59  ;;  %v3235_v8 = vcombine.low %v10604_v44, %v10607_v46 }
 0x63f   : > { %8508 = vpow2.f32 %v4629_v62  ;;  %7966 = vmatpush3.msra.mxu1 %v3166_v56  ;;  %4657 = vadd.xlane.f32.xlu0 %v4656_v26  ;;  %v4612_v4 = vsub.f32 %v10501_v29, %v4592_v58  ;;  %v2965_v1 = vcombine.low %v9969_v27, %v2744_v63  ;;  %v2966_v50 = vcombine.high %v9969_v27, %v2744_v63 }
 0x640   : > { %4660 = vadd.xlane.f32.xlu1 %v4659_v42  ;;  %7967 = vmatprep.mubr.msk.f32.mxu1 %vm9062_vm0, %v9061_v17  ;;  %8510 = vpow2.f32 %v4633_v35 }
 0x641   : > { %7975 = vmatprep.subr.mxu1 %v9061_v17  ;;  %v8501_v54 = vpop.eup %8500  ;;  %8512 = vpow2.f32 %v4637_v47  ;;  %v4641_v12 = vmul.f32 1.442695, %v4612_v4  ;;  %v2973_v36 = vrot.slane %v2965_v1, %v9992_v41  ;;  %v2980_v3 = vrot.slane %v2966_v50, %v9992_v41  ;;  %v6502_v1 = vld [vmem:[%s11277_s17 + $0x8] sm:$0xff] }
 0x642   : > { %v4598_v55 = vpop.xlane.xlu0 %4597  ;;  %7973 = vmatmul.mubr.msk.f32.vlgmr.msra.gmra.mrb[22].mxu0 %vm4550_vm2, %v8501_v54  ;;  %v4665_v56 = vsel %vm4550_vm2, %v8501_v54, 0.0  ;;  %v10611_v43 = vpop.eup %8502 }
 0x643   : > { %7981 = vmatpush3.msra.mxu0 %v3233_v53  ;;  %7982 = vmatprep.mubr.msk.f32.mxu0 %vm9062_vm0, %v9061_v17  ;;  %v2756_v6 = vpop.permute.xlu1 %2755  ;;  %v4614_v38 = vsub.f32 %v10507_v31, %v4598_v55  ;;  %v4683_v24 = vsel %vm4550_vm2, %v10611_v43, 0.0  ;;  %8514 = vpow2.f32 %v4641_v12 }
 0x644   : > { %4666 = vadd.xlane.f32.xlu1 %v4665_v56  ;;  %7990 = vmatprep.subr.mxu0 %v9061_v17 }
 0x645   : > { %v8505_v2 = vpop.eup %8504  ;;  %v4645_v19 = vmul.f32 1.442695, %v4614_v38  ;;  %v6510_v38 = vld [vmem:[%s11277_s17 + $0x48] sm:$0xff] }
 0x646   : > { %v2732_v7 = vpop.permute.xlu0 %2731  ;;  %7968 = vmatmul.mubr.msk.f32.vlgmr.msra.gmra.mrb[32].mxu1 %vm4550_vm2, %v8505_v2  ;;  %v4662_v29 = vsel %vm4550_vm2, %v8505_v2, 0.0  ;;  %7983 = vmatmul.mubr.msk.f32.vlgmr.msra.gmra.mrb[24].mxu0 %vm4550_vm2, %v10552_v20  ;;  %v10628_v27 = vpop.eup %8506  ;;  %v6503_v2 = vld [vmem:[%s11277_s17 + $0x10] sm:$0xff] }
 0x647   : > { %v2981_v57 = vcombine.low %v2732_v7, %v2756_v6  ;;  %v2982_v23 = vcombine.high %v2732_v7, %v2756_v6  ;;  %7976 = vmatpush3.msra.mxu1 %v3168_v18  ;;  %7991 = vmatpush3.msra.mxu0 %v3235_v8  ;;  %v3234_v18 = vcombine.high %v10588_v33, %v10591_v22  ;;  %v4689_v16 = vsel %vm4550_vm2, %v10628_v27, 0.0  ;;  %v6504_v6 = vld [vmem:[%s11277_s17 + $0x18] sm:$0xff]  ;;  %v6505_v8 = vld [vmem:[%s11277_s17 + $0x20] sm:$0xff] }
 0x648   : > { %4663 = vadd.xlane.f32.xlu0 %v4662_v29  ;;  %4684 = vadd.xlane.f32.xlu1 %v4683_v24  ;;  %8516 = vpow2.f32 %v4645_v19  ;;  %v8158_v7 = vpack.c.bf16 %v6504_v6, %v6503_v2  ;;  %v6506_v29 = vld [vmem:[%s11277_s17 + $0x28] sm:$0xff] }
 0x649   : > { %v8509_v49 = vpop.eup %8508  ;;  %v2989_v5 = vrot.slane %v2981_v57, %v9992_v41  ;;  %v2996_v11 = vrot.slane %v2982_v23, %v9992_v41  ;;  %7977 = vmatprep.mubr.msk.f32.mxu1 %vm9062_vm0, %v9061_v17  ;;  %7985 = vmatprep.subr.mxu1 %v9061_v17  ;;  %v8162_v57 = vpack.c.bf16 %v6506_v29, %v6505_v8  ;;  %v6507_v23 = vld [vmem:[%s11277_s17 + $0x30] sm:$0xff] }
 0x64a   : > { %7992 = vmatprep.mubr.msk.f32.mxu0 %vm9062_vm0, %v9061_v17  ;;  %v4668_v31 = vsel %vm4550_vm2, %v8509_v49, 0.0  ;;  %7978 = vmatmul.mubr.msk.f32.vlgmr.msra.gmra.mrb[34].mxu1 %vm4550_vm2, %v8509_v49  ;;  %v8511_v0 = vpop.eup %8510  ;;  %v6511_v49 = vld [vmem:[%s11277_s17 + $0x50] sm:$0xff] }
 0x64b   : > { %v2997_v20 = vcombine.low %v2973_v36, %v2989_v5  ;;  %v2998_v10 = vcombine.high %v2973_v36, %v2989_v5  ;;  %v3013_v15 = vcombine.low %v2980_v3, %v2996_v11  ;;  %v3014_v60 = vcombine.high %v2980_v3, %v2996_v11  ;;  %7986 = vmatpush3.msra.mxu1 %v3234_v18  ;;  %v8513_v61 = vpop.eup %8512  ;;  %v6509_v36 = vld [vmem:[%s11277_s17 + $0x40] sm:$0xff]  ;;  %v6512_v3 = vld [vmem:[%s11277_s17 + $0x58] sm:$0xff] }
 0x64c   : > { %7993 = vmatmul.mubr.msk.f32.vlgmr.msra.gmra.mrb[26].mxu0 %vm4550_vm2, %v10572_v14  ;;  %4669 = vadd.xlane.f32.xlu0 %v4668_v31  ;;  %v3236_v14 = vcombine.high %v10604_v44, %v10607_v46  ;;  %v4674_v28 = vsel %vm4550_vm2, %v8511_v0, 0.0  ;;  %v4680_v22 = vsel %vm4550_vm2, %v8513_v61, 0.0  ;;  %v8170_v24 = vpack.c.bf16 %v6510_v38, %v6509_v36 }
 0x64d   : > { %v3005_v51 = vrot.slane %v2997_v20, %v9997_v48  ;;  %v3012_v9 = vrot.slane %v2998_v10, %v9997_v48  ;;  %v3021_v52 = vrot.slane %v3013_v15, %v9997_v48  ;;  %v3028_v45 = vrot.slane %v3014_v60, %v9997_v48  ;;  %4690 = vadd.xlane.f32.xlu1 %v4689_v16  ;;  %v8515_v42 = vpop.eup %8514 }
 0x64e   : > { %7987 = vmatprep.mubr.msk.f32.mxu1 %vm9062_vm0, %v9061_v17  ;;  %7995 = vmatprep.subr.mxu1 %v9061_v17  ;;  %v4686_v44 = vsel %vm4550_vm2, %v8515_v42, 0.0  ;;  %v8174_v11 = vpack.c.bf16 %v6512_v3, %v6511_v49 }
 0x64f   : > { %v3237_v25 = vcombine.low %v3005_v51, %v3012_v9  ;;  %v7475_v30 = vcombine.high %v3005_v51, %v3012_v9  ;;  %v3253_v40 = vcombine.low %v3021_v52, %v3028_v45  ;;  %v7476_v13 = vcombine.high %v3021_v52, %v3028_v45  ;;  %7988 = vmatmul.mubr.msk.f32.vlgmr.msra.gmra.mrb[36].mxu1 %vm4550_vm2, %v8511_v0 }
 0x650   : > { %8000 = vmatprep.subr.mxu0 %v9061_v17  ;;  %7996 = vmatpush3.msra.mxu1 %v3236_v14 }
 0x651   : > { %v3244_v39 = vrot.slane %v3237_v25, %v9992_v41  ;;  %v3252_v32 = vrot.slane %v7475_v30, %v9992_v41  ;;  %v3260_v62 = vrot.slane %v3253_v40, %v9992_v41  ;;  %v3268_v21 = vrot.slane %v7476_v13, %v9992_v41  ;;  %4675 = vadd.xlane.f32.xlu0 %v4674_v28 }
 0x652   : > { %7997 = vmatprep.mubr.msk.f32.mxu1 %vm9062_vm0, %v9061_v17  ;;  %8005 = vmatprep.subr.mxu1 %v9061_v17  ;;  %v8517_v46 = vpop.eup %8516 }
 0x653   : > { %v3269_v34 = vcombine.low %v3244_v39, %v3252_v32  ;;  %v3285_v58 = vcombine.low %v3260_v62, %v3268_v21  ;;  %8002 = vmatprep.mubr.msk.f32.mxu0 %vm9062_vm0, %v9061_v17  ;;  %v3270_v26 = vcombine.high %v3244_v39, %v3252_v32  ;;  %7998 = vmatmul.mubr.msk.f32.vlgmr.msra.gmra.mrb[38].mxu1 %vm4550_vm2, %v8513_v61  ;;  %v4692_v4 = vsel %vm4550_vm2, %v8517_v46, 0.0 }
 0x654   : > { %v3286_v33 = vcombine.high %v3260_v62, %v3268_v21  ;;  %8007 = vmatprep.mubr.msk.f32.mxu1 %vm9062_vm0, %v9061_v17 }
 0x655   : > { %v3277_v35 = vrot.slane %v3269_v34, %v9997_v48  ;;  %v3293_v59 = vrot.slane %v3285_v58, %v9997_v48  ;;  %4681 = vadd.xlane.f32.xlu0 %v4680_v22  ;;  %v3284_v63 = vrot.slane %v3270_v26, %v9997_v48 }
 0x656   : > { %v3300_v54 = vrot.slane %v3286_v33, %v9997_v48 }
 0x657   : > { %v3301_v55 = vcombine.low %v3277_v35, %v3293_v59  ;;  %v3302_v53 = vcombine.high %v3277_v35, %v3293_v59 }
 0x658   : > { %v3303_v47 = vcombine.low %v3284_v63, %v3300_v54  ;;  %v3304_v56 = vcombine.high %v3284_v63, %v3300_v54 }
 0x659   : > { %8001 = vmatpush3.msra.mxu0 %v3301_v55  ;;  %8006 = vmatpush3.msra.mxu1 %v3302_v53 }
 0x65a   : > { %4687 = vadd.xlane.f32.xlu0 %v4686_v44  ;;  %8003 = vmatmul.mubr.msk.f32.vlgmr.msra.gmra.mrb[28].mxu0 %vm4550_vm2, %v10611_v43  ;;  %v6501_v43 = vld [vmem:[%s11277_s17] sm:$0xff] }
 0x65b   : > { %8008 = vmatmul.mubr.msk.f32.vlgmr.msra.gmra.mrb[40].mxu1 %vm4550_vm2, %v8515_v42  ;;  %8010 = vmatprep.subr.mxu0 %v9061_v17  ;;  %v8154_v50 = vpack.c.bf16 %v6502_v1, %v6501_v43 }
 0x65c   : > { %8015 = vmatprep.subr.mxu1 %v9061_v17  ;;  %8011 = vmatpush3.msra.mxu0 %v3303_v47 }
 0x65d   : > { %8016 = vmatpush3.msra.mxu1 %v3304_v56  ;;  %8012 = vmatprep.mubr.msk.f32.mxu0 %vm9062_vm0, %v9061_v17 }
 0x65e   : > { %4693 = vadd.xlane.f32.xlu0 %v4692_v4  ;;  %8017 = vmatprep.mubr.msk.f32.mxu1 %vm9062_vm0, %v9061_v17 }
 0x65f   : > { %8013 = vmatmul.mubr.msk.f32.vlgmr.msra.gmra.mrb[30].mxu0 %vm4550_vm2, %v10628_v27  ;;  %8018 = vmatmul.mubr.msk.f32.vlgmr.msra.gmra.mrb[42].mxu1 %vm4550_vm2, %v8517_v46  ;;  %v6508_v27 = vld [vmem:[%s11277_s17 + $0x38] sm:$0xff] }
 0x660   : > { %6788 = vmatprep.mubr.f32.mxu1 %v9061_v17  ;;  %8155 = vmatprep.subr.bf16.mxu0 %v8154_v50  ;;  %v8166_v12 = vpack.c.bf16 %v6508_v27, %v6507_v23 }
 0x661   : > { %8157 = vmatpush3.bf16.msra.mxu0 %v8154_v50 }
 0x662   : > { %8159 = vmatprep.subr.bf16.mxu0 %v8158_v7 }
 0x665   : > { %8161 = vmatpush3.bf16.msra.mxu0 %v8158_v7 }
 0x666   : > { %8163 = vmatprep.subr.bf16.mxu0 %v8162_v57 }
 0x669   : > { %8165 = vmatpush3.bf16.msra.mxu0 %v8162_v57 }
 0x66a   : > { %8167 = vmatprep.subr.bf16.mxu0 %v8166_v12 }
 0x66d   : > { %8169 = vmatpush3.bf16.msra.mxu0 %v8166_v12 }
 0x66e   : > { %8171 = vmatprep.subr.bf16.mxu0 %v8170_v24 }
 0x671   : > { %8173 = vmatpush3.bf16.msra.mxu0 %v8170_v24 }
 0x672   : > { %8175 = vmatprep.subr.bf16.mxu0 %v8174_v11 }
 0x675   : > { %8177 = vmatpush3.bf16.msra.mxu0 %v8174_v11 }
 0x698   : > { %v4649_v15 = vpop.xlane.xlu0 %4648 }
 0x699   : > { %8518 = vrcp.f32 %v4649_v15 }
 0x69d   : > { %v4652_v10 = vpop.xlane.xlu1 %4651 }
 0x6a3   : > { %v8519_v52 = vpop.eup %8518 }
 0x6c0   : > { %v4673_v60 = vpop.xlane.xlu1 %4672 }
 0x6c4   : > { %v4655_v19 = vpop.xlane.xlu0 %4654 }
 0x6c5   : > { %8520 = vrcp.f32 %v4655_v19 }
 0x6c6   : > { %8522 = vrcp.f32 %v4652_v10 }
 0x6c8   : > { %v4679_v16 = vpop.xlane.xlu1 %4678 }
 0x6cc   : > { %v4658_v0 = vpop.xlane.xlu0 %4657 }
 0x6cd   : > { %v4661_v51 = vpop.xlane.xlu1 %4660  ;;  %8524 = vrcp.f32 %v4658_v0 }
 0x6ce   : > { %8526 = vrcp.f32 %v4661_v51 }
 0x6cf   : > { %v8521_v45 = vpop.eup %8520 }
 0x6d0   : > { %v8523_v21 = vpop.eup %8522 }
 0x6d1   : > { %v4667_v14 = vpop.xlane.xlu1 %4666 }
 0x6d2   : > { %8528 = vrcp.f32 %v4667_v14 }
 0x6d3   : > { %8530 = vrcp.f32 %v4673_v60 }
 0x6d5   : > { %v4664_v9 = vpop.xlane.xlu0 %4663  ;;  %v4685_v55 = vpop.xlane.xlu1 %4684 }
 0x6d6   : > { %8532 = vrcp.f32 %v4664_v9 }
 0x6d7   : > { %v8525_v34 = vpop.eup %8524 }
 0x6d8   : > { %v8527_v63 = vpop.eup %8526 }
 0x6d9   : > { %v4670_v28 = vpop.xlane.xlu0 %4669 }
 0x6da   : > { %8534 = vrcp.f32 %v4670_v28 }
 0x6db   : > { %8536 = vrcp.f32 %v4679_v16 }
 0x6dc   : > { %v8529_v54 = vpop.eup %8528  ;;  %8538 = vrcp.f32 %v4685_v55 }
 0x6dd   : > { %v4780_v5 = vpop.f32.mrb[16].mxu0 }
 0x6de   : > { %v7944_v18 = vpop.f32.mrb[17].mxu0  ;;  %v5879_v30 = vmul.f32 %v8519_v52, %v4780_v5  ;;  %v4676_v26 = vpop.xlane.xlu0 %4675 }
 0x6df   : > { %8540 = vrcp.f32 %v4676_v26  ;;  %v8531_v5 = vpop.eup %8530 }
 0x6e0   : > { %v8533_v10 = vpop.eup %8532 }
 0x6e2   : > { %v4853_v31 = vpop.f32.mrb[28].mxu1  ;;  %v4682_v2 = vpop.xlane.xlu0 %4681 }
 0x6e3   : > { %v7949_v20 = vpop.f32.mrb[29].mxu1  ;;  %v5880_v33 = vmul.f32 %v8523_v21, %v4853_v31  ;;  %8542 = vrcp.f32 %v4682_v2 }
 0x6e4   : > { %v8535_v15 = vpop.eup %8534 }
 0x6e5   : > { %v8537_v52 = vpop.eup %8536 }
 0x6e7   : > { %v4688_v60 = vpop.xlane.xlu0 %4687 }
 0x6e8   : > { %8544 = vrcp.f32 %v4688_v60 }
 0x709   : > { %v4926_v25 = vpop.f32.mrb[18].mxu0 }
 0x70a   : > { %v5881_v40 = vmul.f32 %v8521_v45, %v4926_v25  ;;  %v7954_v13 = vpop.f32.mrb[19].mxu0 }
 0x70c   : > { %v5895_v61 = vcombine.low %v5879_v30, %v5881_v40  ;;  %v5896_v39 = vcombine.high %v5879_v30, %v5881_v40 }
 0x70d   : > { %v5072_v32 = vpop.f32.mrb[20].mxu0 }
 0x70e   : > { %v7964_v62 = vpop.f32.mrb[21].mxu0  ;;  %v5903_v53 = vrot.slane %v5895_v61, %v9992_v41  ;;  %v5910_v44 = vrot.slane %v5896_v39, %v9992_v41  ;;  %v5883_v4 = vmul.f32 %v8527_v63, %v5072_v32  ;;  %v4691_v63 = vpop.xlane.xlu1 %4690 }
 0x70f   : > { %8546 = vrcp.f32 %v4691_v63 }
 0x711   : > { %v4999_v58 = vpop.f32.mrb[30].mxu1 }
 0x712   : > { %v5882_v22 = vmul.f32 %v8525_v34, %v4999_v58  ;;  %v7959_v35 = vpop.f32.mrb[31].mxu1 }
 0x714   : > { %v5911_v59 = vcombine.low %v5880_v33, %v5882_v22  ;;  %v5912_v42 = vcombine.high %v5880_v33, %v5882_v22 }
 0x715   : > { %v5218_v56 = vpop.f32.mrb[22].mxu0 }
 0x716   : > { %v5919_v46 = vrot.slane %v5911_v59, %v9992_v41  ;;  %v5926_v47 = vrot.slane %v5912_v42, %v9992_v41  ;;  %v5885_v43 = vmul.f32 %v8529_v54, %v5218_v56  ;;  %v7974_v1 = vpop.f32.mrb[23].mxu0  ;;  %v8539_v42 = vpop.eup %8538 }
 0x718   : > { %v5927_v50 = vcombine.low %v5903_v53, %v5919_v46  ;;  %v5928_v6 = vcombine.high %v5903_v53, %v5919_v46  ;;  %v5943_v7 = vcombine.low %v5910_v44, %v5926_v47  ;;  %v5944_v8 = vcombine.high %v5910_v44, %v5926_v47 }
 0x719   : > { %v5963_v29 = vcombine.low %v5883_v4, %v5885_v43  ;;  %v5964_v57 = vcombine.high %v5883_v4, %v5885_v43  ;;  %v5145_v23 = vpop.f32.mrb[32].mxu1  ;;  %v5364_v24 = vpop.f32.mrb[24].mxu0 }
 0x71a   : > { %v5935_v27 = vrot.slane %v5927_v50, %v9997_v48  ;;  %v5942_v12 = vrot.slane %v5928_v6, %v9997_v48  ;;  %v5951_v36 = vrot.slane %v5943_v7, %v9997_v48  ;;  %v5958_v38 = vrot.slane %v5944_v8, %v9997_v48  ;;  %v7969_v49 = vpop.f32.mrb[33].mxu1  ;;  %v7984_v3 = vpop.f32.mrb[25].mxu0 }
 0x71b   : > { %v5971_v45 = vrot.slane %v5963_v29, %v9992_v41  ;;  %v5884_v14 = vmul.f32 %v8533_v10, %v5145_v23  ;;  %v5887_v25 = vmul.f32 %v8531_v5, %v5364_v24  ;;  %v5978_v21 = vrot.slane %v5964_v57, %v9992_v41  ;;  %v8541_v4 = vpop.eup %8540  ;;  %v4694_v43 = vpop.xlane.xlu0 %4693 }
 0x71c   : > { %v6167_v11 = vcombine.low %v5935_v27, %v5942_v12  ;;  %v7529_v18 = vcombine.high %v5935_v27, %v5942_v12  ;;  %v6183_v31 = vcombine.low %v5951_v36, %v5958_v38  ;;  %v7530_v20 = vcombine.high %v5951_v36, %v5958_v38  ;;  %v8543_v57 = vpop.eup %8542 }
 0x71d   : > { %v5291_v19 = vpop.f32.mrb[34].mxu1  ;;  %8548 = vrcp.f32 %v4694_v43 }
 0x71e   : > { %v6174_v16 = vrot.slane %v6167_v11, %v9992_v41  ;;  %v6182_v0 = vrot.slane %v7529_v18, %v9992_v41  ;;  %v6190_v51 = vrot.slane %v6183_v31, %v9992_v41  ;;  %v6198_v9 = vrot.slane %v7530_v20, %v9992_v41  ;;  %v7979_v13 = vpop.f32.mrb[35].mxu1 }
 0x71f   : > { %v5886_v30 = vmul.f32 %v8535_v15, %v5291_v19  ;;  %v5510_v40 = vpop.f32.mrb[26].mxu0  ;;  %v8545_v13 = vpop.eup %8544 }
 0x720   : > { %v5889_v28 = vmul.f32 %v8537_v52, %v5510_v40  ;;  %v7994_v61 = vpop.f32.mrb[27].mxu0  ;;  %v6200_v39 = vcombine.high %v6174_v16, %v6182_v0  ;;  %v6216_v32 = vcombine.high %v6190_v51, %v6198_v9  ;;  %v6199_v62 = vcombine.low %v6174_v16, %v6182_v0  ;;  %v8547_v63 = vpop.eup %8546 }
 0x721   : > { %v5979_v34 = vcombine.low %v5884_v14, %v5886_v30  ;;  %v5980_v58 = vcombine.high %v5884_v14, %v5886_v30  ;;  %v6215_v26 = vcombine.low %v6190_v51, %v6198_v9 }
 0x722   : > { %v6031_v33 = vcombine.low %v5887_v25, %v5889_v28  ;;  %v6032_v22 = vcombine.high %v5887_v25, %v5889_v28  ;;  %v10721_v35 = vrot.slane %v6200_v39, %v9997_v48  ;;  %v10724_v59 = vrot.slane %v6216_v32, %v9997_v48  ;;  %v5437_v53 = vpop.f32.mrb[36].mxu1 }
 0x723   : > { %v5987_v54 = vrot.slane %v5979_v34, %v9992_v41  ;;  %v5994_v55 = vrot.slane %v5980_v58, %v9992_v41  ;;  %v10729_v44 = vrot.slane %v6199_v62, %v9997_v48  ;;  %v10732_v46 = vrot.slane %v6215_v26, %v9997_v48  ;;  %v7989_v47 = vpop.f32.mrb[37].mxu1 }
 0x724   : > { %v6233_v56 = vcombine.low %v10721_v35, %v10724_v59  ;;  %v6234_v29 = vcombine.high %v10721_v35, %v10724_v59  ;;  %v5888_v24 = vmul.f32 %v8541_v4, %v5437_v53  ;;  %v6039_v0 = vrot.slane %v6031_v33, %v9992_v41 }
 0x725   : > { %v5995_v1 = vcombine.low %v5971_v45, %v5987_v54  ;;  %v5996_v2 = vcombine.high %v5971_v45, %v5987_v54  ;;  %v6011_v50 = vcombine.low %v5978_v21, %v5994_v55  ;;  %v6012_v6 = vcombine.high %v5978_v21, %v5994_v55 }
 0x726   : > { %v6231_v7 = vcombine.low %v10729_v44, %v10732_v46  ;;  %v6232_v8 = vcombine.high %v10729_v44, %v10732_v46  ;;  %v5583_v38 = vpop.f32.mrb[38].mxu1  ;;  %v6046_v51 = vrot.slane %v6032_v22, %v9992_v41 }
 0x727   : > { %v6003_v23 = vrot.slane %v5995_v1, %v9997_v48  ;;  %v6010_v27 = vrot.slane %v5996_v2, %v9997_v48  ;;  %v6019_v12 = vrot.slane %v6011_v50, %v9997_v48  ;;  %v6026_v36 = vrot.slane %v6012_v6, %v9997_v48  ;;  %v7999_v3 = vpop.f32.mrb[39].mxu1  ;;  %v8549_v2 = vpop.eup %8548 }
 0x728   : > { %v5890_v49 = vmul.f32 %v8543_v57, %v5583_v38 }
 0x729   : > { %v6235_v5 = vcombine.low %v6003_v23, %v6010_v27  ;;  %v7531_v11 = vcombine.high %v6003_v23, %v6010_v27  ;;  %v6251_v18 = vcombine.low %v6019_v12, %v6026_v36  ;;  %v7532_v31 = vcombine.high %v6019_v12, %v6026_v36 }
 0x72a   : > { %v6047_v20 = vcombine.low %v5888_v24, %v5890_v49  ;;  %v6048_v10 = vcombine.high %v5888_v24, %v5890_v49 }
 0x72b   : > { %v6242_v15 = vrot.slane %v6235_v5, %v9992_v41  ;;  %v6250_v60 = vrot.slane %v7531_v11, %v9992_v41  ;;  %v6258_v19 = vrot.slane %v6251_v18, %v9992_v41  ;;  %v6266_v16 = vrot.slane %v7532_v31, %v9992_v41 }
 0x72c   : > { %v6055_v9 = vrot.slane %v6047_v20, %v9992_v41  ;;  %v6062_v52 = vrot.slane %v6048_v10, %v9992_v41 }
 0x72d   : > { %v5656_v45 = vpop.f32.mrb[28].mxu0  ;;  %v6268_v14 = vcombine.high %v6242_v15, %v6250_v60  ;;  %v6284_v25 = vcombine.high %v6258_v19, %v6266_v16  ;;  %v6267_v30 = vcombine.low %v6242_v15, %v6250_v60  ;;  %v6283_v40 = vcombine.low %v6258_v19, %v6266_v16 }
 0x72e   : > { %v6063_v28 = vcombine.low %v6039_v0, %v6055_v9  ;;  %v6064_v61 = vcombine.high %v6039_v0, %v6055_v9  ;;  %v6079_v39 = vcombine.low %v6046_v51, %v6062_v52  ;;  %v6080_v32 = vcombine.high %v6046_v51, %v6062_v52  ;;  %v5729_v62 = vpop.f32.mrb[40].mxu1  ;;  %v8004_v21 = vpop.f32.mrb[29].mxu0  ;;  %v6513_v52 = vld [vmem:[%s11277_s17 + $0x60] sm:$0xff] }
 0x72f   : > { %v5891_v34 = vmul.f32 %v8539_v42, %v5656_v45  ;;  %v5892_v58 = vmul.f32 %v8545_v13, %v5729_v62  ;;  %v8009_v26 = vpop.f32.mrb[41].mxu1  ;;  %v6282_v33 = vrot.slane %v6268_v14, %v9997_v48  ;;  %v6298_v22 = vrot.slane %v6284_v25, %v9997_v48  ;;  %v6514_v45 = vld [vmem:[%s11277_s17 + $0x68] sm:$0xff] }
 0x730   : > { %v6071_v54 = vrot.slane %v6063_v28, %v9997_v48  ;;  %v6078_v55 = vrot.slane %v6064_v61, %v9997_v48  ;;  %v6087_v53 = vrot.slane %v6079_v39, %v9997_v48  ;;  %v6094_v47 = vrot.slane %v6080_v32, %v9997_v48 }
 0x731   : > { %v6301_v4 = vcombine.low %v6282_v33, %v6298_v22  ;;  %v10761_v43 = vrot.slane %v6267_v30, %v9997_v48  ;;  %v10764_v42 = vrot.slane %v6283_v40, %v9997_v48  ;;  %v6302_v1 = vcombine.high %v6282_v33, %v6298_v22  ;;  %v6515_v22 = vld [vmem:[%s11277_s17 + $0x70] sm:$0xff] }
 0x732   : > { %v6303_v50 = vcombine.low %v6071_v54, %v6078_v55  ;;  %v7533_v6 = vcombine.high %v6071_v54, %v6078_v55  ;;  %v6319_v57 = vcombine.low %v6087_v53, %v6094_v47  ;;  %v7534_v23 = vcombine.high %v6087_v53, %v6094_v47  ;;  %v5802_v27 = vpop.f32.mrb[30].mxu0  ;;  %v5875_v12 = vpop.f32.mrb[42].mxu1 }
 0x733   : > { %v5893_v36 = vmul.f32 %v8547_v63, %v5802_v27  ;;  %v5894_v38 = vmul.f32 %v8549_v2, %v5875_v12  ;;  %v8014_v24 = vpop.f32.mrb[31].mxu0  ;;  %v8019_v49 = vpop.f32.mrb[43].mxu1  ;;  %v8461_v3 = vpack.i.bf16 %v6301_v4, %v6233_v56  ;;  %v6300_v5 = vcombine.high %v10761_v43, %v10764_v42  ;;  %v6516_v63 = vld [vmem:[%s11277_s17 + $0x78] sm:$0xff] }
 0x734   : > { %v6299_v11 = vcombine.low %v10761_v43, %v10764_v42  ;;  %v8466_v18 = vpack.i.bf16 %v6302_v1, %v6234_v29  ;;  %v6310_v31 = vrot.slane %v6303_v50, %v9992_v41  ;;  %v6318_v20 = vrot.slane %v7533_v6, %v9992_v41 }
 0x735   : > { %v6099_v10 = vcombine.low %v5891_v34, %v5893_v36  ;;  %v6100_v15 = vcombine.high %v5891_v34, %v5893_v36  ;;  %v6115_v60 = vcombine.low %v5892_v58, %v5894_v38  ;;  %v6116_v56 = vcombine.high %v5892_v58, %v5894_v38  ;;  %8462 = vrot.lane.b32.xlu0 %v8461_v3, %s9060_s27 }
 0x736   : > { %v8456_v19 = vpack.i.bf16 %v6300_v5, %v6232_v8  ;;  %v6326_v16 = vrot.slane %v6319_v57, %v9992_v41  ;;  %v6334_v35 = vrot.slane %v7534_v23, %v9992_v41  ;;  %v6336_v59 = vcombine.high %v6310_v31, %v6318_v20 }
 0x737   : > { %v6107_v29 = vrot.slane %v6099_v10, %v9992_v41  ;;  %v6114_v0 = vrot.slane %v6100_v15, %v9992_v41  ;;  %v6123_v51 = vrot.slane %v6115_v60, %v9992_v41  ;;  %v6130_v9 = vrot.slane %v6116_v56, %v9992_v41 }
 0x738   : > { %8457 = vrot.lane.b32.xlu1 %v8456_v19, %s9058_s9  ;;  %v6350_v14 = vrot.slane %v6336_v59, %v9997_v48  ;;  %v6352_v8 = vcombine.high %v6326_v16, %v6334_v35  ;;  %v6335_v25 = vcombine.low %v6310_v31, %v6318_v20  ;;  %v6351_v30 = vcombine.low %v6326_v16, %v6334_v35 }
 0x739   : > { %v6131_v40 = vcombine.low %v6107_v29, %v6123_v51  ;;  %v6132_v13 = vcombine.high %v6107_v29, %v6123_v51  ;;  %v6147_v28 = vcombine.low %v6114_v0, %v6130_v9  ;;  %v6148_v61 = vcombine.high %v6114_v0, %v6130_v9 }
 0x73a   : > { %v6366_v39 = vrot.slane %v6352_v8, %v9997_v48  ;;  %v10794_v32 = vrot.slane %v6335_v25, %v9997_v48  ;;  %v10797_v62 = vrot.slane %v6351_v30, %v9997_v48  ;;  %v8178_v21 = vpack.c.bf16 %v6514_v45, %v6513_v52 }
 0x73b   : > { %v6139_v34 = vrot.slane %v6131_v40, %v9997_v48  ;;  %v6146_v58 = vrot.slane %v6132_v13, %v9997_v48  ;;  %v6155_v26 = vrot.slane %v6147_v28, %v9997_v48  ;;  %v6162_v33 = vrot.slane %v6148_v61, %v9997_v48 }
 0x73c   : > { %8467 = vrot.lane.b32.xlu1 %v8466_v18, %s9059_s18  ;;  %v6369_v54 = vcombine.low %v6350_v14, %v6366_v39  ;;  %v6367_v55 = vcombine.low %v10794_v32, %v10797_v62  ;;  %v6368_v53 = vcombine.high %v10794_v32, %v10797_v62  ;;  %v6370_v47 = vcombine.high %v6350_v14, %v6366_v39 }
 0x73d   : > { %v6371_v4 = vcombine.low %v6139_v34, %v6146_v58  ;;  %v7535_v1 = vcombine.high %v6139_v34, %v6146_v58  ;;  %v6387_v2 = vcombine.low %v6155_v26, %v6162_v33  ;;  %v7536_v50 = vcombine.high %v6155_v26, %v6162_v33  ;;  %8179 = vmatprep.subr.bf16.mxu0 %v8178_v21  ;;  %v7537_v26 = vld [vmem:[%s11279_s4] ss:$0 sm:$0xff] }
 0x73e   : > { %8181 = vmatpush3.bf16.msra.mxu0 %v8178_v21  ;;  %v8182_v6 = vpack.c.bf16 %v6516_v63, %v6515_v22 }
 0x73f   : > { %v6378_v57 = vrot.slane %v6371_v4, %v9992_v41  ;;  %v6386_v23 = vrot.slane %v7535_v1, %v9992_v41  ;;  %v6394_v27 = vrot.slane %v6387_v2, %v9992_v41  ;;  %v6402_v12 = vrot.slane %v7536_v50, %v9992_v41 }
 0x740   : > { %8183 = vmatprep.subr.bf16.mxu0 %v8182_v6 }
 0x741   : > { %v6404_v36 = vcombine.high %v6378_v57, %v6386_v23  ;;  %v6420_v38 = vcombine.high %v6394_v27, %v6402_v12  ;;  %v6403_v24 = vcombine.low %v6378_v57, %v6386_v23  ;;  %v6419_v49 = vcombine.low %v6394_v27, %v6402_v12  ;;  %v8568_v57 = vld [vmem:[#allocation2 + $0x10] sm:$0xff]  ;;  %v8569_v27 = vld [vmem:[#allocation2 + $0x18] sm:$0xff] }
 0x742   : > { %8185 = vmatpush3.bf16.msra.mxu0 %v8182_v6 }
 0x743   : > { %v6418_v3 = vrot.slane %v6404_v36, %v9997_v48  ;;  %v6434_v5 = vrot.slane %v6420_v38, %v9997_v48  ;;  %v6411_v18 = vrot.slane %v6403_v24, %v9997_v48  ;;  %v6427_v31 = vrot.slane %v6419_v49, %v9997_v48  ;;  %v6681_v36 = vld [vmem:[%s11280_s28 + $0x8] sm:$0xff]  ;;  %v6683_v38 = vld [vmem:[%s11280_s28 + $0x18] sm:$0xff]  ;;  %v6680_v24 = vld [vmem:[%s11280_s28] sm:$0xff] }
 0x744   : > { %v8186_v49 = vpack.c.bf16 %v6683_v38, %v6681_v36  ;;  %v6710_v36 = vld [vmem:[%s11280_s28 + $0xf0] sm:$0xff] }
 0x745   : > { %v6437_v20 = vcombine.low %v6418_v3, %v6434_v5  ;;  %v6436_v10 = vcombine.high %v6411_v18, %v6427_v31  ;;  %v6435_v15 = vcombine.low %v6411_v18, %v6427_v31  ;;  %v6438_v60 = vcombine.high %v6418_v3, %v6434_v5  ;;  %v6682_v3 = vld [vmem:[%s11280_s28 + $0x10] sm:$0xff]  ;;  %v6685_v5 = vld [vmem:[%s11280_s28 + $0x28] sm:$0xff]  ;;  %v6687_v18 = vld [vmem:[%s11280_s28 + $0x38] sm:$0xff] }
 0x746   : > { %v8188_v31 = vpack.c.bf16 %v6682_v3, %v6680_v24  ;;  %8187 = vmatprep.subr.bf16.mxu1 %v8186_v49  ;;  %v6837_v24 = vld [vmem:[%s9814_s5 + $0x80] sm:$0xff]  ;;  %v6838_v49 = vld [vmem:[%s9814_s5 + $0x88] sm:$0xff] }
 0x747   : > { %v8476_v56 = vpack.i.bf16 %v6437_v20, %v6369_v54  ;;  %v8471_v41 = vpack.i.bf16 %v6436_v10, %v6368_v53  ;;  %v8481_v19 = vpack.i.bf16 %v6438_v60, %v6370_v47  ;;  %v8567_v47 = vld [vmem:[#allocation2] sm:$0xff]  ;;  %v8190_v20 = vpack.c.bf16 %v6687_v18, %v6685_v5  ;;  %v6689_v60 = vld [vmem:[%s11280_s28 + $0x48] sm:$0xff]  ;;  %v6821_v3 = vld [vmem:[%s9814_s5] sm:$0xff] }
 0x748   : > { %v6684_v10 = vld [vmem:[%s11280_s28 + $0x20] sm:$0xff]  ;;  %8189 = vmatpush1.bf16.msra.mxu1 %v8188_v31  ;;  %v8218_v5 = vpack.c.bf16 %v6838_v49, %v6837_v24 }
 0x749   : > { %8477 = vrot.lane.b32.xlu0 %v8476_v56, %s9060_s27  ;;  %8472 = vrot.lane.b32.xlu1 %v8471_v41, %s9058_s9  ;;  %v6691_v56 = vld [vmem:[%s11280_s28 + $0x58] sm:$0xff]  ;;  %v6839_v31 = vld [vmem:[%s9814_s5 + $0x90] sm:$0xff] }
 0x74a   : > { %8191 = vmatprep.subr.bf16.mxu1 %v8190_v20  ;;  %v6822_v18 = vld [vmem:[%s9814_s5 + $0x8] sm:$0xff]  ;;  %v6840_v20 = vld [vmem:[%s9814_s5 + $0x98] sm:$0xff]  ;;  %8219 = vmatprep.subr.bf16.mxu0 %v8218_v5 }
 0x74d   : > { %8482 = vrot.lane.b32.xlu1 %v8481_v19, %s9059_s18  ;;  %v8194_v19 = vpack.c.bf16 %v6691_v56, %v6689_v60  ;;  %v6823_v60 = vld [vmem:[%s9814_s5 + $0x10] sm:$0xff]  ;;  %v6824_v56 = vld [vmem:[%s9814_s5 + $0x18] sm:$0xff] }
 0x7a7   : > { %v8463_v16 = vpop.permute.xlu0 %8462 }
 0x7a8   : > { %v8465_v0 = vunpack.i.h.bf16 %v8463_v16  ;;  %v8464_v51 = vunpack.i.l.bf16 %v8463_v16  ;;  %v6688_v16 = vld [vmem:[%s11280_s28 + $0x40] sm:$0xff] }
 0x7aa   : > { %v8458_v35 = vpop.permute.xlu1 %8457 }
 0x7ab   : > { %v8460_v59 = vunpack.i.h.bf16 %v8458_v35  ;;  %v8459_v29 = vunpack.i.l.bf16 %v8458_v35  ;;  %v6690_v35 = vld [vmem:[%s11280_s28 + $0x50] sm:$0xff] }
 0x7ad   : > { %v6488_v48 = vsel %vm3333_vm1, %v6299_v11, %v8460_v59  ;;  %v6487_v9 = vsel %vm3333_vm1, %v6231_v7, %v8459_v29  ;;  %v8196_v59 = vpack.c.bf16 %v6690_v35, %v6688_v16  ;;  %v10907_v16 = vpack.c.bf16 %v6824_v56, %v6823_v60  ;;  %v6834_v60 = vld [vmem:[%s9814_s5 + $0x68] sm:$0xff] }
 0x7ae   : > { %v8468_v52 = vpop.permute.xlu1 %8467  ;;  %v6492_v8 = vsel %vm6491_vm3, %v6487_v9, %v8464_v51  ;;  %v6493_v25 = vsel %vm6491_vm3, %v6488_v48, %v8465_v0 }
 0x7af   : > { %v8470_v45 = vunpack.i.h.bf16 %v8468_v52  ;;  %v8469_v14 = vunpack.i.l.bf16 %v8468_v52 }
 0x7b1   : > { %v6497_v30 = vsel %vm6496_vm4, %v6492_v8, %v8469_v14  ;;  %v6498_v43 = vsel %vm6496_vm4, %v6493_v25, %v8470_v45 }
 0x7b2   : > { %8052 = vmatprep.mubr.f32.mxu0 %v6497_v30 }
 0x7b3   : > { %8053 = vmatmul.mubr.f32.vlgmr.msra.gmra.mrb[32].mxu0 %v6498_v43 }
 0x7bb   : > { %v8478_v42 = vpop.permute.xlu0 %8477  ;;  %v8473_v11 = vpop.permute.xlu1 %8472 }
 0x7bc   : > { %v8475_v44 = vunpack.i.h.bf16 %v8473_v11  ;;  %v8474_v46 = vunpack.i.l.bf16 %v8473_v11  ;;  %v8480_v7 = vunpack.i.h.bf16 %v8478_v42  ;;  %v8479_v40 = vunpack.i.l.bf16 %v8478_v42 }
 0x7be   : > { %v6489_v13 = vsel %vm3333_vm1, %v6367_v55, %v8474_v46  ;;  %v6490_v28 = vsel %vm3333_vm1, %v6435_v15, %v8475_v44  ;;  %v8566_v55 = vld [vmem:[#allocation2 + $0x8] sm:$0xff]  ;;  %v6686_v15 = vld [vmem:[%s11280_s28 + $0x30] sm:$0xff] }
 0x7bf   : > { %v8483_v61 = vpop.permute.xlu1 %8482  ;;  %v6494_v62 = vsel %vm6491_vm3, %v6489_v13, %v8479_v40  ;;  %v6495_v21 = vsel %vm6491_vm3, %v6490_v28, %v8480_v7  ;;  %v8192_v41 = vpack.c.bf16 %v6686_v15, %v6684_v10  ;;  %v6693_v46 = vld [vmem:[%s11280_s28 + $0x68] sm:$0xff]  ;;  %v6695_v7 = vld [vmem:[%s11280_s28 + $0x78] sm:$0xff]  ;;  %v6692_v40 = vld [vmem:[%s11280_s28 + $0x60] sm:$0xff]  ;;  %v10898_v10 = vpack.c.bf16 %v6822_v18, %v6821_v3 }
 0x7c0   : > { %v8485_v39 = vunpack.i.h.bf16 %v8483_v61  ;;  %v8484_v32 = vunpack.i.l.bf16 %v8483_v61  ;;  %v8198_v28 = vpack.c.bf16 %v6695_v7, %v6693_v46  ;;  %v6694_v61 = vld [vmem:[%s11280_s28 + $0x70] sm:$0xff]  ;;  %v10900_v15 = vpack.c.bf16 %v6840_v20, %v6839_v31  ;;  %v6830_v7 = vld [vmem:[%s9814_s5 + $0x48] sm:$0xff] }
 0x7c1   : > { %8193 = vmatpush1.bf16.msra.mxu1 %v8192_v41  ;;  %v6841_v41 = vld [vmem:[%s9814_s5 + $0xa0] sm:$0xff]  ;;  %8221 = vmatpush3.bf16.msra.mxu0 %v10898_v10 }
 0x7c2   : > { %v6499_v34 = vsel %vm6496_vm4, %v6494_v62, %v8484_v32  ;;  %v6500_v58 = vsel %vm6496_vm4, %v6495_v21, %v8485_v39  ;;  %8195 = vmatprep.subr.bf16.mxu1 %v8194_v19  ;;  %v6697_v39 = vld [vmem:[%s11280_s28 + $0x88] sm:$0xff]  ;;  %v6699_v32 = vld [vmem:[%s11280_s28 + $0x98] sm:$0xff]  ;;  %v8200_v62 = vpack.c.bf16 %v6694_v61, %v6692_v40  ;;  %8223 = vmatprep.subr.bf16.mxu0 %v10900_v15 }
 0x7c3   : > { %8055 = vmatprep.mubr.f32.mxu0 %v6499_v34  ;;  %v8202_v21 = vpack.c.bf16 %v6699_v32, %v6697_v39  ;;  %v6696_v34 = vld [vmem:[%s11280_s28 + $0x80] sm:$0xff]  ;;  %v6829_v46 = vld [vmem:[%s9814_s5 + $0x40] sm:$0xff]  ;;  %v6832_v32 = vld [vmem:[%s9814_s5 + $0x58] sm:$0xff] }
 0x7c4   : > { %8056 = vmatmul.mubr.f32.gmra.mrb[34].mxu0 %v6500_v58  ;;  %v6698_v58 = vld [vmem:[%s11280_s28 + $0x90] sm:$0xff]  ;;  %v6842_v19 = vld [vmem:[%s9814_s5 + $0xa8] sm:$0xff]  ;;  %v6847_v40 = vld [vmem:[%s9814_s5 + $0xd0] sm:$0xff] }
 0x7c5   : > { %8197 = vmatpush1.bf16.msra.mxu1 %v8196_v59  ;;  %v10910_v35 = vpack.c.bf16 %v6842_v19, %v6841_v41  ;;  %v6825_v59 = vld [vmem:[%s9814_s5 + $0x20] sm:$0xff]  ;;  %8225 = vmatpush3.bf16.msra.mxu0 %v10907_v16  ;;  %v6831_v39 = vld [vmem:[%s9814_s5 + $0x50] sm:$0xff]  ;;  %v6852_v41 = vld [vmem:[%s9814_s5 + $0xf8] sm:$0xff] }
 0x7c6   : > { %8199 = vmatprep.subr.bf16.mxu1 %v8198_v28  ;;  %v8236_v28 = vpack.c.bf16 %v6830_v7, %v6829_v46 }
 0x7c7   : > { %8227 = vmatprep.subr.bf16.mxu0 %v10910_v35 }
 0x7c9   : > { %8201 = vmatpush1.bf16.msra.mxu1 %v8200_v62  ;;  %v6849_v62 = vld [vmem:[%s9814_s5 + $0xe0] sm:$0xff] }
 0x7ca   : > { %8203 = vmatprep.subr.bf16.mxu1 %v8202_v21  ;;  %v6850_v21 = vld [vmem:[%s9814_s5 + $0xe8] sm:$0xff] }
 0x886   : > { %v8054_v33 = vpop.f32.mrb[32].mxu0 }
 0x887   : > { %v6596_v22 = vadd.f32 %v8054_v33, %v7537_v26  ;;  %v6590_v63 = vpop.f32.mrb[33].mxu0  ;;  %v6703_v33 = vld [vmem:[%s11280_s28 + $0xb8] sm:$0xff] }
 0x888   : > { %v6591_v54 = vadd.f32 %v7537_v26, %v6590_v63 }
 0x889   : > { %v6610_v53 = vadd.f32 %v8566_v55, %v6596_v22  ;;  %v8204_v22 = vpack.c.bf16 %v6698_v58, %v6696_v34  ;;  %v6702_v55 = vld [vmem:[%s11280_s28 + $0xb0] sm:$0xff]  ;;  %v8240_v34 = vpack.c.bf16 %v6832_v32, %v6831_v39  ;;  %v8242_v58 = vpack.c.bf16 %v6850_v21, %v6849_v62 }
 0x88a   : > { %v6609_v4 = vadd.f32 %v8567_v47, %v6591_v54  ;;  %v6700_v54 = vld [vmem:[%s11280_s28 + $0xa0] sm:$0xff]  ;;  %v6707_v47 = vld [vmem:[%s11280_s28 + $0xd8] sm:$0xff] }
 0x88b   : > { %6617 = vadd.xlane.f32.xlu1 %v6610_v53  ;;  %8205 = vmatpush1.bf16.msra.mxu1 %v8204_v22 }
 0x88c   : > { %6615 = vadd.xlane.f32.xlu0 %v6609_v4 }
 0x897   : > { %v8057_v1 = vpop.f32.mrb[34].mxu0 }
 0x898   : > { %v6600_v2 = vpop.f32.mrb[35].mxu0  ;;  %v6606_v6 = vadd.f32 %v8057_v1, %v7537_v26 }
 0x899   : > { %v6601_v50 = vadd.f32 %v7537_v26, %v6600_v2  ;;  %v6701_v26 = vld [vmem:[%s11280_s28 + $0xa8] sm:$0xff]  ;;  %v6704_v2 = vld [vmem:[%s11280_s28 + $0xc0] sm:$0xff] }
 0x89a   : > { %v6612_v12 = vadd.f32 %v8569_v27, %v6606_v6  ;;  %v8206_v63 = vpack.c.bf16 %v6703_v33, %v6701_v26  ;;  %v6709_v6 = vld [vmem:[%s11280_s28 + $0xe8] sm:$0xff] }
 0x89b   : > { %v6611_v23 = vadd.f32 %v8568_v57, %v6601_v50  ;;  %v6706_v50 = vld [vmem:[%s11280_s28 + $0xd0] sm:$0xff]  ;;  %v6711_v57 = vld [vmem:[%s11280_s28 + $0xf8] sm:$0xff] }
 0x89c   : > { %8207 = vmatprep.subr.bf16.mxu1 %v8206_v63  ;;  %v8214_v27 = vpack.c.bf16 %v6711_v57, %v6709_v6  ;;  %v7539_v6 = vld [vmem:[%s1126_s21] ss:$0 sm:$0xff] }
 0x89d   : > { %6619 = vadd.xlane.f32.xlu0 %v6611_v23 }
 0x8a1   : > { %6621 = vadd.xlane.f32.xlu0 %v6612_v12 }
 0x918   : > { %v6618_v29 = vpop.xlane.xlu1 %6617 }
 0x919   : > { %v6625_v0 = vmul.f32 0.0078125, %v6618_v29  ;;  %v6616_v51 = vpop.xlane.xlu0 %6615  ;;  %v6826_v29 = vld [vmem:[%s9814_s5 + $0x28] sm:$0xff] }
 0x91a   : > { %v6624_v48 = vmul.f32 0.0078125, %v6616_v51  ;;  %v6844_v51 = vld [vmem:[%s9814_s5 + $0xb8] sm:$0xff] }
 0x91b   : > { %v10856_v9 = vsub.f32 %v6610_v53, %v6625_v0  ;;  %v6705_v53 = vld [vmem:[%s11280_s28 + $0xc8] sm:$0xff] }
 0x91c   : > { %v10858_v52 = vsub.f32 %v6609_v4, %v6624_v48  ;;  %v8208_v4 = vpack.c.bf16 %v6702_v55, %v6700_v54  ;;  %v8210_v1 = vpack.c.bf16 %v6707_v47, %v6705_v53  ;;  %v6843_v0 = vld [vmem:[%s9814_s5 + $0xb0] sm:$0xff]  ;;  %v8228_v48 = vpack.c.bf16 %v6826_v29, %v6825_v59  ;;  %v6712_v29 = vld [vmem:[%s9804_s16] sm:$0x3] }
 0x91d   : > { %v6633_v45 = vmul.f32 %v10856_v9, %v10856_v9  ;;  %v6716_v59 = vsub.s32 0, %v9989_v37 }
 0x91e   : > { %v6632_v14 = vmul.f32 %v10858_v52, %v10858_v52  ;;  %8209 = vmatpush1.bf16.msra.mxu1 %v8208_v4  ;;  %8229 = vmatpush3.bf16.msra.mxu0 %v8228_v48  ;;  %v7538_v4 = vld [vmem:[%s11282_s2] ss:$0 sm:$0xff] }
 0x91f   : > { %6638 = vadd.xlane.f32.xlu0 %v6633_v45  ;;  %8211 = vmatprep.subr.bf16.mxu1 %v8210_v1  ;;  %v8230_v45 = vpack.c.bf16 %v6844_v51, %v6843_v0  ;;  %v6720_v0 = vsub.s32 1, %v9989_v37  ;;  %v6717_v51 = vrot.slane %v6712_v29, %v6716_v59 }
 0x920   : > { %6636 = vadd.xlane.f32.xlu1 %v6632_v14  ;;  %v6827_v14 = vld [vmem:[%s9814_s5 + $0x30] sm:$0xff] }
 0x921   : > { %8231 = vmatprep.subr.bf16.mxu0 %v8230_v45 }
 0x92a   : > { %v6620_v8 = vpop.xlane.xlu0 %6619 }
 0x92b   : > { %v6626_v25 = vmul.f32 0.0078125, %v6620_v8  ;;  %v6828_v8 = vld [vmem:[%s9814_s5 + $0x38] sm:$0xff] }
 0x92d   : > { %v10864_v30 = vsub.f32 %v6611_v23, %v6626_v25  ;;  %v8212_v23 = vpack.c.bf16 %v6706_v50, %v6704_v2  ;;  %v6845_v25 = vld [vmem:[%s9814_s5 + $0xc0] sm:$0xff] }
 0x92e   : > { %v6622_v43 = vpop.xlane.xlu0 %6621 }
 0x92f   : > { %v6627_v42 = vmul.f32 0.0078125, %v6622_v43  ;;  %v6634_v11 = vmul.f32 %v10864_v30, %v10864_v30  ;;  %8213 = vmatpush1.bf16.msra.mxu1 %v8212_v23  ;;  %v6846_v43 = vld [vmem:[%s9814_s5 + $0xc8] sm:$0xff] }
 0x930   : > { %8215 = vmatprep.subr.bf16.mxu1 %v8214_v27 }
 0x931   : > { %v10868_v44 = vsub.f32 %v6612_v12, %v6627_v42  ;;  %6640 = vadd.xlane.f32.xlu1 %v6634_v11  ;;  %v6708_v12 = vld [vmem:[%s11280_s28 + $0xe0] sm:$0xff]  ;;  %v8232_v42 = vpack.c.bf16 %v6828_v8, %v6827_v14  ;;  %v8234_v11 = vpack.c.bf16 %v6846_v43, %v6845_v25 }
 0x932   : > { %v8216_v38 = vpack.c.bf16 %v6710_v36, %v6708_v12 }
 0x933   : > { %v6635_v13 = vmul.f32 %v10868_v44, %v10868_v44  ;;  %8233 = vmatpush3.bf16.msra.mxu0 %v8232_v42 }
 0x934   : > { %8217 = vmatpush1.bf16.msra.mxu1 %v8216_v38  ;;  %8235 = vmatprep.subr.bf16.mxu0 %v8234_v11 }
 0x935   : > { %6642 = vadd.xlane.f32.xlu0 %v6635_v13  ;;  %8250 = vmatprep.subr.bf16.mxu1 %v8218_v5  ;;  %v6848_v13 = vld [vmem:[%s9814_s5 + $0xd8] sm:$0xff] }
 0x936   : > { %v8238_v61 = vpack.c.bf16 %v6848_v13, %v6847_v40 }
 0x937   : > { %8237 = vmatpush3.bf16.msra.mxu0 %v8236_v28 }
 0x938   : > { %8239 = vmatprep.subr.bf16.mxu0 %v8238_v61 }
 0x93b   : > { %8241 = vmatpush3.bf16.msra.mxu0 %v8240_v34 }
 0x93c   : > { %8243 = vmatprep.subr.bf16.mxu0 %v8242_v58 }
 0x9ac   : > { %v6639_v26 = vpop.xlane.xlu0 %6638 }
 0x9ad   : > { %v6645_v33 = vmul.f32 0.0078125, %v6639_v26  ;;  %v6637_v22 = vpop.xlane.xlu1 %6636 }
 0x9ae   : > { %v6644_v63 = vmul.f32 0.0078125, %v6637_v22 }
 0x9af   : > { %v6649_v54 = vadd.f32 1e-06, %v6645_v33 }
 0x9b0   : > { %v6648_v55 = vadd.f32 1e-06, %v6644_v63 }
 0x9b1   : > { %8550 = vrsqrt.f32 %v6649_v54 }
 0x9b2   : > { %8552 = vrsqrt.f32 %v6648_v55  ;;  %v7540_v55 = vld [vmem:[%s1133_s15] ss:$0 sm:$0xff] }
 0x9bb   : > { %v8551_v53 = vpop.eup %8550 }
 0x9bc   : > { %v8553_v47 = vpop.eup %8552  ;;  %v6657_v2 = vmul.f32 %v8551_v53, %v10856_v9 }
 0x9bd   : > { %v6656_v1 = vmul.f32 %v8553_v47, %v10858_v52 }
 0x9be   : > { %v6641_v50 = vpop.xlane.xlu1 %6640  ;;  %v6667_v36 = vmul.f32 %v7538_v4, %v6657_v2 }
 0x9bf   : > { %v6646_v57 = vmul.f32 0.0078125, %v6641_v50  ;;  %v6666_v23 = vmul.f32 %v7538_v4, %v6656_v1 }
 0x9c0   : > { %v10947_v52 = vadd.f32 %v7539_v6, %v6667_v36 }
 0x9c1   : > { %v6650_v27 = vadd.f32 1e-06, %v6646_v57  ;;  %v10942_v12 = vadd.f32 %v7539_v6, %v6666_v23 }
 0x9c2   : > { %v6643_v38 = vpop.xlane.xlu0 %6642 }
 0x9c3   : > { %8554 = vrsqrt.f32 %v6650_v27  ;;  %6789 = vmatmul.mubr.f32.vlgmr.msra.gmra.mrb[44].mxu1 %v10942_v12  ;;  %v6647_v24 = vmul.f32 0.0078125, %v6643_v38 }
 0x9c4   : > { %6794 = vmatprep.mubr.f32.mxu1 %v9061_v17  ;;  %8258 = vmatpush3.bf16.msra.mxu1 %v10898_v10 }
 0x9c5   : > { %v6651_v9 = vadd.f32 1e-06, %v6647_v24  ;;  %8251 = vmatprep.subr.bf16.mxu1 %v10900_v15  ;;  %v6833_v15 = vld [vmem:[%s9814_s5 + $0x60] sm:$0xff] }
 0x9c6   : > { %v8244_v56 = vpack.c.bf16 %v6834_v60, %v6833_v15 }
 0x9c7   : > { %8556 = vrsqrt.f32 %v6651_v9  ;;  %6795 = vmatmul.mubr.f32.gmra.mrb[46].mxu1 %v10947_v52 }
 0x9c8   : > { %6800 = vmatprep.mubr.f32.mxu1 %v9061_v17  ;;  %8259 = vmatpush3.bf16.msra.mxu1 %v10907_v16  ;;  %v6836_v16 = vld [vmem:[%s9814_s5 + $0x78] sm:$0xff] }
 0x9c9   : > { %8252 = vmatprep.subr.bf16.mxu1 %v10910_v35  ;;  %8245 = vmatpush3.bf16.msra.mxu0 %v8244_v56 }
 0x9cc   : > { %8260 = vmatpush3.bf16.msra.mxu1 %v8228_v48  ;;  %v6721_v48 = vrot.slane %v6712_v29, %v6720_v0 }
 0x9cd   : > { %v8555_v49 = vpop.eup %8554  ;;  %8253 = vmatprep.subr.bf16.mxu1 %v8230_v45 }
 0x9ce   : > { %v6658_v3 = vmul.f32 %v8555_v49, %v10864_v30 }
 0x9d0   : > { %v6668_v5 = vmul.f32 %v7538_v4, %v6658_v3  ;;  %8261 = vmatpush3.bf16.msra.mxu1 %v8232_v42 }
 0x9d1   : > { %v8557_v18 = vpop.eup %8556  ;;  %8254 = vmatprep.subr.bf16.mxu1 %v8234_v11 }
 0x9d2   : > { %v10955_v31 = vadd.f32 %v7539_v6, %v6668_v5  ;;  %v6659_v20 = vmul.f32 %v8557_v18, %v10868_v44  ;;  %v6851_v44 = vld [vmem:[%s9814_s5 + $0xf0] sm:$0xff] }
 0x9d3   : > { %v8246_v19 = vpack.c.bf16 %v6852_v41, %v6851_v44 }
 0x9d4   : > { %6801 = vmatmul.mubr.f32.gmra.mrb[48].mxu1 %v10955_v31  ;;  %v6669_v10 = vmul.f32 %v7538_v4, %v6659_v20 }
 0x9d5   : > { %6806 = vmatprep.mubr.f32.mxu1 %v9061_v17  ;;  %8262 = vmatpush3.bf16.msra.mxu1 %v8236_v28  ;;  %v6835_v17 = vld [vmem:[%s9814_s5 + $0x70] sm:$0xff] }
 0x9d6   : > { %v10960_v30 = vadd.f32 %v7539_v6, %v6669_v10  ;;  %8255 = vmatprep.subr.bf16.mxu1 %v8238_v61  ;;  %8247 = vmatprep.subr.bf16.mxu0 %v8246_v19  ;;  %v8248_v35 = vpack.c.bf16 %v6836_v16, %v6835_v17 }
 0x9d8   : > { %6807 = vmatmul.mubr.f32.gmra.mrb[50].mxu1 %v10960_v30  ;;  %8249 = vmatpush3.bf16.msra.mxu0 %v8248_v35 }
 0x9d9   : > { %8263 = vmatpush3.bf16.msra.mxu1 %v8240_v34 }
 0x9da   : > { %8256 = vmatprep.subr.bf16.mxu1 %v8242_v58 }
 0x9dd   : > { %8264 = vmatpush3.bf16.msra.mxu1 %v8244_v56 }
 0x9de   : > { %8257 = vmatprep.subr.bf16.mxu1 %v8246_v19 }
 0x9e1   : > { %8265 = vmatpush3.bf16.msra.mxu1 %v8248_v35 }
 0xa96   : > { %v6790_v45 = vpop.f32.mrb[44].mxu1 }
 0xa97   : > { %v6791_v14 = vadd.f32 %v6790_v45, %v6717_v51  ;;  %v6792_v8 = vpop.f32.mrb[45].mxu1 }
 0xa98   : > { %v6793_v25 = vadd.f32 %v6792_v8, %v6721_v48 }
 0xa99   : > { %v6813_v11 = vmax.f32 %v6791_v14, 0.0 }
 0xa9a   : > { %v6814_v43 = vmax.f32 %v6793_v25, 0.0  ;;  %v6796_v42 = vpop.f32.mrb[46].mxu1 }
 0xa9b   : > { %v6797_v46 = vadd.f32 %v6796_v42, %v6717_v51  ;;  %v6798_v7 = vpop.f32.mrb[47].mxu1 }
 0xa9c   : > { %v6799_v40 = vadd.f32 %v6798_v7, %v6721_v48  ;;  %6924 = vmatprep.mubr.f32.mxu0 %v6814_v43  ;;  %v7541_v43 = vld [vmem:[%s1136_s30] ss:$0 sm:$0xff] }
 0xa9d   : > { %6925 = vmatmul.mubr.f32.vlgmr.msra.gmra.mrb[36].mxu0 %v6813_v11  ;;  %v6815_v28 = vmax.f32 %v6797_v46, 0.0  ;;  %v7542_v11 = vld [vmem:[%s1139_s3] ss:$0 sm:$0xff]  ;;  %s11287_s3 = sld [smem:[#allocation35_spill]] }
 0xa9e   : > { %v6816_v13 = vmax.f32 %v6799_v40, 0.0 }
 0xaa0   : > { %6929 = vmatprep.mubr.f32.mxu0 %v6816_v13 }
 0xaa1   : > { %6930 = vmatmul.mubr.f32.gmra.mrb[38].mxu0 %v6815_v28 }
 0xaa3   : > { %p7543_p0 = scmp.ne.s32.totalorder %s11287_s3, 1 }
 0xaa7   : > { %v6802_v61 = vpop.f32.mrb[48].mxu1 }
 0xaa8   : > { %v6803_v37 = vadd.f32 %v6802_v61, %v6717_v51  ;;  %v6804_v39 = vpop.f32.mrb[49].mxu1 }
 0xaa9   : > { %v6805_v32 = vadd.f32 %v6804_v39, %v6721_v48 }
 0xaaa   : > { %v6817_v34 = vmax.f32 %v6803_v37, 0.0 }
 0xaab   : > { %v6818_v62 = vmax.f32 %v6805_v32, 0.0  ;;  %v6808_v21 = vpop.f32.mrb[50].mxu1 }
 0xaac   : > { %v6809_v58 = vadd.f32 %v6808_v21, %v6717_v51  ;;  %v6810_v26 = vpop.f32.mrb[51].mxu1 }
 0xaad   : > { %v6811_v33 = vadd.f32 %v6810_v26, %v6721_v48  ;;  %6934 = vmatprep.mubr.f32.mxu1 %v6818_v62 }
 0xaae   : > { %6935 = vmatmul.mubr.f32.vlgmr.msra.gmra.mrb[52].mxu1 %v6817_v34  ;;  %v6819_v63 = vmax.f32 %v6809_v58, 0.0 }
 0xaaf   : > { %v6820_v22 = vmax.f32 %v6811_v33, 0.0 }
 0xab1   : > { %6939 = vmatprep.mubr.f32.mxu1 %v6820_v22 }
 0xab2   : > { %6940 = vmatmul.mubr.f32.gmra.mrb[54].mxu1 %v6819_v63 }
 0xb70   : > { %v7734_v54 = vpop.f32.mrb[36].mxu0 }
 0xb71   : > { %v7735_v53 = vpop.f32.mrb[37].mxu0 }
 0xb72   : > { %v7736_v47 = vadd.f32 %v7735_v53, %v7734_v54 }
 0xb74   : > { %v6927_v4 = vadd.f32 %v7736_v47, %v7540_v55  ;;  %v7737_v1 = vpop.f32.mrb[38].mxu0 }
 0xb75   : > { %v7738_v2 = vpop.f32.mrb[39].mxu0 }
 0xb76   : > { %v7739_v50 = vadd.f32 %v7738_v2, %v7737_v1  ;;  %v6945_v6 = vadd.f32 %v6927_v4, %v10942_v12 }
 0xb78   : > { %v6932_v57 = vadd.f32 %v7739_v50, %v7540_v55  ;;  %6951 = vadd.xlane.f32.xlu1 %v6945_v6 }
 0xb7a   : > { %v6946_v23 = vadd.f32 %v6932_v57, %v10947_v52 }
 0xb7c   : > { %6953 = vadd.xlane.f32.xlu0 %v6946_v23 }
 0xb81   : > { %v7740_v27 = vpop.f32.mrb[52].mxu1 }
 0xb82   : > { %v7741_v36 = vpop.f32.mrb[53].mxu1 }
 0xb83   : > { %v7742_v38 = vadd.f32 %v7741_v36, %v7740_v27 }
 0xb85   : > { %v6937_v24 = vadd.f32 %v7742_v38, %v7540_v55  ;;  %v7743_v9 = vpop.f32.mrb[54].mxu1 }
 0xb86   : > { %v7744_v49 = vpop.f32.mrb[55].mxu1 }
 0xb87   : > { %v7745_v3 = vadd.f32 %v7744_v49, %v7743_v9  ;;  %v6947_v5 = vadd.f32 %v6937_v24, %v10955_v31 }
 0xb89   : > { %v6942_v18 = vadd.f32 %v7745_v3, %v7540_v55  ;;  %6955 = vadd.xlane.f32.xlu1 %v6947_v5 }
 0xb8b   : > { %v6948_v20 = vadd.f32 %v6942_v18, %v10960_v30 }
 0xb8d   : > { %6957 = vadd.xlane.f32.xlu0 %v6948_v20 }
 0xc05   : > { %v6952_v12 = vpop.xlane.xlu1 %6951 }
 0xc06   : > { %v6959_v10 = vmul.f32 0.0078125, %v6952_v12 }
 0xc08   : > { %v6963_v15 = vsub.f32 %v6945_v6, %v6959_v10 }
 0xc09   : > { %v6954_v60 = vpop.xlane.xlu0 %6953 }
 0xc0a   : > { %v6960_v52 = vmul.f32 0.0078125, %v6954_v60  ;;  %v6967_v56 = vmul.f32 %v6963_v15, %v6963_v15 }
 0xc0c   : > { %v6964_v44 = vsub.f32 %v6946_v23, %v6960_v52  ;;  %6971 = vadd.xlane.f32.xlu1 %v6967_v56 }
 0xc0e   : > { %v6968_v41 = vmul.f32 %v6964_v44, %v6964_v44 }
 0xc10   : > { %6973 = vadd.xlane.f32.xlu0 %v6968_v41 }
 0xc16   : > { %v6956_v19 = vpop.xlane.xlu1 %6955 }
 0xc17   : > { %v6961_v17 = vmul.f32 0.0078125, %v6956_v19 }
 0xc19   : > { %v6965_v16 = vsub.f32 %v6947_v5, %v6961_v17 }
 0xc1a   : > { %v6958_v35 = vpop.xlane.xlu0 %6957 }
 0xc1b   : > { %v6962_v31 = vmul.f32 0.0078125, %v6958_v35  ;;  %v6969_v59 = vmul.f32 %v6965_v16, %v6965_v16 }
 0xc1d   : > { %v6966_v30 = vsub.f32 %v6948_v20, %v6962_v31  ;;  %6975 = vadd.xlane.f32.xlu1 %v6969_v59 }
 0xc1f   : > { %v6970_v29 = vmul.f32 %v6966_v30, %v6966_v30 }
 0xc21   : > { %6977 = vadd.xlane.f32.xlu0 %v6970_v29 }
 0xc99   : > { %v6972_v0 = vpop.xlane.xlu1 %6971 }
 0xc9a   : > { %v6979_v51 = vmul.f32 0.0078125, %v6972_v0 }
 0xc9c   : > { %v6983_v48 = vadd.f32 1e-06, %v6979_v51 }
 0xc9d   : > { %v6974_v45 = vpop.xlane.xlu0 %6973 }
 0xc9e   : > { %8558 = vrsqrt.f32 %v6983_v48  ;;  %v6980_v14 = vmul.f32 0.0078125, %v6974_v45 }
 0xca0   : > { %v6984_v8 = vadd.f32 1e-06, %v6980_v14 }
 0xca2   : > { %8560 = vrsqrt.f32 %v6984_v8 }
 0xca8   : > { %v8559_v25 = vpop.eup %8558 }
 0xca9   : > { %v6991_v42 = vmul.f32 %v8559_v25, %v6963_v15 }
 0xcaa   : > { %v6976_v46 = vpop.xlane.xlu1 %6975 }
 0xcab   : > { %v7001_v7 = vmul.f32 %v7541_v43, %v6991_v42  ;;  %v6981_v40 = vmul.f32 0.0078125, %v6976_v46 }
 0xcac   : > { %v8561_v13 = vpop.eup %8560 }
 0xcad   : > { %v7011_v28 = vadd.f32 %v7542_v11, %v7001_v7  ;;  %v6992_v61 = vmul.f32 %v8561_v13, %v6964_v44  ;;  %v6985_v37 = vadd.f32 1e-06, %v6981_v40 }
 0xcae   : > { %v6978_v39 = vpop.xlane.xlu0 %6977 }
 0xcaf   : > { %7015 = vst [vmem:[#allocation2] sm:$0xff] %v7011_v28  ;;  %v7002_v32 = vmul.f32 %v7541_v43, %v6992_v61  ;;  %8562 = vrsqrt.f32 %v6985_v37  ;;  %v6982_v62 = vmul.f32 0.0078125, %v6978_v39 }
 0xcb1   : > { %v7012_v21 = vadd.f32 %v7542_v11, %v7002_v32  ;;  %v6986_v34 = vadd.f32 1e-06, %v6982_v62 }
 0xcb3   : > { %7016 = vst [vmem:[#allocation2 + $0x8] sm:$0xff] %v7012_v21  ;;  %8564 = vrsqrt.f32 %v6986_v34 }
 0xcb6   : > { %v7023_v47 = vld [vmem:[#allocation2] sm:$0xff] (!%p7543_p0) }
 0xcb7   : > { %7027 = vst [vmem:[%s9818_s25] sm:$0xff] (!%p7543_p0), %v7023_v47 }
 0xcb9   : > { %v8563_v58 = vpop.eup %8562 }
 0xcba   : > { %v6993_v26 = vmul.f32 %v8563_v58, %v6965_v16  ;;  %v7024_v4 = vld [vmem:[#allocation2 + $0x8] sm:$0xff] (!%p7543_p0) }
 0xcbb   : > { %7028 = vst [vmem:[%s9818_s25 + $0x8] sm:$0xff] (!%p7543_p0), %v7024_v4 }
 0xcbc   : > { %v7003_v33 = vmul.f32 %v7541_v43, %v6993_v26 }
 0xcbd   : > { %v8565_v22 = vpop.eup %8564 }
 0xcbe   : > { %v7013_v63 = vadd.f32 %v7542_v11, %v7003_v33  ;;  %v6994_v54 = vmul.f32 %v8565_v22, %v6966_v30  ;;  %7022 = sbr.rel (%p7543_p0) target bundleno = 3277 (0xccd), region = 156 }
 0xcc0   : > { %7017 = vst [vmem:[#allocation2 + $0x10] sm:$0xff] %v7013_v63  ;;  %v7004_v55 = vmul.f32 %v7541_v43, %v6994_v54 }
 0xcc2   : > { %v7014_v53 = vadd.f32 %v7542_v11, %v7004_v55 }
 0xcc4   : > { %7018 = vst [vmem:[#allocation2 + $0x18] sm:$0xff] %v7014_v53 }
 0xcc7   : > { %v7025_v1 = vld [vmem:[#allocation2 + $0x10] sm:$0xff] }
 0xcc8   : > { %7029 = vst [vmem:[%s9818_s25 + $0x10] sm:$0xff] %v7025_v1 }
 0xccb   : > { %v7026_v2 = vld [vmem:[#allocation2 + $0x18] sm:$0xff] }
 0xccc   : > { %7030 = vst [vmem:[%s9818_s25 + $0x18] sm:$0xff] %v7026_v2 }
 0xccd PF: > { %s11288_s30 = sld [smem:[#allocation36_spill]]  ;;  %s11289_s23 = sld [smem:[#allocation50_spill]] }
 0xcce   : > { %s11290_s6 = sld [smem:[#allocation76_spill]]  ;;  %s7045_s13 = sshll.u32 %s9818_s25, 4  ;;  %s11003_s13 = int_to_ptr.vmem [resolvable:$true] %s7045_s13 }
 0xccf   : > { %s7032_s1 = scalar_lea.sflag [#allocation5], %s9717_s29  ;;  %s8894_s19 = scalar_lea.vmem %s11003_s13, 512 }
 0xcd0   : > { %p8895_p11 = scmp.ne.s32.totalorder %s11003_s13, %s8894_s19  ;;  %s9065_s4 = smov [#allocation21]  }
 0xcd1   : > { %s8898_s28 = sshll.u32 %s9065_s4, 4  ;;  %s8899_s28 = int_to_ptr.vmem [resolvable:$false] %s8898_s28 }
 0xcd2   : > { %s8900_s26 = scalar_lea.vmem %s8899_s28, 1024  ;;  %p8901_p5 = scmp.lt.s32.totalorder %s11003_s13, %s8899_s28 }
 0xcd3   : > { %s7557_s27 = sshll.u32 %s11288_s30, 9  ;;  %p11291_p10 = scmp.ne.s32.totalorder %s11289_s23, 0 }
 0xcd4   : > { %s11000_s17 = scalar_lea.hbm %s11290_s6, %s7557_s27  ;;  %p8902_p13 = scmp.lt.s32.totalorder %s8900_s26, %s8894_s19 }
 0xcd5   : > { %p8896_p3 = pnand %p8895_p11, %p11291_p10 }
 0xcd6   : > { %p8903_p8 = por %p8902_p13, %p8901_p5 }
 0xcd7   : > { %p8897_p1 = pneg %p8896_p3 }
 0xcd9   : > { %p8904_p2 = pnand %p8903_p8, %p8897_p1 }
 0xcdb   : > { %8907 = shalt.err (!%p8904_p2)
}
 0xcdc   : > { %s8908_s25 = scalar_lea.hbm %s11000_s17, 512  ;;  %s8912_s2 = scalar_lea.hbm %s11290_s6, 1024 }
 0xcdd   : > { %p8909_p12 = scmp.ne.s32.totalorder %s11000_s17, %s8908_s25  ;;  %p8913_p7 = scmp.lt.u32.totalorder %s11000_s17, %s11290_s6 }
 0xcde   : > { %p8914_p6 = scmp.lt.u32.totalorder %s8912_s2, %s8908_s25  ;;  %p8916_p11 = scmp.lt.u32.totalorder %s8908_s25, %s11000_s17 }
 0xcdf   : > { %p8910_p9 = pnand %p8909_p12, %p11291_p10 }
 0xce0   : > { %p8915_p0 = por %p8914_p6, %p8913_p7 }
 0xce1   : > { %p8911_p4 = pneg %p8910_p9 }
 0xce2   : > { %p8917_p3 = por %p8916_p11, %p8915_p0 }
 0xce4   : > { %p8918_p1 = pnand %p8917_p3, %p8911_p4 }
 0xce6   : > { %8921 = shalt.err (!%p8918_p1)
}
 0xce7   : > { %s9066_s8 = smov 128   ;;  %s9067_s21 = smov 8  }
 0xce8   : > { %8294 = dma.vmem_to_hbm [thread:$0]  (%p11291_p10), %s11003_s13, 512, %s11000_s17, %s7032_s1, %s9066_s8, %s9066_s8, %s9067_s21  }
 0xce9 PF: > { %s11292_s16 = sld [smem:[#allocation39_spill]]  ;;  %s11293_s5 = sld [smem:[#allocation32_spill]] }
 0xcea   : > { %s11294_s15 = sld [smem:[#allocation42_spill]] }
 0xcef   : > { %p8342_p5 = scmp.ge.s32.totalorder %s11292_s16, 2  ;;  %s7060_s7 = sand.u32 1, %s11293_s5  }
 0xcf0   : > { %p11295_p13 = scmp.ne.s32.totalorder %s11294_s15, 0  ;;  %s7061_s12 = scalar_lea.sflag [#allocation5], %s7060_s7 }
 0xcf2   : > { %p8332_p8 = pnand %p8342_p5, %p11295_p13 }
 0xcf4   : > { %8995 = dma.done.wait (!%p8332_p8), %s7061_s12, 512  }
 0xcf5   : > { %8997 = vsyncadd (!%p8332_p8), %s7061_s12, 4294966784  ;;  %s50_s5 = sadd.s32 1, %s11292_s16   ;;  %s11296_s2 = sld [smem:[#allocation30_spill]] }
 0xcf6   : > { %p47_p2 = scmp.ge.s32.totalorder %s50_s5, 6   ;;  %s11297_s25 = sld [smem:[#allocation31_spill]] }
 0xcf7   : > { %s11298_s26 = sld [smem:[#allocation45_spill]]  ;;  %s11299_s27 = sld [smem:[#allocation33_spill]] }
 0xcf8   : > { %s11300_s3 = sld [smem:[#allocation34_spill]]  ;;  %s11301_s28 = sld [smem:[#allocation52_spill]] }
 0xcf9   : > { %s11302_s29 = sld [smem:[#allocation37_spill]]  ;;  %s11303_s0 = sld [smem:[#allocation38_spill]] }
 0xcfa   : > { %s11304_s4 = sld [smem:[#allocation44_spill]]  ;;  %s11305_s30 = sld [smem:[#allocation51_spill]] }
 0xcfb   :  { %49 = sbr.rel (!%p47_p2) target bundleno = 41 (0x29), region = 284 }
 0xd02   :  { %7066 = vsyncpa [#allocation4], 1 }
 0xd03   :  { %7068 = vsyncpa [#allocation4 + $0x1], 1 }
 0xd04   :  { %7069 = vsyncpa [#allocation7], 1 }
 0xd05   :  { %7071 = vsyncpa [#allocation7 + $0x1], 1 }
 0xd06   :  { %7072 = vsyncpa [#allocation10], 1 }
 0xd07   :  { %7073 = vsyncpa [#allocation13], 1 }
 0xd08   :  { %7075 = vsyncpa [#allocation13 + $0x1], 1 }
 0xd09   :  { %7076 = vsyncpa [#allocation16], 1 }
 0xd0a   :  { %7078 = vsyncpa [#allocation16 + $0x1], 1 }
 0xd0b   :  { %7079 = vsyncpa [#allocation19], 1 }
 0xd0c   :  { %7081 = vsyncpa [#allocation19 + $0x1], 1 }
 0xd0d   :  { %7082 = vsyncpa [#allocation5], 1 }
 0xd0e   :  { %7084 = vsyncpa [#allocation5 + $0x1], 1 }

</bundles_post_ra>
